<compile_context>
chip_gen: v7x
topology: tpu7x:2x2x1
jax: 0.10.0
libtpu: 0.0.40
codegen_flags: <defaults>
</compile_context>

<pallas_src>
import functools

import jax
import jax.numpy as jnp
from jax import lax
from jax.experimental import pallas as pl
from jax.experimental.pallas import tpu as pltpu

IMAGE_DIM = 64
BN_EPS = 1e-5

# Static network dimensions (the module's fc sizes hard-code image_dim = 64).
K = 5                              # conv kernel size
PAD = 2                            # "same" padding
H1 = W1 = IMAGE_DIM                # stage-1 spatial
CIN, C1 = 3, 8                     # stage-1 in/out channels
P1 = 8                             # maxpool1
H2 = W2 = IMAGE_DIM // P1          # 8 : stage-2 spatial
C2 = 32                            # stage-2 out channels
P2 = 8                             # maxpool2
RW1 = (W1 + K - 1) * CIN           # padded stage-1 row width = 68*3 = 204
RW2 = (W2 + K - 1) * C1            # padded stage-2 row width = 12*8 = 96
RW1P = 256                         # lane-aligned per-tap slab width (204 -> 256)
RW2P = 128                         # lane-aligned per-tap slab width (96 -> 128)
F1, F2, F3 = 16, 8, 5              # fc1 / fc2 / fc5 widths

MAX_TILE_N = 32                    # batch-tile cap (VMEM checked for all generations)


# ----------------------------------------------------------------------------
# The fused kernel: one batch tile per grid step, everything stays in VMEM.
# ----------------------------------------------------------------------------
def _convnn_kernel(x_ref, w1_ref, b1_ref, w2_ref, b2_ref,
                   fw1_ref, fb1_ref, fw2_ref, fb2_ref, fw3_ref, fb3_ref,
                   out_ref,
                   xpad1, col1, xpad2, col2, *, tn):
    bf = xpad1.dtype

    # -------- stage 1: conv1 (+bias/BN1 folded) + ReLU + 8x8 maxpool ----------
    # Zero only the halo strips (the interior is fully overwritten right below).
    # Done every step so the kernel is correct even if the parallel batch axis is
    # sharded across TensorCores (per-core scratch; program_id is the global index).
    xpad1[:, :PAD, :] = jnp.zeros((tn, PAD, RW1P), bf)
    xpad1[:, PAD + H1:, :] = jnp.zeros((tn, PAD, RW1P), bf)
    xpad1[:, PAD:PAD + H1, :PAD * CIN] = jnp.zeros((tn, H1, PAD * CIN), bf)
    xpad1[:, PAD:PAD + H1, PAD * CIN + W1 * CIN:] = (
        jnp.zeros((tn, H1, RW1P - PAD * CIN - W1 * CIN), bf))
    xpad1[:, PAD:PAD + H1, PAD * CIN:PAD * CIN + W1 * CIN] = x_ref[...]

    # im2col over the K row taps: 5 lane-aligned (tn*64, 256) copies (offsets dy*256).
    for dy in range(K):
        col1[:, dy * RW1P:(dy + 1) * RW1P] = (
            xpad1[:, dy:dy + H1, :].reshape(tn * H1, RW1P))

    # One MXU matmul: contraction K*RW1P = 1280, output W1*C1 = 512 lanes.  Columns are
    # permuted host-side so the x-pool groups have lane stride 64 (pooled result lands
    # in lanes [0:64) after the roll-tree).
    a1 = jnp.dot(col1[...], w1_ref[...], preferred_element_type=jnp.float32)  # (tn*64,512)

    # H-pool: sublane max over row groups of 8 (single pass over the matmul result).
    a1 = jnp.max(a1.reshape(tn * (H1 // P1), P1, W1 * C1), axis=1)            # (tn*8,512)
    # W-pool: XLU roll log-tree over lane stride 64; pooled values end in lanes [0:64).
    for s in (64, 128, 256):
        a1 = jnp.maximum(a1, pltpu.roll(a1, shift=s, axis=1))
    # Bias + ReLU after the pool (exact: bias constant per pool window, ReLU monotone).
    p1 = jnp.maximum(a1[:, :W2 * C1] + b1_ref[...], 0.0)                      # (tn*8, 64)

    # -------- stage 2: conv2 (+bias/BN2 folded) + 8x8 maxpool -----------------
    xpad2[...] = jnp.zeros_like(xpad2)                    # tiny buffer: clear wholesale
    xpad2[:, PAD:PAD + H2, PAD * C1:PAD * C1 + W2 * C1] = (
        p1.reshape(tn, H2, W2 * C1).astype(bf))
    for dy in range(K):
        col2[:, dy * RW2P:(dy + 1) * RW2P] = (
            xpad2[:, dy:dy + H2, :].reshape(tn * H2, RW2P))
    a2 = jnp.dot(col2[...], w2_ref[...], preferred_element_type=jnp.float32)  # (tn*8,256)
    a2 = jnp.max(a2.reshape(tn, H2, W2 * C2), axis=1)                         # (tn, 256)
    for s in (32, 64, 128):
        a2 = jnp.maximum(a2, pltpu.roll(a2, shift=s, axis=1))
    p2 = a2[:, :C2] + b2_ref[...]                         # (tn, 32) == out.view(-1, 32)

    # -------- MLP head: fc1 -> ReLU -> fc2 -> ReLU -> fc5 ---------------------
    # TODO(synk): nn.Dropout(p=0.5) is identity at inference; training-mode masking not implemented.
    h = jnp.maximum(jnp.dot(p2, fw1_ref[...],
                            preferred_element_type=jnp.float32) + fb1_ref[...], 0.0)
    h = jnp.maximum(jnp.dot(h, fw2_ref[...],
                            preferred_element_type=jnp.float32) + fb2_ref[...], 0.0)
    out = jnp.dot(h, fw3_ref[...], preferred_element_type=jnp.float32) + fb3_ref[...]
    out_ref[...] = out[:, None, :]                                            # (tn, 1, 5)


# ----------------------------------------------------------------------------
# Host-side (trace-time) weight preparation
# ----------------------------------------------------------------------------
def _fold_bn(w_oihw, b, gamma, beta, mean, var):
    """Fold conv bias + eval-mode BatchNorm into the conv weights (exact)."""
    s = gamma * lax.rsqrt(var + BN_EPS)
    w_hwio = jnp.transpose(w_oihw, (2, 3, 1, 0)) * s        # scale output channel
    b_fold = (b - mean) * s + beta
    return w_hwio, b_fold


def _toeplitz_conv_weight(w_hwio, w_out, rw_pad, pool_block=None):
    """Banded matrix (K*rw_pad, w_out*Cout): a padded input-row window flattened as
    (dy, xp, ci) (each tap slab zero-padded to rw_pad lanes) matmul'd with it yields one
    conv output row flattened as (x, co).  If pool_block is given, the output columns
    are permuted from (x_block, x_within, co) to (x_within, x_block, co) so the x-pool
    groups have lane stride x_blocks*cout and the pooled result is a contiguous slice."""
    k, _, cin, cout = w_hwio.shape
    wp = w_out + k - 1
    xp = jnp.arange(wp)[:, None]
    x = jnp.arange(w_out)[None, :]
    dx = xp - x
    valid = (dx >= 0) & (dx < k)
    taps = w_hwio[:, jnp.clip(dx, 0, k - 1), :, :]           # (k, wp, w_out, cin, cout)
    taps = jnp.where(valid[None, :, :, None, None], taps, 0.0)
    taps = jnp.transpose(taps, (0, 1, 3, 2, 4))              # (k, wp, cin, w_out, cout)
    m = taps.reshape(k, wp * cin, w_out * cout)
    m = jnp.pad(m, ((0, 0), (0, rw_pad - wp * cin), (0, 0)))  # lane-align each tap slab
    m = m.reshape(k * rw_pad, w_out * cout)
    if pool_block is not None:
        nb = w_out // pool_block
        m = jnp.transpose(m.reshape(-1, nb, pool_block, cout), (0, 2, 1, 3))
        m = m.reshape(-1, w_out * cout)
    return m


def _auto_tile_n(n, cap=MAX_TILE_N):
    """Largest divisor of n that is <= cap and leaves >= 2 grid steps (2 TCs on v7x);
    falls back to the largest divisor <= cap for very small batches."""
    divs = [t for t in range(1, min(cap, n) + 1) if n % t == 0]
    two_step = [t for t in divs if n // t >= 2]
    return max(two_step) if two_step else max(divs)


# ----------------------------------------------------------------------------
# Full forward pass: one pallas_call, grid over the batch
# ----------------------------------------------------------------------------
@functools.partial(jax.jit, static_argnames=("tile_n",))
def convnn_forward(x_nchw, p, tile_n=None):
    n = x_nchw.shape[0]
    if tile_n is None:
        tile_n = _auto_tile_n(n)
    assert n % tile_n == 0, "batch must be divisible by the batch tile"

    # NCHW -> lane-dense rows (N, H, W*Cin), bf16 for the MXU.
    # (Wrapper-side transpose kept; it is a small one-shot HBM pass vs. the fused kernel.)
    x_rows = (jnp.transpose(x_nchw, (0, 2, 3, 1))
              .reshape(n, H1, W1 * CIN).astype(jnp.bfloat16))

    # BN/bias fold + lane-aligned banded row-Toeplitz conv weights (bf16 MXU operands).
    w1_hwio, b1 = _fold_bn(p["w1"], p["b1"], p["bn1_gamma"], p["bn1_beta"],
                           p["bn1_mean"], p["bn1_var"])
    w2_hwio, b2 = _fold_bn(p["w2"], p["b2"], p["bn2_gamma"], p["bn2_beta"],
                           p["bn2_mean"], p["bn2_var"])
    w1_big = _toeplitz_conv_weight(w1_hwio, W1, RW1P,
                                   pool_block=P1).astype(jnp.bfloat16)     # (1280, 512)
    w2_big = _toeplitz_conv_weight(w2_hwio, W2, RW2P).astype(jnp.bfloat16)  # (640, 256)
    # Biases are applied AFTER the pools: stage-1 pooled lanes are (x_block, co),
    # stage-2 pooled lanes are just co.
    b1_lane = jnp.tile(b1, W1 // P1).reshape(1, W2 * C1).astype(jnp.float32)  # (1, 64)
    b2_lane = b2.reshape(1, C2).astype(jnp.float32)                           # (1, 32)

    fw1, fb1 = p["fc1_w"].T, p["fc1_b"].reshape(1, F1)
    fw2, fb2 = p["fc2_w"].T, p["fc2_b"].reshape(1, F2)
    fw3, fb3 = p["fc5_w"].T, p["fc5_b"].reshape(1, F3)

    def resident(arr):                      # weights: same (full) block every grid step
        nd = arr.ndim
        return pl.BlockSpec(arr.shape, lambda i, _nd=nd: (0,) * _nd)

    kernel = functools.partial(_convnn_kernel, tn=tile_n)

    out = pl.pallas_call(
        kernel,
        out_shape=jax.ShapeDtypeStruct((n, 1, F3), jnp.float32),
        grid=(n // tile_n,),
        in_specs=[
            pl.BlockSpec((tile_n, H1, W1 * CIN), lambda i: (i, 0, 0)),
            resident(w1_big), resident(b1_lane),
            resident(w2_big), resident(b2_lane),
            resident(fw1), resident(fb1),
            resident(fw2), resident(fb2),
            resident(fw3), resident(fb3),
        ],
        out_specs=pl.BlockSpec((tile_n, 1, F3), lambda i: (i, 0, 0)),
        scratch_shapes=[
            pltpu.VMEM((tile_n, H1 + 2 * PAD, RW1P), jnp.bfloat16),  # padded stage-1 rows
            pltpu.VMEM((tile_n * H1, K * RW1P), jnp.bfloat16),       # stage-1 im2col
            pltpu.VMEM((tile_n, H2 + 2 * PAD, RW2P), jnp.bfloat16),  # padded stage-2 rows
            pltpu.VMEM((tile_n * H2, K * RW2P), jnp.bfloat16),       # stage-2 im2col
        ],
        # ~13 MiB at tile_n=16 / ~24 MiB at tile_n=32 (scratch + double-buffered input
        # and weights + f32 matmul results); 32 MiB scoped VMEM is valid on v5e/v6e/v7x.
        compiler_params=pltpu.CompilerParams(
            dimension_semantics=("parallel",),
            vmem_limit_bytes=32 * 1024 * 1024),
    )(x_rows, w1_big, b1_lane, w2_big, b2_lane, fw1, fb1, fw2, fb2, fw3, fb3)
    return out.reshape(n, F3)


# ----------------------------------------------------------------------------
# Deterministic parameter construction (mirrors the PyTorch module's shapes)
# ----------------------------------------------------------------------------
def init_params(key):
    ks = jax.random.split(key, 18)
    n = lambda k, s: 0.1 * jax.random.normal(k, s, jnp.float32)
    p = {}
    p["w1"] = n(ks[0], (8, 3, 5, 5))                                    # OIHW (PyTorch)
    p["b1"] = n(ks[1], (8,))
    p["bn1_gamma"] = 1.0 + n(ks[2], (8,))
    p["bn1_beta"] = n(ks[3], (8,))
    p["bn1_mean"] = n(ks[4], (8,))
    p["bn1_var"] = 1.0 + jnp.abs(n(ks[5], (8,)))
    p["w2"] = n(ks[6], (32, 8, 5, 5))
    p["b2"] = n(ks[7], (32,))
    p["bn2_gamma"] = 1.0 + n(ks[8], (32,))
    p["bn2_beta"] = n(ks[9], (32,))
    p["bn2_mean"] = n(ks[10], (32,))
    p["bn2_var"] = 1.0 + jnp.abs(n(ks[11], (32,)))
    p["fc1_w"] = n(ks[12], (16, 32))                                    # [out, in] (PyTorch)
    p["fc1_b"] = n(ks[13], (16,))
    p["fc2_w"] = n(ks[14], (8, 16))
    p["fc2_b"] = n(ks[15], (8,))
    p["fc5_w"] = n(ks[16], (5, 8))
    p["fc5_b"] = n(ks[17], (5,))
    return p


# ----------------------------------------------------------------------------
# Pure-JAX reference (for correctness check)
# ----------------------------------------------------------------------------
def reference_forward(x_nchw, p):
    hi = lax.Precision.HIGHEST
    x = jnp.transpose(x_nchw, (0, 2, 3, 1))

    def bn(y, g, b, m, v):
        return (y - m) * lax.rsqrt(v + BN_EPS) * g + b

    w1 = jnp.transpose(p["w1"], (2, 3, 1, 0))
    y = lax.conv_general_dilated(x, w1, (1, 1), "SAME",
                                 dimension_numbers=("NHWC", "HWIO", "NHWC"),
                                 precision=hi) + p["b1"]
    y = jnp.maximum(bn(y, p["bn1_gamma"], p["bn1_beta"], p["bn1_mean"], p["bn1_var"]), 0.0)
    y = lax.reduce_window(y, -jnp.inf, lax.max, (1, 8, 8, 1), (1, 8, 8, 1), "VALID")
    w2 = jnp.transpose(p["w2"], (2, 3, 1, 0))
    y = lax.conv_general_dilated(y, w2, (1, 1), "SAME",
                                 dimension_numbers=("NHWC", "HWIO", "NHWC"),
                                 precision=hi) + p["b2"]
    y = bn(y, p["bn2_gamma"], p["bn2_beta"], p["bn2_mean"], p["bn2_var"])
    y = lax.reduce_window(y, -jnp.inf, lax.max, (1, 8, 8, 1), (1, 8, 8, 1), "VALID")
    y = y.reshape(y.shape[0], 32)
    y = jnp.maximum(jnp.dot(y, p["fc1_w"].T, precision=hi) + p["fc1_b"], 0.0)
    y = jnp.maximum(jnp.dot(y, p["fc2_w"].T, precision=hi) + p["fc2_b"], 0.0)
    return jnp.dot(y, p["fc5_w"].T, precision=hi) + p["fc5_b"]


if __name__ == "__main__":
    key = jax.random.PRNGKey(0)
    pkey, xkey = jax.random.split(key)
    params = init_params(pkey)
    # Small batch; auto tile picks tile_n=2 -> 2 grid steps with tn>1 (exercises the
    # multi-step pipeline and the per-step halo handling).
    x = jax.random.normal(xkey, (4, 3, IMAGE_DIM, IMAGE_DIM), jnp.float32)  # NCHW

    out = jax.block_until_ready(convnn_forward(x, params))
    ref = jax.block_until_ready(reference_forward(x, params))

    assert out.shape == (4, 5), out.shape
    # bf16 conv operands with f32 accumulation vs. an all-f32 HIGHEST-precision reference.
    assert jnp.allclose(out, ref, atol=3e-2, rtol=3e-2), (out, ref)
    print("KERNEL_OK")
</pallas_src>

<mosaic_0001>
module attributes {stable_mosaic.version = 11 : i64} {
  func.func @_convnn_kernel(%arg0: i32, %arg1: memref<2x64x192xbf16, #tpu.memory_space<vmem>>, %arg2: memref<1280x512xbf16, #tpu.memory_space<vmem>>, %arg3: memref<1x64xf32, #tpu.memory_space<vmem>>, %arg4: memref<640x256xbf16, #tpu.memory_space<vmem>>, %arg5: memref<1x32xf32, #tpu.memory_space<vmem>>, %arg6: memref<32x16xf32, #tpu.memory_space<vmem>>, %arg7: memref<1x16xf32, #tpu.memory_space<vmem>>, %arg8: memref<16x8xf32, #tpu.memory_space<vmem>>, %arg9: memref<1x8xf32, #tpu.memory_space<vmem>>, %arg10: memref<8x5xf32, #tpu.memory_space<vmem>>, %arg11: memref<1x5xf32, #tpu.memory_space<vmem>>, %arg12: memref<2x1x5xf32, #tpu.memory_space<vmem>>, %arg13: memref<2x68x256xbf16, #tpu.memory_space<vmem>>, %arg14: memref<128x1280xbf16, #tpu.memory_space<vmem>>, %arg15: memref<2x12x128xbf16, #tpu.memory_space<vmem>>, %arg16: memref<16x640xbf16, #tpu.memory_space<vmem>>) attributes {dimension_semantics = [#tpu.dimension_semantics<parallel>], iteration_bounds = array<i64: 2>, scalar_prefetch = 0 : i64, scratch_operands = 4 : i64, tpu.core_type = #tpu.core_type<tc>, window_params = [{transform_indices = @transform_0, window_bounds = array<i64: 2, 64, 192>}, {pipeline_mode = #tpu.pipeline_mode<synchronous>, transform_indices = @transform_1, window_bounds = array<i64: 1280, 512>}, {pipeline_mode = #tpu.pipeline_mode<synchronous>, transform_indices = @transform_2, window_bounds = array<i64: 1, 64>}, {pipeline_mode = #tpu.pipeline_mode<synchronous>, transform_indices = @transform_3, window_bounds = array<i64: 640, 256>}, {pipeline_mode = #tpu.pipeline_mode<synchronous>, transform_indices = @transform_4, window_bounds = array<i64: 1, 32>}, {pipeline_mode = #tpu.pipeline_mode<synchronous>, transform_indices = @transform_5, window_bounds = array<i64: 32, 16>}, {pipeline_mode = #tpu.pipeline_mode<synchronous>, transform_indices = @transform_6, window_bounds = array<i64: 1, 16>}, {pipeline_mode = #tpu.pipeline_mode<synchronous>, transform_indices = @transform_7, window_bounds = array<i64: 16, 8>}, {pipeline_mode = #tpu.pipeline_mode<synchronous>, transform_indices = @transform_8, window_bounds = array<i64: 1, 8>}, {pipeline_mode = #tpu.pipeline_mode<synchronous>, transform_indices = @transform_9, window_bounds = array<i64: 8, 5>}, {pipeline_mode = #tpu.pipeline_mode<synchronous>, transform_indices = @transform_10, window_bounds = array<i64: 1, 5>}, {transform_indices = @transform_11, window_bounds = array<i64: 2, 1, 5>}]} {
    %cst = arith.constant 0.000000e+00 : bf16
    %0 = vector.broadcast %cst : bf16 to vector<2x2x256xbf16>
    %c0 = arith.constant 0 : index
    %c0_0 = arith.constant 0 : index
    %c0_1 = arith.constant 0 : index
    %1 = vector.load %arg13[%c0, %c0_0, %c0_1] : memref<2x68x256xbf16, #tpu.memory_space<vmem>>, vector<2x2x256xbf16>
    tpu.vector_store %arg13[%c0, %c0_0, %c0_1], %0 {strides = array<i32>} : memref<2x68x256xbf16, #tpu.memory_space<vmem>>, vector<2x2x256xbf16>,
    %cst_2 = arith.constant 0.000000e+00 : bf16
    %2 = vector.broadcast %cst_2 : bf16 to vector<2x2x256xbf16>
    %c0_3 = arith.constant 0 : index
    %c66 = arith.constant 66 : index
    %c0_4 = arith.constant 0 : index
    %3 = vector.load %arg13[%c0_3, %c66, %c0_4] : memref<2x68x256xbf16, #tpu.memory_space<vmem>>, vector<2x2x256xbf16>
    tpu.vector_store %arg13[%c0_3, %c66, %c0_4], %2 {strides = array<i32>} : memref<2x68x256xbf16, #tpu.memory_space<vmem>>, vector<2x2x256xbf16>,
    %cst_5 = arith.constant 0.000000e+00 : bf16
    %4 = vector.broadcast %cst_5 : bf16 to vector<2x64x6xbf16>
    %c0_6 = arith.constant 0 : index
    %c2 = arith.constant 2 : index
    %c0_7 = arith.constant 0 : index
    %5 = vector.load %arg13[%c0_6, %c2, %c0_7] : memref<2x68x256xbf16, #tpu.memory_space<vmem>>, vector<2x64x6xbf16>
    tpu.vector_store %arg13[%c0_6, %c2, %c0_7], %4 {strides = array<i32>} : memref<2x68x256xbf16, #tpu.memory_space<vmem>>, vector<2x64x6xbf16>,
    %cst_8 = arith.constant 0.000000e+00 : bf16
    %6 = vector.broadcast %cst_8 : bf16 to vector<2x64x58xbf16>
    %c0_9 = arith.constant 0 : index
    %c2_10 = arith.constant 2 : index
    %c198 = arith.constant 198 : index
    %7 = vector.load %arg13[%c0_9, %c2_10, %c198] : memref<2x68x256xbf16, #tpu.memory_space<vmem>>, vector<2x64x58xbf16>
    tpu.vector_store %arg13[%c0_9, %c2_10, %c198], %6 {strides = array<i32>} : memref<2x68x256xbf16, #tpu.memory_space<vmem>>, vector<2x64x58xbf16>,
    %c0_11 = arith.constant 0 : index
    %c0_12 = arith.constant 0 : index
    %c0_13 = arith.constant 0 : index
    %8 = vector.load %arg1[%c0_11, %c0_12, %c0_13] : memref<2x64x192xbf16, #tpu.memory_space<vmem>>, vector<2x64x192xbf16>
    %c0_14 = arith.constant 0 : index
    %c2_15 = arith.constant 2 : index
    %c6 = arith.constant 6 : index
    %9 = vector.load %arg13[%c0_14, %c2_15, %c6] : memref<2x68x256xbf16, #tpu.memory_space<vmem>>, vector<2x64x192xbf16>
    tpu.vector_store %arg13[%c0_14, %c2_15, %c6], %8 {strides = array<i32>} : memref<2x68x256xbf16, #tpu.memory_space<vmem>>, vector<2x64x192xbf16>,
    %c0_16 = arith.constant 0 : index
    %c0_17 = arith.constant 0 : index
    %c0_18 = arith.constant 0 : index
    %10 = vector.load %arg13[%c0_16, %c0_17, %c0_18] : memref<2x68x256xbf16, #tpu.memory_space<vmem>>, vector<2x64x256xbf16>
    %11 = vector.shape_cast %10 : vector<2x64x256xbf16> to vector<128x256xbf16>
    %c0_19 = arith.constant 0 : index
    %c0_20 = arith.constant 0 : index
    %12 = vector.load %arg14[%c0_19, %c0_20] : memref<128x1280xbf16, #tpu.memory_space<vmem>>, vector<128x256xbf16>
    tpu.vector_store %arg14[%c0_19, %c0_20], %11 {strides = array<i32>} : memref<128x1280xbf16, #tpu.memory_space<vmem>>, vector<128x256xbf16>,
    %c0_21 = arith.constant 0 : index
    %c1 = arith.constant 1 : index
    %c0_22 = arith.constant 0 : index
    %13 = vector.load %arg13[%c0_21, %c1, %c0_22] : memref<2x68x256xbf16, #tpu.memory_space<vmem>>, vector<2x64x256xbf16>
    %14 = vector.shape_cast %13 : vector<2x64x256xbf16> to vector<128x256xbf16>
    %c0_23 = arith.constant 0 : index
    %c256 = arith.constant 256 : index
    %15 = vector.load %arg14[%c0_23, %c256] : memref<128x1280xbf16, #tpu.memory_space<vmem>>, vector<128x256xbf16>
    tpu.vector_store %arg14[%c0_23, %c256], %14 {strides = array<i32>} : memref<128x1280xbf16, #tpu.memory_space<vmem>>, vector<128x256xbf16>,
    %c0_24 = arith.constant 0 : index
    %c2_25 = arith.constant 2 : index
    %c0_26 = arith.constant 0 : index
    %16 = vector.load %arg13[%c0_24, %c2_25, %c0_26] : memref<2x68x256xbf16, #tpu.memory_space<vmem>>, vector<2x64x256xbf16>
    %17 = vector.shape_cast %16 : vector<2x64x256xbf16> to vector<128x256xbf16>
    %c0_27 = arith.constant 0 : index
    %c512 = arith.constant 512 : index
    %18 = vector.load %arg14[%c0_27, %c512] : memref<128x1280xbf16, #tpu.memory_space<vmem>>, vector<128x256xbf16>
    tpu.vector_store %arg14[%c0_27, %c512], %17 {strides = array<i32>} : memref<128x1280xbf16, #tpu.memory_space<vmem>>, vector<128x256xbf16>,
    %c0_28 = arith.constant 0 : index
    %c3 = arith.constant 3 : index
    %c0_29 = arith.constant 0 : index
    %19 = vector.load %arg13[%c0_28, %c3, %c0_29] : memref<2x68x256xbf16, #tpu.memory_space<vmem>>, vector<2x64x256xbf16>
    %20 = vector.shape_cast %19 : vector<2x64x256xbf16> to vector<128x256xbf16>
    %c0_30 = arith.constant 0 : index
    %c768 = arith.constant 768 : index
    %21 = vector.load %arg14[%c0_30, %c768] : memref<128x1280xbf16, #tpu.memory_space<vmem>>, vector<128x256xbf16>
    tpu.vector_store %arg14[%c0_30, %c768], %20 {strides = array<i32>} : memref<128x1280xbf16, #tpu.memory_space<vmem>>, vector<128x256xbf16>,
    %c0_31 = arith.constant 0 : index
    %c4 = arith.constant 4 : index
    %c0_32 = arith.constant 0 : index
    %22 = vector.load %arg13[%c0_31, %c4, %c0_32] : memref<2x68x256xbf16, #tpu.memory_space<vmem>>, vector<2x64x256xbf16>
    %23 = vector.shape_cast %22 : vector<2x64x256xbf16> to vector<128x256xbf16>
    %c0_33 = arith.constant 0 : index
    %c1024 = arith.constant 1024 : index
    %24 = vector.load %arg14[%c0_33, %c1024] : memref<128x1280xbf16, #tpu.memory_space<vmem>>, vector<128x256xbf16>
    tpu.vector_store %arg14[%c0_33, %c1024], %23 {strides = array<i32>} : memref<128x1280xbf16, #tpu.memory_space<vmem>>, vector<128x256xbf16>,
    %c0_34 = arith.constant 0 : index
    %c0_35 = arith.constant 0 : index
    %25 = vector.load %arg14[%c0_34, %c0_35] : memref<128x1280xbf16, #tpu.memory_space<vmem>>, vector<128x1280xbf16>
    %c0_36 = arith.constant 0 : index
    %c0_37 = arith.constant 0 : index
    %26 = vector.load %arg2[%c0_36, %c0_37] : memref<1280x512xbf16, #tpu.memory_space<vmem>>, vector<1280x512xbf16>
    %cst_38 = arith.constant dense<0.000000e+00> : vector<128x512xf32>
    %27 = tpu.matmul %25, %26, %cst_38 {dimension_numbers = #tpu.dot_dimension_numbers<[1], [0], [0], [1], [0, 0, 1, 1], [], []>} : vector<128x1280xbf16>, vector<1280x512xbf16>, vector<128x512xf32> -> vector<128x512xf32>
    %28 = vector.shape_cast %27 : vector<128x512xf32> to vector<16x8x512xf32>
    %cst_39 = arith.constant dense<0xFF800000> : vector<16x512xf32>
    %29 = vector.multi_reduction <maximumf>, %28, %cst_39 [1] : vector<16x8x512xf32> to vector<16x512xf32>
    %c64_i32 = arith.constant 64 : i32
    %30 = tpu.dynamic_rotate %29 by %c64_i32 dim 1 : vector<16x512xf32>, i32 -> vector<16x512xf32>
    %31 = arith.maximumf %29, %30 : vector<16x512xf32>
    %c128_i32 = arith.constant 128 : i32
    %32 = tpu.dynamic_rotate %31 by %c128_i32 dim 1 : vector<16x512xf32>, i32 -> vector<16x512xf32>
    %33 = arith.maximumf %31, %32 : vector<16x512xf32>
    %c256_i32 = arith.constant 256 : i32
    %34 = tpu.dynamic_rotate %33 by %c256_i32 dim 1 : vector<16x512xf32>, i32 -> vector<16x512xf32>
    %35 = arith.maximumf %33, %34 : vector<16x512xf32>
    %36 = vector.extract_strided_slice %35 {offsets = [0, 0], sizes = [16, 64], strides = [1, 1]} : vector<16x512xf32> to vector<16x64xf32>
    %c0_40 = arith.constant 0 : index
    %c0_41 = arith.constant 0 : index
    %37 = vector.load %arg3[%c0_40, %c0_41] : memref<1x64xf32, #tpu.memory_space<vmem>>, vector<1x64xf32>
    %38 = vector.broadcast %37 : vector<1x64xf32> to vector<16x64xf32>
    %39 = arith.addf %36, %38 : vector<16x64xf32>
    %cst_42 = arith.constant 0.000000e+00 : f32
    %40 = vector.broadcast %cst_42 : f32 to vector<16x64xf32>
    %41 = arith.maximumf %39, %40 : vector<16x64xf32>
    %cst_43 = arith.constant 0.000000e+00 : bf16
    %42 = vector.broadcast %cst_43 : bf16 to vector<2x12x128xbf16>
    %c0_44 = arith.constant 0 : index
    %c0_45 = arith.constant 0 : index
    %c0_46 = arith.constant 0 : index
    %43 = vector.load %arg15[%c0_44, %c0_45, %c0_46] : memref<2x12x128xbf16, #tpu.memory_space<vmem>>, vector<2x12x128xbf16>
    tpu.vector_store %arg15[%c0_44, %c0_45, %c0_46], %42 {strides = array<i32>} : memref<2x12x128xbf16, #tpu.memory_space<vmem>>, vector<2x12x128xbf16>,
    %44 = vector.shape_cast %41 : vector<16x64xf32> to vector<2x8x64xf32>
    %45 = arith.truncf %44 : vector<2x8x64xf32> to vector<2x8x64xbf16>
    %c0_47 = arith.constant 0 : index
    %c2_48 = arith.constant 2 : index
    %c16 = arith.constant 16 : index
    %46 = vector.load %arg15[%c0_47, %c2_48, %c16] : memref<2x12x128xbf16, #tpu.memory_space<vmem>>, vector<2x8x64xbf16>
    tpu.vector_store %arg15[%c0_47, %c2_48, %c16], %45 {strides = array<i32>} : memref<2x12x128xbf16, #tpu.memory_space<vmem>>, vector<2x8x64xbf16>,
    %c0_49 = arith.constant 0 : index
    %c0_50 = arith.constant 0 : index
    %c0_51 = arith.constant 0 : index
    %47 = vector.load %arg15[%c0_49, %c0_50, %c0_51] : memref<2x12x128xbf16, #tpu.memory_space<vmem>>, vector<2x8x128xbf16>
    %48 = vector.shape_cast %47 : vector<2x8x128xbf16> to vector<16x128xbf16>
    %c0_52 = arith.constant 0 : index
    %c0_53 = arith.constant 0 : index
    %49 = vector.load %arg16[%c0_52, %c0_53] : memref<16x640xbf16, #tpu.memory_space<vmem>>, vector<16x128xbf16>
    tpu.vector_store %arg16[%c0_52, %c0_53], %48 {strides = array<i32>} : memref<16x640xbf16, #tpu.memory_space<vmem>>, vector<16x128xbf16>,
    %c0_54 = arith.constant 0 : index
    %c1_55 = arith.constant 1 : index
    %c0_56 = arith.constant 0 : index
    %50 = vector.load %arg15[%c0_54, %c1_55, %c0_56] : memref<2x12x128xbf16, #tpu.memory_space<vmem>>, vector<2x8x128xbf16>
    %51 = vector.shape_cast %50 : vector<2x8x128xbf16> to vector<16x128xbf16>
    %c0_57 = arith.constant 0 : index
    %c128 = arith.constant 128 : index
    %52 = vector.load %arg16[%c0_57, %c128] : memref<16x640xbf16, #tpu.memory_space<vmem>>, vector<16x128xbf16>
    tpu.vector_store %arg16[%c0_57, %c128], %51 {strides = array<i32>} : memref<16x640xbf16, #tpu.memory_space<vmem>>, vector<16x128xbf16>,
    %c0_58 = arith.constant 0 : index
    %c2_59 = arith.constant 2 : index
    %c0_60 = arith.constant 0 : index
    %53 = vector.load %arg15[%c0_58, %c2_59, %c0_60] : memref<2x12x128xbf16, #tpu.memory_space<vmem>>, vector<2x8x128xbf16>
    %54 = vector.shape_cast %53 : vector<2x8x128xbf16> to vector<16x128xbf16>
    %c0_61 = arith.constant 0 : index
    %c256_62 = arith.constant 256 : index
    %55 = vector.load %arg16[%c0_61, %c256_62] : memref<16x640xbf16, #tpu.memory_space<vmem>>, vector<16x128xbf16>
    tpu.vector_store %arg16[%c0_61, %c256_62], %54 {strides = array<i32>} : memref<16x640xbf16, #tpu.memory_space<vmem>>, vector<16x128xbf16>,
    %c0_63 = arith.constant 0 : index
    %c3_64 = arith.constant 3 : index
    %c0_65 = arith.constant 0 : index
    %56 = vector.load %arg15[%c0_63, %c3_64, %c0_65] : memref<2x12x128xbf16, #tpu.memory_space<vmem>>, vector<2x8x128xbf16>
    %57 = vector.shape_cast %56 : vector<2x8x128xbf16> to vector<16x128xbf16>
    %c0_66 = arith.constant 0 : index
    %c384 = arith.constant 384 : index
    %58 = vector.load %arg16[%c0_66, %c384] : memref<16x640xbf16, #tpu.memory_space<vmem>>, vector<16x128xbf16>
    tpu.vector_store %arg16[%c0_66, %c384], %57 {strides = array<i32>} : memref<16x640xbf16, #tpu.memory_space<vmem>>, vector<16x128xbf16>,
    %c0_67 = arith.constant 0 : index
    %c4_68 = arith.constant 4 : index
    %c0_69 = arith.constant 0 : index
    %59 = vector.load %arg15[%c0_67, %c4_68, %c0_69] : memref<2x12x128xbf16, #tpu.memory_space<vmem>>, vector<2x8x128xbf16>
    %60 = vector.shape_cast %59 : vector<2x8x128xbf16> to vector<16x128xbf16>
    %c0_70 = arith.constant 0 : index
    %c512_71 = arith.constant 512 : index
    %61 = vector.load %arg16[%c0_70, %c512_71] : memref<16x640xbf16, #tpu.memory_space<vmem>>, vector<16x128xbf16>
    tpu.vector_store %arg16[%c0_70, %c512_71], %60 {strides = array<i32>} : memref<16x640xbf16, #tpu.memory_space<vmem>>, vector<16x128xbf16>,
    %c0_72 = arith.constant 0 : index
    %c0_73 = arith.constant 0 : index
    %62 = vector.load %arg16[%c0_72, %c0_73] : memref<16x640xbf16, #tpu.memory_space<vmem>>, vector<16x640xbf16>
    %c0_74 = arith.constant 0 : index
    %c0_75 = arith.constant 0 : index
    %63 = vector.load %arg4[%c0_74, %c0_75] : memref<640x256xbf16, #tpu.memory_space<vmem>>, vector<640x256xbf16>
    %cst_76 = arith.constant dense<0.000000e+00> : vector<16x256xf32>
    %64 = tpu.matmul %62, %63, %cst_76 {dimension_numbers = #tpu.dot_dimension_numbers<[1], [0], [0], [1], [0, 0, 1, 1], [], []>} : vector<16x640xbf16>, vector<640x256xbf16>, vector<16x256xf32> -> vector<16x256xf32>
    %65 = vector.shape_cast %64 : vector<16x256xf32> to vector<2x8x256xf32>
    %cst_77 = arith.constant dense<0xFF800000> : vector<2x256xf32>
    %66 = vector.multi_reduction <maximumf>, %65, %cst_77 [1] : vector<2x8x256xf32> to vector<2x256xf32>
    %c32_i32 = arith.constant 32 : i32
    %67 = tpu.dynamic_rotate %66 by %c32_i32 dim 1 : vector<2x256xf32>, i32 -> vector<2x256xf32>
    %68 = arith.maximumf %66, %67 : vector<2x256xf32>
    %c64_i32_78 = arith.constant 64 : i32
    %69 = tpu.dynamic_rotate %68 by %c64_i32_78 dim 1 : vector<2x256xf32>, i32 -> vector<2x256xf32>
    %70 = arith.maximumf %68, %69 : vector<2x256xf32>
    %c128_i32_79 = arith.constant 128 : i32
    %71 = tpu.dynamic_rotate %70 by %c128_i32_79 dim 1 : vector<2x256xf32>, i32 -> vector<2x256xf32>
    %72 = arith.maximumf %70, %71 : vector<2x256xf32>
    %73 = vector.extract_strided_slice %72 {offsets = [0, 0], sizes = [2, 32], strides = [1, 1]} : vector<2x256xf32> to vector<2x32xf32>
    %c0_80 = arith.constant 0 : index
    %c0_81 = arith.constant 0 : index
    %74 = vector.load %arg5[%c0_80, %c0_81] : memref<1x32xf32, #tpu.memory_space<vmem>>, vector<1x32xf32>
    %75 = vector.broadcast %74 : vector<1x32xf32> to vector<2x32xf32>
    %76 = arith.addf %73, %75 : vector<2x32xf32>
    %c0_82 = arith.constant 0 : index
    %c0_83 = arith.constant 0 : index
    %77 = vector.load %arg6[%c0_82, %c0_83] : memref<32x16xf32, #tpu.memory_space<vmem>>, vector<32x16xf32>
    %cst_84 = arith.constant dense<0.000000e+00> : vector<2x16xf32>
    %78 = tpu.matmul %76, %77, %cst_84 {dimension_numbers = #tpu.dot_dimension_numbers<[1], [0], [0], [1], [0, 0, 1, 1], [], []>} : vector<2x32xf32>, vector<32x16xf32>, vector<2x16xf32> -> vector<2x16xf32>
    %c0_85 = arith.constant 0 : index
    %c0_86 = arith.constant 0 : index
    %79 = vector.load %arg7[%c0_85, %c0_86] : memref<1x16xf32, #tpu.memory_space<vmem>>, vector<1x16xf32>
    %80 = vector.broadcast %79 : vector<1x16xf32> to vector<2x16xf32>
    %81 = arith.addf %78, %80 : vector<2x16xf32>
    %cst_87 = arith.constant 0.000000e+00 : f32
    %82 = vector.broadcast %cst_87 : f32 to vector<2x16xf32>
    %83 = arith.maximumf %81, %82 : vector<2x16xf32>
    %c0_88 = arith.constant 0 : index
    %c0_89 = arith.constant 0 : index
    %84 = vector.load %arg8[%c0_88, %c0_89] : memref<16x8xf32, #tpu.memory_space<vmem>>, vector<16x8xf32>
    %cst_90 = arith.constant dense<0.000000e+00> : vector<2x8xf32>
    %85 = tpu.matmul %83, %84, %cst_90 {dimension_numbers = #tpu.dot_dimension_numbers<[1], [0], [0], [1], [0, 0, 1, 1], [], []>} : vector<2x16xf32>, vector<16x8xf32>, vector<2x8xf32> -> vector<2x8xf32>
    %c0_91 = arith.constant 0 : index
    %c0_92 = arith.constant 0 : index
    %86 = vector.load %arg9[%c0_91, %c0_92] : memref<1x8xf32, #tpu.memory_space<vmem>>, vector<1x8xf32>
    %87 = vector.broadcast %86 : vector<1x8xf32> to vector<2x8xf32>
    %88 = arith.addf %85, %87 : vector<2x8xf32>
    %cst_93 = arith.constant 0.000000e+00 : f32
    %89 = vector.broadcast %cst_93 : f32 to vector<2x8xf32>
    %90 = arith.maximumf %88, %89 : vector<2x8xf32>
    %c0_94 = arith.constant 0 : index
    %c0_95 = arith.constant 0 : index
    %91 = vector.load %arg10[%c0_94, %c0_95] : memref<8x5xf32, #tpu.memory_space<vmem>>, vector<8x5xf32>
    %cst_96 = arith.constant dense<0.000000e+00> : vector<2x5xf32>
    %92 = tpu.matmul %90, %91, %cst_96 {dimension_numbers = #tpu.dot_dimension_numbers<[1], [0], [0], [1], [0, 0, 1, 1], [], []>} : vector<2x8xf32>, vector<8x5xf32>, vector<2x5xf32> -> vector<2x5xf32>
    %c0_97 = arith.constant 0 : index
    %c0_98 = arith.constant 0 : index
    %93 = vector.load %arg11[%c0_97, %c0_98] : memref<1x5xf32, #tpu.memory_space<vmem>>, vector<1x5xf32>
    %94 = vector.broadcast %93 : vector<1x5xf32> to vector<2x5xf32>
    %95 = arith.addf %92, %94 : vector<2x5xf32>
    %96 = vector.shape_cast %95 : vector<2x5xf32> to vector<2x1x5xf32>
    %c0_99 = arith.constant 0 : index
    %c0_100 = arith.constant 0 : index
    %c0_101 = arith.constant 0 : index
    %97 = vector.load %arg12[%c0_99, %c0_100, %c0_101] : memref<2x1x5xf32, #tpu.memory_space<vmem>>, vector<2x1x5xf32>
    tpu.vector_store %arg12[%c0_99, %c0_100, %c0_101], %96 {strides = array<i32>} : memref<2x1x5xf32, #tpu.memory_space<vmem>>, vector<2x1x5xf32>,
    return
  }
  func.func @transform_0(%arg0: i32) -> (i32, i32, i32) {
    %c0_i32 = arith.constant 0 : i32
    %c0_i32_0 = arith.constant 0 : i32
    %c0_i32_1 = arith.constant 0 : i32
    return %arg0, %c0_i32, %c0_i32_0 : i32, i32, i32
  }
  func.func @transform_1(%arg0: i32) -> (i32, i32) {
    %c0_i32 = arith.constant 0 : i32
    %c0_i32_0 = arith.constant 0 : i32
    %c0_i32_1 = arith.constant 0 : i32
    return %c0_i32, %c0_i32_0 : i32, i32
  }
  func.func @transform_2(%arg0: i32) -> (i32, i32) {
    %c0_i32 = arith.constant 0 : i32
    %c0_i32_0 = arith.constant 0 : i32
    %c0_i32_1 = arith.constant 0 : i32
    return %c0_i32, %c0_i32_0 : i32, i32
  }
  func.func @transform_3(%arg0: i32) -> (i32, i32) {
    %c0_i32 = arith.constant 0 : i32
    %c0_i32_0 = arith.constant 0 : i32
    %c0_i32_1 = arith.constant 0 : i32
    return %c0_i32, %c0_i32_0 : i32, i32
  }
  func.func @transform_4(%arg0: i32) -> (i32, i32) {
    %c0_i32 = arith.constant 0 : i32
    %c0_i32_0 = arith.constant 0 : i32
    %c0_i32_1 = arith.constant 0 : i32
    return %c0_i32, %c0_i32_0 : i32, i32
  }
  func.func @transform_5(%arg0: i32) -> (i32, i32) {
    %c0_i32 = arith.constant 0 : i32
    %c0_i32_0 = arith.constant 0 : i32
    %c0_i32_1 = arith.constant 0 : i32
    return %c0_i32, %c0_i32_0 : i32, i32
  }
  func.func @transform_6(%arg0: i32) -> (i32, i32) {
    %c0_i32 = arith.constant 0 : i32
    %c0_i32_0 = arith.constant 0 : i32
    %c0_i32_1 = arith.constant 0 : i32
    return %c0_i32, %c0_i32_0 : i32, i32
  }
  func.func @transform_7(%arg0: i32) -> (i32, i32) {
    %c0_i32 = arith.constant 0 : i32
    %c0_i32_0 = arith.constant 0 : i32
    %c0_i32_1 = arith.constant 0 : i32
    return %c0_i32, %c0_i32_0 : i32, i32
  }
  func.func @transform_8(%arg0: i32) -> (i32, i32) {
    %c0_i32 = arith.constant 0 : i32
    %c0_i32_0 = arith.constant 0 : i32
    %c0_i32_1 = arith.constant 0 : i32
    return %c0_i32, %c0_i32_0 : i32, i32
  }
  func.func @transform_9(%arg0: i32) -> (i32, i32) {
    %c0_i32 = arith.constant 0 : i32
    %c0_i32_0 = arith.constant 0 : i32
    %c0_i32_1 = arith.constant 0 : i32
    return %c0_i32, %c0_i32_0 : i32, i32
  }
  func.func @transform_10(%arg0: i32) -> (i32, i32) {
    %c0_i32 = arith.constant 0 : i32
    %c0_i32_0 = arith.constant 0 : i32
    %c0_i32_1 = arith.constant 0 : i32
    return %c0_i32, %c0_i32_0 : i32, i32
  }
  func.func @transform_11(%arg0: i32) -> (i32, i32, i32) {
    %c0_i32 = arith.constant 0 : i32
    %c0_i32_0 = arith.constant 0 : i32
    %c0_i32_1 = arith.constant 0 : i32
    return %arg0, %c0_i32, %c0_i32_0 : i32, i32, i32
  }
}

</mosaic_0001>

<bundles_post_ra>
// kernel: tile.8
= control target key start
LH: loop header
LB: loop body
LE: loop exit
PB: predicated region body
PF: predicated region fallthrough
CT: control target
= control target key end

     0   :  { %s22_s0 = inlined_call_operand.vmem [shape: f32[8], index: 0, kind: input, shape index: {}]   ;;  %s23_s1 = inlined_call_operand.vmem [shape: f32[8,8], index: 1, kind: output, shape index: {}]  }
   0x1   :  { %v4_v0 = vld [vmem:[%s22_s0] ss:$0 sm:$0xff] }
   0x2   :  { %5 = vst [vmem:[%s23_s1] sm:$0xff] %v4_v0 }

// kernel: tile.9
= control target key start
LH: loop header
LB: loop body
LE: loop exit
PB: predicated region body
PF: predicated region fallthrough
CT: control target
= control target key end

     0   :  { %s67_s10 = smov 56   ;;  %s68_s11 = smov 40   ;;  %vm3_vm0 = vcmask 64512   ;;  %vm9_vm1 = vcmask 523712   ;;  %vm15_vm2 = vcmask 458112   ;;  %vm21_vm3 = vcmask 392512   ;;  %s111_s0 = inlined_call_operand.vmem [shape: f32[8,8], index: 0, kind: input, shape index: {}]   ;;  %s112_s1 = inlined_call_operand.vmem [shape: f32[1,64], index: 1, kind: output, shape index: {}]  }
   0x1   :  { %v53_v0 = vld [vmem:[%s111_s0 + $0x7] sm:$0x1]   ;;  %v55_v1 = vld [vmem:[%s111_s0 + $0x5] sm:$0x1]   ;;  %v54_v2 = vld [vmem:[%s111_s0 + $0x6] sm:$0x1]  }
   0x2   :  { %7 = vrot.lane.b32.xlu0 %v53_v0, %s67_s10  ;;  %19 = vrot.lane.b32.xlu1 %v55_v1, %s68_s11  ;;  %v56_v3 = vld [vmem:[%s111_s0 + $0x4] sm:$0x1]   ;;  %v2_v4 = vld [vmem:[%s111_s0] sm:$0x1]   ;;  %s69_s18 = smov 48   ;;  %s70_s19 = smov 32  }
   0x3   :  { %4 = vst.msk [vmem:[#allocation0] sm:$0x1] %vm3_vm0, %v2_v4   ;;  %v57_v5 = vld [vmem:[%s111_s0 + $0x3] sm:$0x1]   ;;  %v58_v6 = vld [vmem:[%s111_s0 + $0x2] sm:$0x1]  }
   0x4   :  { %s71_s24 = smov 24   ;;  %s72_s25 = smov 16   ;;  %v59_v7 = vld [vmem:[%s111_s0 + $0x1] sm:$0x1]   ;;  %vm27_vm4 = vcmask 326912   ;;  %vm33_vm5 = vcmask 261312  }
   0x5   :  { %s73_s0 = smov 8   ;;  %vm39_vm6 = vcmask 195712   ;;  %vm45_vm7 = vcmask 130112  }
   0x6   :  { %13 = vrot.lane.b32.xlu0 %v54_v2, %s69_s18  ;;  %25 = vrot.lane.b32.xlu1 %v56_v3, %s70_s19 }
   0xa   :  { %31 = vrot.lane.b32.xlu0 %v57_v5, %s71_s24  ;;  %37 = vrot.lane.b32.xlu1 %v58_v6, %s72_s25 }
   0xe   :  { %43 = vrot.lane.b32.xlu0 %v59_v7, %s73_s0 }
  0x74   :  { %v8_v8 = vpop.permute.xlu0 %7   ;;  %v20_v9 = vpop.permute.xlu1 %19  }
  0x75   :  { %10 = vst.msk [vmem:[#allocation0] sm:$0x1] %vm9_vm1, %v8_v8  }
  0x78   :  { %v14_v10 = vpop.permute.xlu0 %13   ;;  %v26_v11 = vpop.permute.xlu1 %25  }
  0x79   :  { %16 = vst.msk [vmem:[#allocation0] sm:$0x1] %vm15_vm2, %v14_v10  }
  0x7a   :  { %22 = vst.msk [vmem:[#allocation0] sm:$0x1] %vm21_vm3, %v20_v9  }
  0x7b   :  { %28 = vst.msk [vmem:[#allocation0] sm:$0x1] %vm27_vm4, %v26_v11  }
  0x7c   :  { %v32_v12 = vpop.permute.xlu0 %31   ;;  %v38_v13 = vpop.permute.xlu1 %37  }
  0x7d   :  { %34 = vst.msk [vmem:[#allocation0] sm:$0x1] %vm33_vm5, %v32_v12  }
  0x7e   :  { %40 = vst.msk [vmem:[#allocation0] sm:$0x1] %vm39_vm6, %v38_v13  }
  0x80   :  { %v44_v14 = vpop.permute.xlu0 %43  }
  0x81   :  { %46 = vst.msk [vmem:[#allocation0] sm:$0x1] %vm45_vm7, %v44_v14  }
  0x88   :  { %v50_v15 = vld [vmem:[#allocation0] sm:$0x1] }
  0x89   :  { %52 = vst [vmem:[%s112_s1] sm:$0x1] %v50_v15 }

// kernel: convnn_forward.1
= control target key start
LH: loop header
LB: loop body
LE: loop exit
PB: predicated region body
PF: predicated region fallthrough
CT: control target
= control target key end

     0   :  { %16 = vsyncpa [#allocation7], 0  ;;  %s11531_s0 = inlined_call_operand.vmem [shape: bf16[4,64,192], index: 0, kind: input, shape index: {}]   ;;  %s11532_s1 = inlined_call_operand.vmem [shape: bf16[1280,512], index: 1, kind: input, shape index: {}]   ;;  %s11533_s2 = inlined_call_operand.vmem [shape: f32[1,64], index: 2, kind: input, shape index: {}]   ;;  %s11534_s3 = inlined_call_operand.vmem [shape: bf16[640,256], index: 3, kind: input, shape index: {}]   ;;  %s11535_s4 = inlined_call_operand.vmem [shape: f32[1,32], index: 4, kind: input, shape index: {}]   ;;  %s11536_s5 = inlined_call_operand.vmem [shape: f32[32,16], index: 5, kind: input, shape index: {}]   ;;  %s11537_s6 = inlined_call_operand.vmem [shape: f32[1,16], index: 6, kind: input, shape index: {}]   ;;  %s11538_s7 = inlined_call_operand.vmem [shape: f32[16,8], index: 7, kind: input, shape index: {}]   ;;  %s11539_s8 = inlined_call_operand.vmem [shape: f32[1,8], index: 8, kind: input, shape index: {}]   ;;  %s11540_s9 = inlined_call_operand.vmem [shape: f32[8,5], index: 9, kind: input, shape index: {}]   ;;  %s11541_s10 = inlined_call_operand.vmem [shape: f32[1,5], index: 10, kind: input, shape index: {}]   ;;  %s11542_s11 = inlined_call_operand.hbm [shape: f32[4,1,5], index: 11, kind: output, shape index: {}]  }
   0x1   :  { %18 = vsyncpa [#allocation7 + $0x1], 0  ;;  %s8794_s17 = smov 0   ;;  %s8796_s18 = smov 0  }
   0x2   :  { %s8798_s19 = smov 0   ;;  %s8800_s20 = smov 0  }
   0x3 LB: > { %11592 = sst [smem:[#allocation9_spill]] %s8717_s19  ;;  %s8815_s21 = sadd.s32 4294967295, %s8721_s20   ;;  %s8721_s20 = sphi %s8800_s20, %s11699_s20   ;;  %s8717_s19 = sphi %s8798_s19, %s11701_s19   ;;  %s8713_s18 = sphi %s8796_s18, %s11703_s18   ;;  %s8709_s17 = sphi %s8794_s17, %s11702_s17  }
   0x4   : > { %s7145_s22 = sadd.s32 4294967294, %s8721_s20   ;;  %s8819_s23 = sadd.s32 1, %s8721_s20  }
   0x5   : > { %11593 = sst [smem:[#allocation10_spill]] %s8819_s23  ;;  %s267_s24 = sadd.s32 1, %s8717_s19 }
   0x6   : > { %s264_s25 = ssub.s32 %s8721_s20, %s8819_s23  ;;  %p277_p0 = scmp.ne.s32.totalorder %s8717_s19, %s8713_s18 }
   0x7   : > { %p265_p1 = scmp.eq.s32.totalorder %s264_s25, 0  ;;  %p278_p2 = scmp.eq.s32.totalorder %s8815_s21, 1 }
   0x8   : > { %p283_p3 = scmp.ne.s32.totalorder %s8713_s18, %s8709_s17  ;;  %p284_p4 = scmp.eq.s32.totalorder %s7145_s22, 1 }
   0x9   : > { %s8830_s26 = scalar_select %p265_p1, %s8717_s19, %s267_s24  }
   0xa   : > { %p8832_p5 = por %p278_p2, %p277_p0  ;;  %p8836_p6 = por %p284_p4, %p283_p3 }
   0xb   : > { %11594 = sst [smem:[#allocation11_spill]] %s8830_s26  ;;  %p7148_p7 = scmp.ge.s32.totalorder %s8721_s20, 1 }
   0xc   : > { %p342_p8 = scmp.lt.s32.totalorder %s8721_s20, 3 }
   0xe   : > { %p343_p9 = pnand %p7148_p7, %p342_p8 }
  0x10   : > { %346 = sbr.rel (%p343_p9) target bundleno = 2262 (0x8d6), region = 64 }
  0x17   : > { %s7150_s29 = sshll.u32 %s8815_s21, 1  ;;  %v8048_v0 = vld [vmem:[%s11532_s1 + $0x4] ss:$16 sps:$4 sm:$0xff]   ;;  %v8050_v1 = vld [vmem:[%s11532_s1] ss:$16 sps:$4 sm:$0xff]   ;;  %vm396_vm0 = vcmask 44033  }
  0x18   : > { %p8843_p10 = scmp.lt.s32.totalorder %s7150_s29, 3  ;;  %v8051_v2 = vld [vmem:[%s11532_s1 + $0xc] ss:$16 sps:$4 sm:$0xff]   ;;  %vm417_vm1 = vcmask 1044017   ;;  %v11546_v3 = vmov 0   ;;  %3633 = vmatprep.subr.bf16.mxu0 %v8048_v0  ;;  %vm470_vm2 = vcmask 1040384  }
  0x19   : > { %392 = vst [vmem:[#allocation2] sm:$0x11] %v11546_v3  ;;  %393 = vst [vmem:[#allocation2 + $0x48] sm:$0x11] %v11546_v3  ;;  %v8053_v4 = vld [vmem:[%s11532_s1 + $0x8] ss:$16 sps:$4 sm:$0xff]   ;;  %3634 = vmatpush1.bf16.msra.mxu0 %v8050_v1  ;;  %4198 = vmatprep.subr.bf16.mxu1 %v8051_v2 }
  0x1a   : > { %394 = vst [vmem:[#allocation2 + $0x40] sm:$0x22] %v11546_v3  ;;  %395 = vst [vmem:[#allocation2 + $0x88] sm:$0x22] %v11546_v3  ;;  %s11705_s29 = smov (!%p8843_p10, %s7150_s29), 3  ;;  %4199 = vmatpush1.bf16.msra.mxu1 %v8053_v4  ;;  %vm471_vm3 = vcmask 1044484  }
  0x1b   : > { %5810 = vst [vmem:[#allocation4] sm:$0xf] %v11546_v3  ;;  %5811 = vst [vmem:[#allocation4 + $0x4] sm:$0x3] %v11546_v3  ;;  %v8054_v5 = vld [vmem:[%s11532_s1 + $0x24] ss:$16 sps:$4 sm:$0xff]  }
  0x1c   : > { %5812 = vst [vmem:[#allocation4 + $0x8] sm:$0xf] %v11546_v3  ;;  %5813 = vst [vmem:[#allocation4 + $0xc] sm:$0x3] %v11546_v3  ;;  %v8056_v6 = vld [vmem:[%s11532_s1 + $0x20] ss:$16 sps:$4 sm:$0xff]   ;;  %3635 = vmatprep.subr.bf16.mxu0 %v8054_v5 }
  0x1d   : > { %397 = vst.msk [vmem:[#allocation2] sm:$0xe] %vm396_vm0, %v11546_v3  ;;  %408 = vst.msk [vmem:[#allocation2 + $0x48] sm:$0xe] %vm396_vm0, %v11546_v3  ;;  %s7675_s15 = sshll.u32 %s11705_s29, 6  ;;  %vm398_vm4 = vcmask 44032   ;;  %3636 = vmatpush1.bf16.msra.mxu0 %v8056_v6 }
  0x1e   : > { %418 = vst.msk [vmem:[#allocation2 + $0x4] sm:$0xe] %vm417_vm1, %v11546_v3  ;;  %429 = vst.msk [vmem:[#allocation2 + $0x4c] sm:$0xe] %vm417_vm1, %v11546_v3  ;;  %v8057_v7 = vld [vmem:[%s11532_s1 + $0x2c] ss:$16 sps:$4 sm:$0xff]   ;;  %s8892_s23 = scalar_lea.vmem %s11531_s0, %s7675_s15 }
  0x1f   : > { %v8059_v8 = vld [vmem:[%s11532_s1 + $0x28] ss:$16 sps:$4 sm:$0xff]   ;;  %v8060_v9 = vld [vmem:[%s11532_s1 + $0x44] ss:$16 sps:$4 sm:$0xff]   ;;  %4200 = vmatprep.subr.bf16.mxu1 %v8057_v7  ;;  %400 = vst.msk [vmem:[#allocation2 + $0x10] sm:$0xf] %vm398_vm4, %v11546_v3  ;;  %vm8961_vm6 = vmor %vm470_vm2, %vm471_vm3 }
  0x20   : > { %v438_v10 = vld [vmem:[%s8892_s23] sm:$0xff]  ;;  %v439_v11 = vld [vmem:[%s8892_s23 + $0x8] sm:$0xff]  ;;  %v440_v12 = vld [vmem:[%s8892_s23 + $0x10] sm:$0xff]  ;;  %vm419_vm5 = vcmask 1044016   ;;  %399 = vst.msk [vmem:[#allocation2 + $0x8] sm:$0xf] %vm398_vm4, %v11546_v3  ;;  %4201 = vmatpush1.bf16.msra.mxu1 %v8059_v8  ;;  %3637 = vmatprep.subr.bf16.mxu0 %v8060_v9 }
  0x21   : > { %401 = vst.msk [vmem:[#allocation2 + $0x18] sm:$0xf] %vm398_vm4, %v11546_v3  ;;  %402 = vst.msk [vmem:[#allocation2 + $0x20] sm:$0xf] %vm398_vm4, %v11546_v3  ;;  %v473_v13 = vrot.slane %v438_v10, 7  ;;  %v475_v14 = vrot.slane %v439_v11, 7 }
  0x22   : > { %403 = vst.msk [vmem:[#allocation2 + $0x28] sm:$0xf] %vm398_vm4, %v11546_v3  ;;  %404 = vst.msk [vmem:[#allocation2 + $0x30] sm:$0xf] %vm398_vm4, %v11546_v3  ;;  %v478_v15 = vrot.slane %v440_v12, 7  ;;  %v441_v16 = vld [vmem:[%s8892_s23 + $0x18] sm:$0xff] }
  0x23   : > { %405 = vst.msk [vmem:[#allocation2 + $0x38] sm:$0xf] %vm398_vm4, %v11546_v3  ;;  %409 = vst.msk [vmem:[#allocation2 + $0x50] sm:$0xf] %vm398_vm4, %v11546_v3  ;;  %v442_v17 = vld [vmem:[%s8892_s23 + $0x20] sm:$0xff]  ;;  %v443_v18 = vld [vmem:[%s8892_s23 + $0x28] sm:$0xff] }
  0x24   : > { %410 = vst.msk [vmem:[#allocation2 + $0x58] sm:$0xf] %vm398_vm4, %v11546_v3  ;;  %411 = vst.msk [vmem:[#allocation2 + $0x60] sm:$0xf] %vm398_vm4, %v11546_v3  ;;  %v481_v20 = vrot.slane %v441_v16, 7  ;;  %s8724_s19 = smov 6  }
  0x25   : > { %412 = vst.msk [vmem:[#allocation2 + $0x68] sm:$0xf] %vm398_vm4, %v11546_v3  ;;  %413 = vst.msk [vmem:[#allocation2 + $0x70] sm:$0xf] %vm398_vm4, %v11546_v3  ;;  %519 = vrot.lane.b32.xlu0 %v473_v13, %s8724_s19  ;;  %v474_v21 = vrot.slane %v473_v13, 4  ;;  %v477_v22 = vrot.slane %v475_v14, 4 }
  0x26   : > { %414 = vst.msk [vmem:[#allocation2 + $0x78] sm:$0xf] %vm398_vm4, %v11546_v3  ;;  %415 = vst.msk [vmem:[#allocation2 + $0x80] sm:$0xf] %vm398_vm4, %v11546_v3  ;;  %v480_v23 = vrot.slane %v478_v15, 4  ;;  %v483_v24 = vrot.slane %v481_v20, 4 }
  0x27   : > { %421 = vst.msk [vmem:[#allocation2 + $0x14] sm:$0xf] %vm419_vm5, %v11546_v3  ;;  %420 = vst.msk [vmem:[#allocation2 + $0xc] sm:$0xf] %vm419_vm5, %v11546_v3  ;;  %v484_v25 = vrot.slane %v442_v17, 7  ;;  %v487_v26 = vrot.slane %v443_v18, 7  ;;  %v479_v27 = vsel %vm8961_vm6, %v477_v22, %v478_v15  ;;  %v476_v28 = vsel %vm8961_vm6, %v474_v21, %v475_v14 }
  0x28   : > { %422 = vst.msk [vmem:[#allocation2 + $0x1c] sm:$0xf] %vm419_vm5, %v11546_v3  ;;  %423 = vst.msk [vmem:[#allocation2 + $0x24] sm:$0xf] %vm419_vm5, %v11546_v3  ;;  %v444_v29 = vld [vmem:[%s8892_s23 + $0x30] sm:$0xff]  ;;  %523 = vrot.lane.b32.xlu1 %v479_v27, %s8724_s19  ;;  %v482_v31 = vsel %vm8961_vm6, %v480_v23, %v481_v20  ;;  %v447_v33 = vld [vmem:[%s8892_s23 + $0x48] sm:$0xff] }
  0x29   : > { %424 = vst.msk [vmem:[#allocation2 + $0x2c] sm:$0xf] %vm419_vm5, %v11546_v3  ;;  %425 = vst.msk [vmem:[#allocation2 + $0x34] sm:$0xf] %vm419_vm5, %v11546_v3  ;;  %v8062_v30 = vld [vmem:[%s11532_s1 + $0x40] ss:$16 sps:$4 sm:$0xff]   ;;  %521 = vrot.lane.b32.xlu0 %v476_v28, %s8724_s19  ;;  %v485_v35 = vsel %vm8961_vm6, %v483_v24, %v484_v25 }
  0x2a   : > { %426 = vst.msk [vmem:[#allocation2 + $0x3c] sm:$0xf] %vm419_vm5, %v11546_v3  ;;  %430 = vst.msk [vmem:[#allocation2 + $0x54] sm:$0xf] %vm419_vm5, %v11546_v3  ;;  %v486_v32 = vrot.slane %v484_v25, 4  ;;  %v489_v36 = vrot.slane %v487_v26, 4  ;;  %3638 = vmatpush1.bf16.msra.mxu0 %v8062_v30 }
  0x2b   : > { %431 = vst.msk [vmem:[#allocation2 + $0x5c] sm:$0xf] %vm419_vm5, %v11546_v3  ;;  %432 = vst.msk [vmem:[#allocation2 + $0x64] sm:$0xf] %vm419_vm5, %v11546_v3  ;;  %v8063_v34 = vld [vmem:[%s11532_s1 + $0x4c] ss:$16 sps:$4 sm:$0xff]  }
  0x2c   : > { %433 = vst.msk [vmem:[#allocation2 + $0x6c] sm:$0xf] %vm419_vm5, %v11546_v3  ;;  %434 = vst.msk [vmem:[#allocation2 + $0x74] sm:$0xf] %vm419_vm5, %v11546_v3  ;;  %v490_v37 = vrot.slane %v444_v29, 7  ;;  %v446_v38 = vld [vmem:[%s8892_s23 + $0x40] sm:$0xff]  ;;  %4202 = vmatprep.subr.bf16.mxu1 %v8063_v34  ;;  %525 = vrot.lane.b32.xlu1 %v482_v31, %s8724_s19  ;;  %v488_v44 = vsel %vm8961_vm6, %v486_v32, %v487_v26 }
  0x2d   : > { %435 = vst.msk [vmem:[#allocation2 + $0x7c] sm:$0xf] %vm419_vm5, %v11546_v3  ;;  %436 = vst.msk [vmem:[#allocation2 + $0x84] sm:$0xf] %vm419_vm5, %v11546_v3  ;;  %v8986_v39 = vld [vmem:[%s8892_s23 + $0x38] sm:$0xff]  ;;  %v498_v42 = vrot.slane %v447_v33, 7  ;;  %527 = vrot.lane.b32.xlu0 %v485_v35, %s8724_s19 }
  0x2e   : > { %v8065_v40 = vld [vmem:[%s11532_s1 + $0x48] ss:$16 sps:$4 sm:$0xff]   ;;  %v8066_v41 = vld [vmem:[%s11532_s1 + $0x64] ss:$16 sps:$4 sm:$0xff]   ;;  %v8068_v43 = vld [vmem:[%s11532_s1 + $0x60] ss:$16 sps:$4 sm:$0xff]   ;;  %v491_v50 = vsel %vm8961_vm6, %v489_v36, %v490_v37 }
  0x2f   : > { %4203 = vmatpush1.bf16.msra.mxu1 %v8065_v40  ;;  %v448_v45 = vld [vmem:[%s8892_s23 + $0x50] sm:$0xff]  ;;  %v449_v46 = vld [vmem:[%s8892_s23 + $0x58] sm:$0xff]  ;;  %v492_v47 = vrot.slane %v490_v37, 4  ;;  %v493_v48 = vrot.slane %v8986_v39, 7  ;;  %3639 = vmatprep.subr.bf16.mxu0 %v8066_v41  ;;  %v496_v51 = vrot.slane %v446_v38, 7  ;;  %v450_v56 = vld [vmem:[%s8892_s23 + $0x60] sm:$0xff] }
  0x30   : > { %v8069_v49 = vld [vmem:[%s11532_s1 + $0x6c] ss:$16 sps:$4 sm:$0xff]   ;;  %3640 = vmatpush1.bf16.msra.mxu0 %v8068_v43  ;;  %v8071_v52 = vld [vmem:[%s11532_s1 + $0x68] ss:$16 sps:$4 sm:$0xff]   ;;  %v8072_v53 = vld [vmem:[%s11532_s1 + $0x84] ss:$16 sps:$4 sm:$0xff]   ;;  %529 = vrot.lane.b32.xlu1 %v488_v44, %s8724_s19 }
  0x31   : > { %4204 = vmatprep.subr.bf16.mxu1 %v8069_v49  ;;  %v8074_v54 = vld [vmem:[%s11532_s1 + $0x80] ss:$16 sps:$4 sm:$0xff]   ;;  %v497_v55 = vrot.slane %v496_v51, 4  ;;  %v8075_v57 = vld [vmem:[%s11532_s1 + $0x8c] ss:$16 sps:$4 sm:$0xff]   ;;  %531 = vrot.lane.b32.xlu0 %v491_v50, %s8724_s19  ;;  %v500_v59 = vrot.slane %v498_v42, 4  ;;  %v494_v60 = vsel %vm8961_vm6, %v492_v47, %v493_v48 }
  0x32   : > { %v8077_v58 = vld [vmem:[%s11532_s1 + $0x88] ss:$16 sps:$4 sm:$0xff]   ;;  %3641 = vmatprep.subr.bf16.mxu0 %v8072_v53  ;;  %v8078_v61 = vld [vmem:[%s11532_s1 + $0xa4] ss:$16 sps:$4 sm:$0xff]   ;;  %v8080_v62 = vld [vmem:[%s11532_s1 + $0xa0] ss:$16 sps:$4 sm:$0xff]  }
  0x33   : > { %4205 = vmatpush1.bf16.msra.mxu1 %v8071_v52  ;;  %v501_v63 = vrot.slane %v448_v45, 7  ;;  %v504_v0 = vrot.slane %v449_v46, 7  ;;  %v8081_v1 = vld [vmem:[%s11532_s1 + $0xac] ss:$16 sps:$4 sm:$0xff]   ;;  %v8083_v4 = vld [vmem:[%s11532_s1 + $0xa8] ss:$16 sps:$4 sm:$0xff]   ;;  %v499_v8 = vsel %vm8961_vm6, %v497_v55, %v498_v42 }
  0x34   : > { %3642 = vmatpush1.bf16.msra.mxu0 %v8074_v54  ;;  %4206 = vmatprep.subr.bf16.mxu1 %v8075_v57  ;;  %v451_v2 = vld [vmem:[%s8892_s23 + $0x68] sm:$0xff]  ;;  %v8084_v5 = vld [vmem:[%s11532_s1 + $0xc4] ss:$16 sps:$4 sm:$0xff]   ;;  %v507_v6 = vrot.slane %v450_v56, 7  ;;  %v8086_v14 = vld [vmem:[%s11532_s1 + $0xc0] ss:$16 sps:$4 sm:$0xff]  }
  0x35   : > { %3643 = vmatprep.subr.bf16.mxu0 %v8078_v61  ;;  %533 = vrot.lane.b32.xlu1 %v494_v60, %s8724_s19  ;;  %v452_v7 = vld [vmem:[%s8892_s23 + $0x70] sm:$0xff]  ;;  %v503_v9 = vrot.slane %v501_v63, 4  ;;  %v8087_v10 = vld [vmem:[%s11532_s1 + $0xcc] ss:$16 sps:$4 sm:$0xff]   ;;  %v502_v11 = vsel %vm8961_vm6, %v500_v59, %v501_v63  ;;  %v506_v12 = vrot.slane %v504_v0, 4  ;;  %v510_v13 = vrot.slane %v451_v2, 7 }
  0x36   : > { %537 = vrot.lane.b32.xlu0 %v496_v51, %s8724_s19  ;;  %v8090_v15 = vld [vmem:[%s11532_s1 + $0xe4] ss:$16 sps:$4 sm:$0xff]   ;;  %vm406_vm7 = vcmask 40960   ;;  %vm427_vm8 = vcmask 1040944   ;;  %v8089_v16 = vld [vmem:[%s11532_s1 + $0xc8] ss:$16 sps:$4 sm:$0xff]  }
  0x37   : > { %4207 = vmatpush1.bf16.msra.mxu1 %v8077_v58  ;;  %407 = vst.msk [vmem:[#allocation2 + $0x40] sm:$0x1] %vm406_vm7, %v11546_v3  ;;  %416 = vst.msk [vmem:[#allocation2 + $0x88] sm:$0x1] %vm406_vm7, %v11546_v3  ;;  %v505_v17 = vsel %vm8961_vm6, %v503_v9, %v504_v0  ;;  %v509_v18 = vrot.slane %v507_v6, 4  ;;  %v453_v20 = vld [vmem:[%s8892_s23 + $0x78] sm:$0xff]  ;;  %v508_v22 = vsel %vm8961_vm6, %v506_v12, %v507_v6 }
  0x38   : > { %4208 = vmatprep.subr.bf16.mxu1 %v8081_v1  ;;  %3644 = vmatpush1.bf16.msra.mxu0 %v8080_v62  ;;  %428 = vst.msk [vmem:[#allocation2 + $0x44] sm:$0x1] %vm427_vm8, %v11546_v3  ;;  %437 = vst.msk [vmem:[#allocation2 + $0x8c] sm:$0x1] %vm427_vm8, %v11546_v3  ;;  %v8093_v21 = vld [vmem:[%s11532_s1 + $0xec] ss:$16 sps:$4 sm:$0xff]  }
  0x39   : > { %3645 = vmatprep.subr.bf16.mxu0 %v8084_v5  ;;  %539 = vrot.lane.b32.xlu1 %v499_v8, %s8724_s19  ;;  %v512_v23 = vrot.slane %v510_v13, 4  ;;  %v513_v24 = vrot.slane %v452_v7, 7  ;;  %v8092_v25 = vld [vmem:[%s11532_s1 + $0xe0] ss:$16 sps:$4 sm:$0xff]   ;;  %v8096_v26 = vld [vmem:[%s11532_s1 + $0x104] ss:$16 sps:$4 sm:$0xff]   ;;  %v511_v28 = vsel %vm8961_vm6, %v509_v18, %v510_v13 }
  0x3a   : > { %541 = vrot.lane.b32.xlu0 %v502_v11, %s8724_s19  ;;  %v8095_v27 = vld [vmem:[%s11532_s1 + $0xe8] ss:$16 sps:$4 sm:$0xff]   ;;  %v516_v30 = vrot.slane %v453_v20, 7  ;;  %v8099_v31 = vld [vmem:[%s11532_s1 + $0x10c] ss:$16 sps:$4 sm:$0xff]   ;;  %v495_v36 = vrot.slane %v493_v48, 4 }
  0x3b   : > { %4209 = vmatpush1.bf16.msra.mxu1 %v8083_v4  ;;  %v515_v29 = vrot.slane %v513_v24, 4  ;;  %v514_v32 = vsel %vm8961_vm6, %v512_v23, %v513_v24  ;;  %v8098_v33 = vld [vmem:[%s11532_s1 + $0x100] ss:$16 sps:$4 sm:$0xff]   ;;  %v8102_v34 = vld [vmem:[%s11532_s1 + $0x124] ss:$16 sps:$4 sm:$0xff]   ;;  %v1762_v50 = vld [vmem:[%s11532_s1 + $0x188] sm:$0xff] }
  0x3c   : > { %4210 = vmatprep.subr.bf16.mxu1 %v8087_v10  ;;  %3646 = vmatpush1.bf16.msra.mxu0 %v8086_v14  ;;  %v8101_v35 = vld [vmem:[%s11532_s1 + $0x108] ss:$16 sps:$4 sm:$0xff]   ;;  %v8105_v38 = vld [vmem:[%s11532_s1 + $0x12c] ss:$16 sps:$4 sm:$0xff]   ;;  %v8104_v40 = vld [vmem:[%s11532_s1 + $0x120] ss:$16 sps:$4 sm:$0xff]  }
  0x3d   : > { %3647 = vmatprep.subr.bf16.mxu0 %v8090_v15  ;;  %543 = vrot.lane.b32.xlu1 %v505_v17, %s8724_s19  ;;  %v517_v37 = vsel %vm8961_vm6, %v515_v29, %v516_v30  ;;  %v8108_v41 = vld [vmem:[%s11532_s1 + $0x144] ss:$16 sps:$4 sm:$0xff]   ;;  %v518_v39 = vrot.slane %v516_v30, 4  ;;  %v8107_v19 = vld [vmem:[%s11532_s1 + $0x128] ss:$16 sps:$4 sm:$0xff]   ;;  %vm610_vm9 = vcmask 1043505  }
  0x3e   : > { %545 = vrot.lane.b32.xlu0 %v508_v22, %s8724_s19  ;;  %v8111_v42 = vld [vmem:[%s11532_s1 + $0x14c] ss:$16 sps:$4 sm:$0xff]   ;;  %v8110_v43 = vld [vmem:[%s11532_s1 + $0x140] ss:$16 sps:$4 sm:$0xff]   ;;  %v8114_v44 = vld [vmem:[%s11532_s1 + $0x164] ss:$16 sps:$4 sm:$0xff]  }
  0x3f   : > { %4211 = vmatpush1.bf16.msra.mxu1 %v8089_v16  ;;  %v8113_v45 = vld [vmem:[%s11532_s1 + $0x148] ss:$16 sps:$4 sm:$0xff]   ;;  %v8117_v46 = vld [vmem:[%s11532_s1 + $0x16c] ss:$16 sps:$4 sm:$0xff]   ;;  %v8116_v47 = vld [vmem:[%s11532_s1 + $0x160] ss:$16 sps:$4 sm:$0xff]  }
  0x40   : > { %4212 = vmatprep.subr.bf16.mxu1 %v8093_v21  ;;  %3648 = vmatpush1.bf16.msra.mxu0 %v8092_v25  ;;  %v8119_v48 = vld [vmem:[%s11532_s1 + $0x168] ss:$16 sps:$4 sm:$0xff]   ;;  %v8120_v49 = vld [vmem:[%s11532_s1 + $0x184] ss:$16 sps:$4 sm:$0xff]   ;;  %v8123_v52 = vld [vmem:[%s11532_s1 + $0x18c] ss:$16 sps:$4 sm:$0xff]  }
  0x41   : > { %3649 = vmatprep.subr.bf16.mxu0 %v8096_v26  ;;  %547 = vrot.lane.b32.xlu1 %v511_v28, %s8724_s19  ;;  %v1764_v51 = vld [vmem:[%s11532_s1 + $0x198] sm:$0xff]  ;;  %v8122_v53 = vld [vmem:[%s11532_s1 + $0x180] ss:$16 sps:$4 sm:$0xff]   ;;  %v8125_v54 = vld [vmem:[%s11532_s1 + $0x1a4] ss:$16 sps:$4 sm:$0xff]   ;;  %vm611_vm10 = vcmask 572421  }
  0x42   : > { %549 = vrot.lane.b32.xlu0 %v514_v32, %s8724_s19  ;;  %v7287_v55 = vcombine.low %v1762_v50, %v1764_v51  ;;  %v1766_v56 = vld [vmem:[%s11532_s1 + $0x1a8] sm:$0xff]  ;;  %v1768_v57 = vld [vmem:[%s11532_s1 + $0x1b8] sm:$0xff]  ;;  %v8127_v59 = vld [vmem:[%s11532_s1 + $0x1a0] ss:$16 sps:$4 sm:$0xff]   ;;  %vm573_vm11 = vcmask 48128   ;;  %vm614_vm13 = vcmask 1043504  }
  0x43   : > { %4213 = vmatpush1.bf16.msra.mxu1 %v8095_v27  ;;  %v8128_v58 = vld [vmem:[%s11532_s1 + $0x1ac] ss:$16 sps:$4 sm:$0xff]   ;;  %v8130_v60 = vld [vmem:[%s11532_s1 + $0x1c4] ss:$16 sps:$4 sm:$0xff]   ;;  %v7291_v61 = vcombine.low %v1766_v56, %v1768_v57  ;;  %v8132_v63 = vld [vmem:[%s11532_s1 + $0x1c0] ss:$16 sps:$4 sm:$0xff]  }
  0x44   : > { %4214 = vmatprep.subr.bf16.mxu1 %v8099_v31  ;;  %3650 = vmatpush1.bf16.msra.mxu0 %v8098_v33  ;;  %v8133_v62 = vld [vmem:[%s11532_s1 + $0x1cc] ss:$16 sps:$4 sm:$0xff]   ;;  %v1773_v0 = vld [vmem:[%s11532_s1 + $0x1e0] sm:$0xff]  ;;  %v1775_v1 = vld [vmem:[%s11532_s1 + $0x1f0] sm:$0xff]  ;;  %vm615_vm14 = vcmask 572420   ;;  %vm624_vm0 = vcmask 1040432  }
  0x45   : > { %3651 = vmatprep.subr.bf16.mxu0 %v8102_v34  ;;  %551 = vrot.lane.b32.xlu1 %v517_v37, %s8724_s19  ;;  %v8136_v2 = vld [vmem:[%s11532_s1 + $0x1e4] ss:$16 sps:$4 sm:$0xff]   ;;  %v8135_v4 = vld [vmem:[%s11532_s1 + $0x1c8] ss:$16 sps:$4 sm:$0xff]   ;;  %v8138_v5 = vld [vmem:[%s11532_s1 + $0x1ec] ss:$16 sps:$4 sm:$0xff]   ;;  %v7297_v6 = vcombine.low %v1773_v0, %v1775_v1 }
  0x46   : > { %535 = vrot.lane.b32.xlu0 %v495_v36, %s8724_s19  ;;  %v8145_v7 = vld [vmem:[%s11532_s1 + $0x204] ss:$16 sps:$4 sm:$0xff]   ;;  %v8140_v8 = vld [vmem:[%s11532_s1 + $0x1e8] ss:$16 sps:$4 sm:$0xff]   ;;  %v8148_v9 = vld [vmem:[%s11532_s1 + $0x20c] ss:$16 sps:$4 sm:$0xff]  }
  0x47   : > { %4215 = vmatpush1.bf16.msra.mxu1 %v8101_v35  ;;  %vm9212_vm12 = vmor %vm611_vm10, %vm610_vm9  ;;  %v8143_v33 = vld [vmem:[%s11532_s1 + $0x200] ss:$16 sps:$4 sm:$0xff]   ;;  %v8158_v56 = vld [vmem:[%s11532_s1 + $0x244] ss:$16 sps:$4 sm:$0xff]   ;;  %vm625_vm1 = vcmask 569348   ;;  %vm1054_vm7 = vcmask 1042432  }
  0x48   : > { %4216 = vmatprep.subr.bf16.mxu1 %v8105_v38  ;;  %3652 = vmatpush1.bf16.msra.mxu0 %v8104_v40  ;;  %vm9219_vm15 = vmor %vm615_vm14, %vm614_vm13  ;;  %v8150_v50 = vld [vmem:[%s11532_s1 + $0x220] ss:$16 sps:$4 sm:$0xff]   ;;  %v8161_v57 = vld [vmem:[%s11532_s1 + $0x24c] ss:$16 sps:$4 sm:$0xff]   ;;  %vm767_vm4 = vsmask.f32 3328 }
  0x49   : > { %3653 = vmatprep.subr.bf16.mxu0 %v8108_v41  ;;  %553 = vrot.lane.b32.xlu1 %v518_v39, %s8724_s19  ;;  %v8146_v39 = vld [vmem:[%s11532_s1 + $0x208] ss:$16 sps:$4 sm:$0xff]   ;;  %v8164_v0 = vld [vmem:[%s11532_s1 + $0x264] ss:$16 sps:$4 sm:$0xff]   ;;  %v8162_v11 = vld [vmem:[%s11532_s1 + $0x260] ss:$16 sps:$4 sm:$0xff]  }
  0x4a   : > { %vm9331_vm2 = vmor %vm625_vm1, %vm624_vm0  ;;  %v8188_v15 = vld [vmem:[%s11532_s1 + $0x2cc] ss:$16 sps:$4 sm:$0xff]   ;;  %vm768_vm5 = vsmask.f32 7440  ;;  %vm1055_vm8 = vcmask 1046532   ;;  %vm1500_vm13 = vcmask 1041408  }
  0x4b   : > { %4217 = vmatpush1.bf16.msra.mxu1 %v8107_v19  ;;  %vm9521_vm6 = vmor %vm767_vm4, %vm768_vm5  ;;  %vm1205_vm10 = vsmask.f32 2304  ;;  %vm1501_vm14 = vcmask 1045508   ;;  %vm5211_vm0 = vcmask 1041409   ;;  %vm5213_vm1 = vcmask 1042434   ;;  %s8725_s12 = smov 64  }
  0x4c   : > { %4218 = vmatprep.subr.bf16.mxu1 %v8111_v42  ;;  %3654 = vmatpush1.bf16.msra.mxu0 %v8110_v43  ;;  %vm9779_vm9 = vmor %vm1054_vm7, %vm1055_vm8  ;;  %vm5219_vm4 = vcmask 1045509   ;;  %vm5221_vm5 = vcmask 1046534   ;;  %vm5223_vm7 = vcmask 1047559   ;;  %s8726_s23 = smov 16   ;;  %s8727_s22 = smov 32  }
  0x4d   : > { %3655 = vmatprep.subr.bf16.mxu0 %v8114_v44  ;;  %s7692_s24 = sshll.u32 %s8815_s21, 5  ;;  %s8732_s14 = smov [#allocation6]  }
  0x4e   : > { %s11484_s26 = scalar_lea.hbm %s11542_s11, %s7692_s24 }
  0x4f   : > { %4219 = vmatpush1.bf16.msra.mxu1 %v8113_v45  ;;  %v8152_v45 = vld [vmem:[%s11532_s1 + $0x224] ss:$16 sps:$4 sm:$0xff]  }
  0x50   : > { %4220 = vmatprep.subr.bf16.mxu1 %v8117_v46  ;;  %3656 = vmatpush1.bf16.msra.mxu0 %v8116_v47  ;;  %v8155_v46 = vld [vmem:[%s11532_s1 + $0x22c] ss:$16 sps:$4 sm:$0xff]  }
  0x51   : > { %3657 = vmatprep.subr.bf16.mxu0 %v8120_v49 }
  0x53   : > { %4221 = vmatpush1.bf16.msra.mxu1 %v8119_v48 }
  0x54   : > { %4222 = vmatprep.subr.bf16.mxu1 %v8123_v52  ;;  %3658 = vmatpush1.bf16.msra.mxu0 %v8122_v53  ;;  %v8153_v53 = vld [vmem:[%s11532_s1 + $0x228] ss:$16 sps:$4 sm:$0xff]  }
  0x55   : > { %3659 = vmatprep.subr.bf16.mxu0 %v8125_v54 }
  0x57   : > { %4223 = vmatpush1.bf16.msra.mxu1 %v7287_v55 }
  0x58   : > { %4224 = vmatprep.subr.bf16.mxu1 %v8128_v58  ;;  %3660 = vmatpush1.bf16.msra.mxu0 %v8127_v59 }
  0x59   : > { %3661 = vmatprep.subr.bf16.mxu0 %v8130_v60  ;;  %v8156_v60 = vld [vmem:[%s11532_s1 + $0x240] ss:$16 sps:$4 sm:$0xff]  }
  0x5b   : > { %4225 = vmatpush1.bf16.msra.mxu1 %v7291_v61 }
  0x5c   : > { %4226 = vmatprep.subr.bf16.mxu1 %v8133_v62  ;;  %3662 = vmatpush1.bf16.msra.mxu0 %v8132_v63  ;;  %v8159_v63 = vld [vmem:[%s11532_s1 + $0x248] ss:$16 sps:$4 sm:$0xff]  }
  0x5d   : > { %3663 = vmatprep.subr.bf16.mxu0 %v8136_v2 }
  0x5f   : > { %4227 = vmatpush1.bf16.msra.mxu1 %v8135_v4 }
  0x60   : > { %4228 = vmatprep.subr.bf16.mxu1 %v8138_v5  ;;  %3664 = vmatpush1.bf16.msra.mxu0 %v7297_v6  ;;  %v8167_v5 = vld [vmem:[%s11532_s1 + $0x26c] ss:$16 sps:$4 sm:$0xff]  }
  0x61   : > { %3746 = vmatprep.subr.bf16.mxu0 %v8145_v7 }
  0x63   : > { %4229 = vmatpush1.bf16.msra.mxu1 %v8140_v8 }
  0x64   : > { %4311 = vmatprep.subr.bf16.mxu1 %v8148_v9 }
  0x97   : > { %v520_v10 = vpop.permute.xlu0 %519 }
  0x98   : > { %v555_v12 = vrot.slane %v520_v10, 4 }
  0x9a   : > { %v574_v13 = vsel %vm573_vm11, %v555_v12, %v520_v10  ;;  %v524_v14 = vpop.permute.xlu1 %523  ;;  %v8165_v12 = vld [vmem:[%s11532_s1 + $0x268] ss:$16 sps:$4 sm:$0xff]  }
  0x9b   : > { %613 = vst.msk [vmem:[#allocation2] sm:$0xee] %vm9212_vm12, %v574_v13  ;;  %v557_v16 = vrot.slane %v524_v14, 4  ;;  %v522_v17 = vpop.permute.xlu0 %521 }
  0x9c   : > { %v556_v18 = vrot.slane %v522_v17, 4 }
  0x9d   : > { %v576_v20 = vsel %vm573_vm11, %v557_v16, %v524_v14 }
  0x9e   : > { %618 = vst.msk [vmem:[#allocation2 + $0x10] sm:$0xff] %vm9219_vm15, %v576_v20  ;;  %v575_v21 = vsel %vm573_vm11, %v556_v18, %v522_v17  ;;  %v526_v22 = vpop.permute.xlu1 %525  ;;  %v8171_v18 = vld [vmem:[%s11532_s1 + $0x284] ss:$16 sps:$4 sm:$0xff]   ;;  %v8174_v20 = vld [vmem:[%s11532_s1 + $0x28c] ss:$16 sps:$4 sm:$0xff]  }
  0x9f   : > { %617 = vst.msk [vmem:[#allocation2 + $0x8] sm:$0xff] %vm9219_vm15, %v575_v21  ;;  %v558_v23 = vrot.slane %v526_v22, 4  ;;  %v528_v24 = vpop.permute.xlu0 %527 }
  0xa0   : > { %v559_v25 = vrot.slane %v528_v24, 4 }
  0xa1   : > { %v577_v26 = vsel %vm573_vm11, %v558_v23, %v526_v22 }
  0xa2   : > { %619 = vst.msk [vmem:[#allocation2 + $0x18] sm:$0xff] %vm9219_vm15, %v577_v26  ;;  %v578_v27 = vsel %vm573_vm11, %v559_v25, %v528_v24  ;;  %v530_v28 = vpop.permute.xlu1 %529  ;;  %v9242_v35 = vld [vmem:[#allocation2] sm:$0xff] }
  0xa3   : > { %620 = vst.msk [vmem:[#allocation2 + $0x20] sm:$0xff] %vm9219_vm15, %v578_v27  ;;  %v532_v29 = vpop.permute.xlu0 %531  ;;  %v560_v30 = vrot.slane %v530_v28, 4  ;;  %v8169_v27 = vld [vmem:[%s11532_s1 + $0x280] ss:$16 sps:$4 sm:$0xff]  }
  0xa4   : > { %v561_v31 = vrot.slane %v532_v29, 4 }
  0xa5   : > { %v579_v32 = vsel %vm573_vm11, %v560_v30, %v530_v28  ;;  %v9255_v19 = vld [vmem:[#allocation2 + $0x10] sm:$0xff]  ;;  %v8172_v28 = vld [vmem:[%s11532_s1 + $0x288] ss:$16 sps:$4 sm:$0xff]  }
  0xa6   : > { %v580_v34 = vsel %vm573_vm11, %v561_v31, %v532_v29  ;;  %621 = vst.msk [vmem:[#allocation2 + $0x28] sm:$0xff] %vm9219_vm15, %v579_v32  ;;  %v9244_v36 = vld [vmem:[#allocation2 + $0x8] sm:$0xff]  ;;  %v8177_v32 = vld [vmem:[%s11532_s1 + $0x2a4] ss:$16 sps:$4 sm:$0xff]  }
  0xa7   : > { %v534_v37 = vpop.permute.xlu1 %533  ;;  %622 = vst.msk [vmem:[#allocation2 + $0x30] sm:$0xff] %vm9219_vm15, %v580_v34  ;;  %v7153_v40 = vcombine.low %v9242_v35, %v9244_v36  ;;  %v7154_v41 = vcombine.high %v9242_v35, %v9244_v36 }
  0xa8   : > { %v538_v38 = vpop.permute.xlu0 %537  ;;  %v562_v42 = vrot.slane %v534_v37, 4 }
  0xa9   : > { %v564_v43 = vrot.slane %v538_v38, 4  ;;  %3665 = vmatprep.mubr.bf16.mxu0 %v7154_v41  ;;  %4230 = vmatprep.mubr.bf16.mxu1 %v7154_v41  ;;  %v9257_v44 = vld [vmem:[#allocation2 + $0x18] sm:$0xff]  ;;  %v8175_v41 = vld [vmem:[%s11532_s1 + $0x2a0] ss:$16 sps:$4 sm:$0xff]  }
  0xaa   : > { %v581_v47 = vsel %vm573_vm11, %v562_v42, %v534_v37  ;;  %3666 = vmatmul.mubr.bf16.vlgmr.msra.gmra.mrb[0].mxu0 %v7153_v40  ;;  %4231 = vmatmul.mubr.bf16.vlgmr.msra.gmra.mrb[0].mxu1 %v7153_v40  ;;  %v7156_v49 = vcombine.high %v9255_v19, %v9257_v44  ;;  %v7155_v4 = vcombine.low %v9255_v19, %v9257_v44  ;;  %v9305_v6 = vld [vmem:[#allocation2 + $0x20] sm:$0xff]  ;;  %v8178_v42 = vld [vmem:[%s11532_s1 + $0x2a8] ss:$16 sps:$4 sm:$0xff]  }
  0xab   : > { %v583_v48 = vsel %vm573_vm11, %v564_v43, %v538_v38  ;;  %623 = vst.msk [vmem:[#allocation2 + $0x38] sm:$0xff] %vm9219_vm15, %v581_v47  ;;  %v540_v51 = vpop.permute.xlu1 %539  ;;  %3747 = vmatpush1.bf16.msra.mxu0 %v8143_v33  ;;  %4312 = vmatpush1.bf16.msra.mxu1 %v8146_v39  ;;  %v8180_v33 = vld [vmem:[%s11532_s1 + $0x2ac] ss:$16 sps:$4 sm:$0xff]   ;;  %v8182_v47 = vld [vmem:[%s11532_s1 + $0x2c0] ss:$16 sps:$4 sm:$0xff]  }
  0xac   : > { %628 = vst.msk [vmem:[#allocation2 + $0x48] sm:$0xee] %vm9212_vm12, %v583_v48  ;;  %v542_v52 = vpop.permute.xlu0 %541  ;;  %v565_v54 = vrot.slane %v540_v51, 4  ;;  %3675 = vmatprep.mubr.bf16.mxu0 %v7156_v49  ;;  %4240 = vmatprep.mubr.bf16.mxu1 %v7156_v49  ;;  %v8186_v48 = vld [vmem:[%s11532_s1 + $0x2c8] ss:$16 sps:$4 sm:$0xff]  }
  0xad   : > { %v566_v55 = vrot.slane %v542_v52, 4  ;;  %3748 = vmatprep.subr.bf16.mxu0 %v8152_v45  ;;  %4313 = vmatprep.subr.bf16.mxu1 %v8155_v46  ;;  %v9307_v7 = vld [vmem:[#allocation2 + $0x28] sm:$0xff]  ;;  %v8184_v45 = vld [vmem:[%s11532_s1 + $0x2c4] ss:$16 sps:$4 sm:$0xff]  }
  0xae   : > { %v584_v58 = vsel %vm573_vm11, %v565_v54, %v540_v51  ;;  %v7158_v8 = vcombine.high %v9305_v6, %v9307_v7  ;;  %v7157_v31 = vcombine.low %v9305_v6, %v9307_v7  ;;  %v9355_v34 = vld [vmem:[#allocation2 + $0x30] sm:$0xff]  ;;  %v8194_v51 = vld [vmem:[%s11532_s1 + $0x2ec] ss:$16 sps:$4 sm:$0xff]  }
  0xaf   : > { %v585_v59 = vsel %vm573_vm11, %v566_v55, %v542_v52  ;;  %629 = vst.msk [vmem:[#allocation2 + $0x50] sm:$0xff] %vm9219_vm15, %v584_v58  ;;  %v544_v61 = vpop.permute.xlu1 %543  ;;  %3749 = vmatpush1.bf16.msra.mxu0 %v8150_v50  ;;  %4314 = vmatpush1.bf16.msra.mxu1 %v8153_v53  ;;  %v8191_v49 = vld [vmem:[%s11532_s1 + $0x2e4] ss:$16 sps:$4 sm:$0xff]   ;;  %v8189_v55 = vld [vmem:[%s11532_s1 + $0x2e0] ss:$16 sps:$4 sm:$0xff]  }
  0xb0   : > { %630 = vst.msk [vmem:[#allocation2 + $0x58] sm:$0xff] %vm9219_vm15, %v585_v59  ;;  %v546_v62 = vpop.permute.xlu0 %545  ;;  %v567_v1 = vrot.slane %v544_v61, 4  ;;  %3750 = vmatprep.subr.bf16.mxu0 %v8158_v56  ;;  %4315 = vmatprep.subr.bf16.mxu1 %v8161_v57  ;;  %v8192_v56 = vld [vmem:[%s11532_s1 + $0x2e8] ss:$16 sps:$4 sm:$0xff]   ;;  %v8198_v57 = vld [vmem:[%s11532_s1 + $0x304] ss:$16 sps:$4 sm:$0xff]  }
  0xb1   : > { %v568_v2 = vrot.slane %v546_v62, 4  ;;  %v8202_v58 = vld [vmem:[%s11532_s1 + $0x30c] ss:$16 sps:$4 sm:$0xff]   ;;  %v8196_v59 = vld [vmem:[%s11532_s1 + $0x300] ss:$16 sps:$4 sm:$0xff]  }
  0xb2   : > { %v586_v9 = vsel %vm573_vm11, %v567_v1, %v544_v61  ;;  %3676 = vmatmul.mubr.bf16.gmra.mrb[4].mxu0 %v7155_v4  ;;  %4241 = vmatmul.mubr.bf16.gmra.mrb[4].mxu1 %v7155_v4  ;;  %v9335_v24 = vld [vmem:[#allocation2 + $0x38] sm:$0xff]  ;;  %v8205_v61 = vld [vmem:[%s11532_s1 + $0x324] ss:$16 sps:$4 sm:$0xff]   ;;  %v8203_v4 = vld [vmem:[%s11532_s1 + $0x320] ss:$16 sps:$4 sm:$0xff]  }
  0xb3   : > { %v587_v10 = vsel %vm573_vm11, %v568_v2, %v546_v62  ;;  %631 = vst.msk [vmem:[#allocation2 + $0x60] sm:$0xff] %vm9219_vm15, %v586_v9  ;;  %v548_v13 = vpop.permute.xlu1 %547  ;;  %3751 = vmatpush1.bf16.msra.mxu0 %v8156_v60  ;;  %4316 = vmatpush1.bf16.msra.mxu1 %v8159_v63  ;;  %v7160_v37 = vcombine.high %v9355_v34, %v9335_v24  ;;  %v9394_v52 = vld [vmem:[#allocation2 + $0x48] sm:$0xff] }
  0xb4   : > { %632 = vst.msk [vmem:[#allocation2 + $0x68] sm:$0xff] %vm9219_vm15, %v587_v10  ;;  %v550_v14 = vpop.permute.xlu0 %549  ;;  %v569_v16 = vrot.slane %v548_v13, 4  ;;  %3752 = vmatprep.subr.bf16.mxu0 %v8164_v0  ;;  %4317 = vmatprep.subr.bf16.mxu1 %v8167_v5  ;;  %v7159_v50 = vcombine.low %v9355_v34, %v9335_v24  ;;  %v8200_v60 = vld [vmem:[%s11532_s1 + $0x308] ss:$16 sps:$4 sm:$0xff]   ;;  %v8208_v62 = vld [vmem:[%s11532_s1 + $0x32c] ss:$16 sps:$4 sm:$0xff]  }
  0xb5   : > { %v570_v17 = vrot.slane %v550_v14, 4  ;;  %3685 = vmatprep.mubr.bf16.mxu0 %v7158_v8  ;;  %4250 = vmatprep.mubr.bf16.mxu1 %v7158_v8  ;;  %v8206_v5 = vld [vmem:[%s11532_s1 + $0x328] ss:$16 sps:$4 sm:$0xff]   ;;  %v8212_v8 = vld [vmem:[%s11532_s1 + $0x344] ss:$16 sps:$4 sm:$0xff]  }
  0xb6   : > { %v588_v21 = vsel %vm573_vm11, %v569_v16, %v548_v13  ;;  %v9396_v53 = vld [vmem:[#allocation2 + $0x50] sm:$0xff]  ;;  %v8215_v9 = vld [vmem:[%s11532_s1 + $0x34c] ss:$16 sps:$4 sm:$0xff]   ;;  %v784_v16 = vshrl.u32 %v9244_v36, 16 }
  0xb7   : > { %v589_v22 = vsel %vm573_vm11, %v570_v17, %v550_v14  ;;  %633 = vst.msk [vmem:[#allocation2 + $0x70] sm:$0xff] %vm9219_vm15, %v588_v21  ;;  %v552_v25 = vpop.permute.xlu1 %551  ;;  %3753 = vmatpush1.bf16.msra.mxu0 %v8162_v11  ;;  %4318 = vmatpush1.bf16.msra.mxu1 %v8165_v12  ;;  %v7162_v54 = vcombine.high %v9394_v52, %v9396_v53  ;;  %v9426_v0 = vld [vmem:[#allocation2 + $0x58] sm:$0xff]  ;;  %v8210_v10 = vld [vmem:[%s11532_s1 + $0x340] ss:$16 sps:$4 sm:$0xff]   ;;  %v8218_v12 = vld [vmem:[%s11532_s1 + $0x364] ss:$16 sps:$4 sm:$0xff]  }
  0xb8   : > { %634 = vst.msk [vmem:[#allocation2 + $0x78] sm:$0xff] %vm9219_vm15, %v589_v22  ;;  %v536_v26 = vpop.permute.xlu0 %535  ;;  %v571_v29 = vrot.slane %v552_v25, 4  ;;  %3754 = vmatprep.subr.bf16.mxu0 %v8171_v18  ;;  %4319 = vmatprep.subr.bf16.mxu1 %v8174_v20  ;;  %v7161_v63 = vcombine.low %v9394_v52, %v9396_v53  ;;  %v8213_v11 = vld [vmem:[%s11532_s1 + $0x348] ss:$16 sps:$4 sm:$0xff]   ;;  %v8221_v13 = vld [vmem:[%s11532_s1 + $0x36c] ss:$16 sps:$4 sm:$0xff]  }
  0xb9   : > { %v563_v30 = vrot.slane %v536_v26, 4  ;;  %v780_v14 = vshll.u32 %v9244_v36, 16  ;;  %v771_v21 = vshrl.u32 %v9242_v35, 16  ;;  %v774_v22 = vshll.u32 %v9242_v35, 16  ;;  %v8225_v35 = vld [vmem:[%s11532_s1 + $0x384] ss:$16 sps:$4 sm:$0xff]  }
  0xba   : > { %v590_v38 = vsel %vm573_vm11, %v571_v29, %v552_v25  ;;  %3686 = vmatmul.mubr.bf16.gmra.mrb[8].mxu0 %v7157_v31  ;;  %4251 = vmatmul.mubr.bf16.gmra.mrb[8].mxu1 %v7157_v31  ;;  %v9428_v1 = vld [vmem:[#allocation2 + $0x60] sm:$0xff]  ;;  %v786_v25 = vrot.slane %v784_v16, 4 }
  0xbb   : > { %v582_v40 = vsel %vm573_vm11, %v563_v30, %v536_v26  ;;  %635 = vst.msk [vmem:[#allocation2 + $0x80] sm:$0xff] %vm9219_vm15, %v590_v38  ;;  %v554_v39 = vpop.permute.xlu1 %553  ;;  %3755 = vmatpush1.bf16.msra.mxu0 %v8169_v27  ;;  %4320 = vmatpush1.bf16.msra.mxu1 %v8172_v28  ;;  %v7164_v2 = vcombine.high %v9426_v0, %v9428_v1  ;;  %v9458_v17 = vld [vmem:[#allocation2 + $0x68] sm:$0xff]  ;;  %v9468_v36 = vrot.slane %v780_v14, 5  ;;  %v8216_v26 = vld [vmem:[%s11532_s1 + $0x360] ss:$16 sps:$4 sm:$0xff]   ;;  %v773_v29 = vrot.slane %v771_v21, 4  ;;  %vm10307_vm15 = vmor %vm1500_vm13, %vm1501_vm14 }
  0xbc   : > { %627 = vst.msk [vmem:[#allocation2 + $0x40] sm:$0x11] %vm9331_vm2, %v582_v40  ;;  %v572_v43 = vrot.slane %v554_v39, 4  ;;  %3756 = vmatprep.subr.bf16.mxu0 %v8177_v32  ;;  %4321 = vmatprep.subr.bf16.mxu1 %v8180_v33  ;;  %v7163_v18 = vcombine.low %v9426_v0, %v9428_v1  ;;  %v8219_v27 = vld [vmem:[%s11532_s1 + $0x368] ss:$16 sps:$4 sm:$0xff]   ;;  %v776_v30 = vrot.slane %v774_v22, 5 }
  0xbd   : > { %3695 = vmatprep.mubr.bf16.mxu0 %v7160_v37  ;;  %4260 = vmatprep.mubr.bf16.mxu1 %v7160_v37  ;;  %v8229_v28 = vld [vmem:[%s11532_s1 + $0x38c] ss:$16 sps:$4 sm:$0xff]   ;;  %v8223_v31 = vld [vmem:[%s11532_s1 + $0x380] ss:$16 sps:$4 sm:$0xff]   ;;  %v8227_v32 = vld [vmem:[%s11532_s1 + $0x388] ss:$16 sps:$4 sm:$0xff]   ;;  %v787_v37 = vor.u32 %v786_v25, %v9468_v36 }
  0xbe   : > { %v591_v46 = vsel %vm573_vm11, %v572_v43, %v554_v39  ;;  %v9462_v20 = vld [vmem:[#allocation2 + $0x70] sm:$0xff]  ;;  %v790_v38 = vshll.u32 %v9255_v19, 16  ;;  %v794_v40 = vshrl.u32 %v9255_v19, 16  ;;  %v804_v39 = vshrl.u32 %v9257_v44, 16  ;;  %v8235_v43 = vld [vmem:[%s11532_s1 + $0x3ac] ss:$16 sps:$4 sm:$0xff]  }
  0xbf   : > { %636 = vst.msk [vmem:[#allocation2 + $0x88] sm:$0x11] %vm9331_vm2, %v591_v46  ;;  %3757 = vmatpush1.bf16.msra.mxu0 %v8175_v41  ;;  %4322 = vmatpush1.bf16.msra.mxu1 %v8178_v42  ;;  %v7166_v23 = vcombine.high %v9458_v17, %v9462_v20  ;;  %v8232_v33 = vld [vmem:[%s11532_s1 + $0x3a4] ss:$16 sps:$4 sm:$0xff]   ;;  %v800_v41 = vshll.u32 %v9257_v44, 16  ;;  %v7165_v42 = vcombine.low %v9458_v17, %v9462_v20  ;;  %vm5215_vm2 = vcmask 1043459  }
  0xc0   : > { %3758 = vmatprep.subr.bf16.mxu0 %v8184_v45  ;;  %4323 = vmatprep.subr.bf16.mxu1 %v8188_v15  ;;  %v9501_v45 = vld [vmem:[#allocation2 + $0x78] sm:$0xff]  ;;  %v777_v19 = vor.u32 %v776_v30, %v773_v29  ;;  %v8230_v44 = vld [vmem:[%s11532_s1 + $0x3a0] ss:$16 sps:$4 sm:$0xff]   ;;  %v8258_v30 = vld [vmem:[%s11532_s1 + $0x424] ss:$16 sps:$4 sm:$0xff]   ;;  %vm6967_vm13 = vcmask 64512  }
  0xc1   : > { %v8255_v25 = vld [vmem:[%s11532_s1 + $0x40c] ss:$16 sps:$4 sm:$0xff]   ;;  %vm1206_vm11 = vsmask.f32 6416  ;;  %vm7066_vm14 = vcmask 32768  }
  0xc2   : > { %3696 = vmatmul.mubr.bf16.gmra.mrb[12].mxu0 %v7159_v50  ;;  %4261 = vmatmul.mubr.bf16.gmra.mrb[12].mxu1 %v7159_v50  ;;  %v9503_v15 = vld [vmem:[#allocation2 + $0x80] sm:$0xff]  ;;  %v8233_v50 = vld [vmem:[%s11532_s1 + $0x3a8] ss:$16 sps:$4 sm:$0xff]   ;;  %vm10051_vm12 = vmor %vm1205_vm10, %vm1206_vm11  ;;  %vm5938_vm10 = vcmask 647296   ;;  %vm6801_vm11 = vcmask 261120  }
  0xc3   : > { %3759 = vmatpush1.bf16.msra.mxu0 %v8182_v47  ;;  %4324 = vmatpush1.bf16.msra.mxu1 %v8186_v48  ;;  %v7168_v46 = vcombine.high %v9501_v45, %v9503_v15  ;;  %v788_v47 = vrot.slane %v787_v37, 4  ;;  %v792_v48 = vrot.slane %v790_v38, 5  ;;  %v8256_v37 = vld [vmem:[%s11532_s1 + $0x420] ss:$16 sps:$4 sm:$0xff]   ;;  %v8261_v38 = vld [vmem:[%s11532_s1 + $0x42c] ss:$16 sps:$4 sm:$0xff]  }
  0xc4   : > { %3760 = vmatprep.subr.bf16.mxu0 %v8191_v49  ;;  %4325 = vmatprep.subr.bf16.mxu1 %v8194_v51  ;;  %v796_v49 = vrot.slane %v794_v40, 4  ;;  %v802_v51 = vrot.slane %v800_v41, 5  ;;  %v834_v40 = vshrl.u32 %v9355_v34, 16  ;;  %v840_v41 = vshll.u32 %v9335_v24, 16 }
  0xc5   : > { %3705 = vmatprep.mubr.bf16.mxu0 %v7162_v54  ;;  %4270 = vmatprep.mubr.bf16.mxu1 %v7162_v54  ;;  %v806_v54 = vrot.slane %v804_v39, 4  ;;  %v844_v39 = vshrl.u32 %v9335_v24, 16  ;;  %v8267_v24 = vld [vmem:[%s11532_s1 + $0x44c] ss:$16 sps:$4 sm:$0xff]  }
  0xc7   : > { %3761 = vmatpush1.bf16.msra.mxu0 %v8189_v55  ;;  %4326 = vmatpush1.bf16.msra.mxu1 %v8192_v56  ;;  %v8239_v55 = vld [vmem:[%s11532_s1 + $0x3c4] ss:$16 sps:$4 sm:$0xff]   ;;  %v8243_v56 = vld [vmem:[%s11532_s1 + $0x3cc] ss:$16 sps:$4 sm:$0xff]  }
  0xc8   : > { %3762 = vmatprep.subr.bf16.mxu0 %v8198_v57  ;;  %4327 = vmatprep.subr.bf16.mxu1 %v8202_v58  ;;  %v778_v57 = vrot.slane %v777_v19, 4  ;;  %v11606_v58 = vmov 0  ;;  %v8259_v19 = vld [vmem:[%s11532_s1 + $0x428] ss:$16 sps:$4 sm:$0xff]  }
  0xc9   : > { %v11607_v58 = vsel %vm9521_vm6, 4294967295, %v11606_v58 }
  0xca   : > { %3706 = vmatmul.mubr.bf16.gmra.mrb[16].mxu0 %v7161_v63  ;;  %4271 = vmatmul.mubr.bf16.gmra.mrb[16].mxu1 %v7161_v63  ;;  %11608 = vst [vmem:[#allocation12_spill] sm:$0xff] %v11607_v58  ;;  %v8237_v63 = vld [vmem:[%s11532_s1 + $0x3c0] ss:$16 sps:$4 sm:$0xff]  }
  0xcb   : > { %3763 = vmatpush1.bf16.msra.mxu0 %v8196_v59  ;;  %4328 = vmatpush1.bf16.msra.mxu1 %v8200_v60  ;;  %v793_v59 = vsel %vm9521_vm6, %v788_v47, %v792_v48  ;;  %v797_v60 = vor.u32 %v796_v49, %v792_v48  ;;  %v757_v47 = vld [vmem:[#allocation2 + $0x40] sm:$0x11]  ;;  %v836_v48 = vrot.slane %v834_v40, 4  ;;  %v842_v49 = vrot.slane %v840_v41, 5 }
  0xcc   : > { %3764 = vmatprep.subr.bf16.mxu0 %v8205_v61  ;;  %4329 = vmatprep.subr.bf16.mxu1 %v8208_v62  ;;  %v810_v61 = vshll.u32 %v9305_v6, 16  ;;  %v814_v62 = vshrl.u32 %v9305_v6, 16  ;;  %v783_v6 = vsel %vm9521_vm6, %v778_v57, %v9468_v36  ;;  %v8252_v36 = vld [vmem:[%s11532_s1 + $0x404] ss:$16 sps:$4 sm:$0xff]  }
  0xcd   : > { %3715 = vmatprep.mubr.bf16.mxu0 %v7164_v2  ;;  %4280 = vmatprep.mubr.bf16.mxu1 %v7164_v2  ;;  %v807_v2 = vor.u32 %v806_v54, %v802_v51  ;;  %v855_v54 = vshrl.u32 %v9394_v52, 16 }
  0xce   : > { %v812_v14 = vrot.slane %v810_v61, 5  ;;  %v816_v16 = vrot.slane %v814_v62, 4  ;;  %v868_v61 = vshrl.u32 %v9396_v53, 16 }
  0xcf   : > { %3765 = vmatpush1.bf16.msra.mxu0 %v8203_v4  ;;  %4330 = vmatpush1.bf16.msra.mxu1 %v8206_v5  ;;  %v820_v4 = vshll.u32 %v9307_v7, 16  ;;  %v824_v5 = vshrl.u32 %v9307_v7, 16  ;;  %v8246_v7 = vld [vmem:[%s11532_s1 + $0x3e4] ss:$16 sps:$4 sm:$0xff]  }
  0xd0   : > { %3766 = vmatprep.subr.bf16.mxu0 %v8212_v8  ;;  %4331 = vmatprep.subr.bf16.mxu1 %v8215_v9  ;;  %v7167_v8 = vcombine.low %v9501_v45, %v9503_v15  ;;  %v8241_v9 = vld [vmem:[%s11532_s1 + $0x3c8] ss:$16 sps:$4 sm:$0xff]  }
  0xd1   : > { %v822_v21 = vrot.slane %v820_v4, 5  ;;  %v826_v22 = vrot.slane %v824_v5, 4  ;;  %v8273_v4 = vld [vmem:[%s11532_s1 + $0x46c] ss:$16 sps:$4 sm:$0xff]  }
  0xd2   : > { %3716 = vmatmul.mubr.bf16.gmra.mrb[20].mxu0 %v7163_v18  ;;  %4281 = vmatmul.mubr.bf16.gmra.mrb[20].mxu1 %v7163_v18  ;;  %v808_v18 = vrot.slane %v807_v2, 4  ;;  %v8270_v2 = vld [vmem:[%s11532_s1 + $0x464] ss:$16 sps:$4 sm:$0xff]  }
  0xd3   : > { %3767 = vmatpush1.bf16.msra.mxu0 %v8210_v10  ;;  %4332 = vmatpush1.bf16.msra.mxu1 %v8213_v11  ;;  %v7170_v10 = vcombine.high %v783_v6, %v793_v59  ;;  %v8244_v11 = vld [vmem:[%s11532_s1 + $0x3e0] ss:$16 sps:$4 sm:$0xff]  }
  0xd4   : > { %3768 = vmatprep.subr.bf16.mxu0 %v8218_v12  ;;  %4333 = vmatprep.subr.bf16.mxu1 %v8221_v13  ;;  %v8249_v12 = vld [vmem:[%s11532_s1 + $0x3ec] ss:$16 sps:$4 sm:$0xff]   ;;  %v798_v13 = vrot.slane %v797_v60, 4  ;;  %v813_v29 = vsel %vm9521_vm6, %v808_v18, %v812_v14  ;;  %v864_v60 = vshll.u32 %v9396_v53, 16 }
  0xd5   : > { %3725 = vmatprep.mubr.bf16.mxu0 %v7166_v23  ;;  %4290 = vmatprep.mubr.bf16.mxu1 %v7166_v23  ;;  %v8247_v23 = vld [vmem:[%s11532_s1 + $0x3e8] ss:$16 sps:$4 sm:$0xff]  }
  0xd7   : > { %3769 = vmatpush1.bf16.msra.mxu0 %v8216_v26  ;;  %4334 = vmatpush1.bf16.msra.mxu1 %v8219_v27  ;;  %v8250_v26 = vld [vmem:[%s11532_s1 + $0x400] ss:$16 sps:$4 sm:$0xff]   ;;  %v817_v27 = vor.u32 %v816_v16, %v812_v14  ;;  %v8279_v14 = vld [vmem:[%s11532_s1 + $0x48c] ss:$16 sps:$4 sm:$0xff]  }
  0xd8   : > { %3770 = vmatprep.subr.bf16.mxu0 %v8225_v35  ;;  %4335 = vmatprep.subr.bf16.mxu1 %v8229_v28  ;;  %v8253_v35 = vld [vmem:[%s11532_s1 + $0x408] ss:$16 sps:$4 sm:$0xff]   ;;  %v803_v28 = vsel %vm9521_vm6, %v798_v13, %v802_v51 }
  0xd9   : > { %v7171_v62 = vcombine.low %v803_v28, %v813_v29  ;;  %v8271_v13 = vld [vmem:[%s11532_s1 + $0x468] ss:$16 sps:$4 sm:$0xff]  }
  0xda   : > { %3726 = vmatmul.mubr.bf16.gmra.mrb[24].mxu0 %v7165_v42  ;;  %4291 = vmatmul.mubr.bf16.gmra.mrb[24].mxu1 %v7165_v42  ;;  %v7172_v42 = vcombine.high %v803_v28, %v813_v29  ;;  %v874_v28 = vshll.u32 %v9426_v0, 16 }
  0xdb   : > { %3771 = vmatpush1.bf16.msra.mxu0 %v8223_v31  ;;  %4336 = vmatpush1.bf16.msra.mxu1 %v8227_v32  ;;  %v827_v31 = vor.u32 %v826_v22, %v822_v21  ;;  %v830_v32 = vshll.u32 %v9355_v34, 16  ;;  %v8264_v34 = vld [vmem:[%s11532_s1 + $0x444] ss:$16 sps:$4 sm:$0xff]   ;;  %v884_v22 = vshll.u32 %v9428_v1, 16 }
  0xdc   : > { %3772 = vmatprep.subr.bf16.mxu0 %v8232_v33  ;;  %4337 = vmatprep.subr.bf16.mxu1 %v8235_v43  ;;  %v7169_v33 = vcombine.low %v783_v6, %v793_v59  ;;  %v818_v43 = vrot.slane %v817_v27, 4  ;;  %v850_v59 = vshll.u32 %v757_v47, 16 }
  0xdd   : > { %3735 = vmatprep.mubr.bf16.mxu0 %v7168_v46  ;;  %4300 = vmatprep.mubr.bf16.mxu1 %v7168_v46  ;;  %v828_v46 = vrot.slane %v827_v31, 4  ;;  %v8282_v31 = vld [vmem:[%s11532_s1 + $0x4a4] ss:$16 sps:$4 sm:$0xff]  }
  0xde   : > { %v823_v51 = vsel %vm9521_vm6, %v818_v43, %v822_v21  ;;  %v878_v21 = vshrl.u32 %v9426_v0, 16  ;;  %v8288_v43 = vld [vmem:[%s11532_s1 + $0x4c4] ss:$16 sps:$4 sm:$0xff]  }
  0xdf   : > { %3773 = vmatpush1.bf16.msra.mxu0 %v8230_v44  ;;  %4338 = vmatpush1.bf16.msra.mxu1 %v8233_v50  ;;  %v832_v44 = vrot.slane %v830_v32, 5  ;;  %v846_v50 = vrot.slane %v844_v39, 4  ;;  %v8285_v32 = vld [vmem:[%s11532_s1 + $0x4ac] ss:$16 sps:$4 sm:$0xff]   ;;  %v876_v39 = vrot.slane %v874_v28, 5 }
  0xe0   : > { %3774 = vmatprep.subr.bf16.mxu0 %v8239_v55  ;;  %4339 = vmatprep.subr.bf16.mxu1 %v8243_v56  ;;  %v858_v55 = vshll.u32 %v9394_v52, 16  ;;  %v8262_v56 = vld [vmem:[%s11532_s1 + $0x440] ss:$16 sps:$4 sm:$0xff]   ;;  %v766_v28 = vld [vmem:[#allocation2 + $0x88] sm:$0x11] }
  0xe1   : > { %v833_v57 = vsel %vm9521_vm6, %v828_v46, %v832_v44  ;;  %v8268_v52 = vld [vmem:[%s11532_s1 + $0x460] ss:$16 sps:$4 sm:$0xff]   ;;  %v837_v53 = vor.u32 %v836_v48, %v832_v44  ;;  %v847_v5 = vor.u32 %v846_v50, %v842_v49  ;;  %v8291_v46 = vld [vmem:[%s11532_s1 + $0x4cc] ss:$16 sps:$4 sm:$0xff]   ;;  %v894_v44 = vshll.u32 %v9458_v17, 16 }
  0xe2   : > { %3736 = vmatmul.mubr.bf16.gmra.mrb[28].mxu0 %v7167_v8  ;;  %4301 = vmatmul.mubr.bf16.gmra.mrb[28].mxu1 %v7167_v8  ;;  %v7174_v8 = vcombine.high %v823_v51, %v833_v57  ;;  %v860_v6 = vrot.slane %v858_v55, 5  ;;  %v7173_v29 = vcombine.low %v823_v51, %v833_v57  ;;  %v8289_v48 = vld [vmem:[%s11532_s1 + $0x4c8] ss:$16 sps:$4 sm:$0xff]   ;;  %v904_v51 = vshll.u32 %v9462_v20, 16  ;;  %v8297_v57 = vld [vmem:[%s11532_s1 + $0x4ec] ss:$16 sps:$4 sm:$0xff]  }
  0xe3   : > { %3775 = vmatpush1.bf16.msra.mxu0 %v8237_v63  ;;  %3778 = vmatprep.mubr.bf16.mxu0 %v7170_v10  ;;  %v8265_v63 = vld [vmem:[%s11532_s1 + $0x448] ss:$16 sps:$4 sm:$0xff]   ;;  %v838_v16 = vrot.slane %v837_v53, 4  ;;  %v848_v18 = vrot.slane %v847_v5, 4  ;;  %v8303_v53 = vld [vmem:[%s11532_s1 + $0x50c] ss:$16 sps:$4 sm:$0xff]  }
  0xe4   : > { %4340 = vmatpush1.bf16.msra.mxu1 %v8241_v9  ;;  %4343 = vmatprep.mubr.bf16.mxu1 %v7170_v10  ;;  %v857_v9 = vrot.slane %v855_v54, 4  ;;  %v852_v10 = vrot.slane %v850_v59, 5  ;;  %v908_v54 = vshrl.u32 %v9462_v20, 16  ;;  %v896_v59 = vrot.slane %v894_v44, 5 }
  0xe5   : > { %3776 = vmatprep.subr.bf16.mxu0 %v8246_v7  ;;  %4341 = vmatprep.subr.bf16.mxu1 %v8249_v12  ;;  %v870_v7 = vrot.slane %v868_v61, 4  ;;  %v8276_v12 = vld [vmem:[%s11532_s1 + $0x484] ss:$16 sps:$4 sm:$0xff]  }
  0xe6   : > { %v861_v27 = vor.u32 %v860_v6, %v857_v9  ;;  %v914_v6 = vshll.u32 %v9501_v45, 16 }
  0xe7   : > { %3777 = vmatpush1.bf16.msra.mxu0 %v8244_v11  ;;  %v866_v11 = vrot.slane %v864_v60, 5 }
  0xe8   : > { %4342 = vmatpush1.bf16.msra.mxu1 %v8247_v23  ;;  %3859 = vmatprep.subr.bf16.mxu0 %v8252_v36  ;;  %v888_v23 = vshrl.u32 %v9428_v1, 16  ;;  %v8274_v36 = vld [vmem:[%s11532_s1 + $0x480] ss:$16 sps:$4 sm:$0xff]   ;;  %v843_v1 = vsel %vm9521_vm6, %v838_v16, %v842_v49  ;;  %v862_v40 = vrot.slane %v861_v27, 4  ;;  %v8301_v16 = vld [vmem:[%s11532_s1 + $0x508] ss:$16 sps:$4 sm:$0xff]  }
  0xe9   : > { %4424 = vmatprep.subr.bf16.mxu1 %v8255_v25  ;;  %v8277_v25 = vld [vmem:[%s11532_s1 + $0x488] ss:$16 sps:$4 sm:$0xff]  }
  0xea   : > { %3779 = vmatmul.mubr.bf16.vlgmr.msra.gmra.mrb[0].mxu0 %v7169_v33  ;;  %v867_v49 = vsel %vm9521_vm6, %v862_v40, %v866_v11  ;;  %v8313_v40 = vld [vmem:[%s11532_s1 + $0x548] ss:$16 sps:$4 sm:$0xff]  }
  0xeb   : > { %3860 = vmatpush1.bf16.msra.mxu0 %v8250_v26  ;;  %4344 = vmatmul.mubr.bf16.vlgmr.msra.gmra.mrb[0].mxu1 %v7169_v33  ;;  %v853_v26 = vsel %vm9521_vm6, %v848_v18, %v852_v10  ;;  %v880_v33 = vrot.slane %v878_v21, 4  ;;  %v8298_v10 = vld [vmem:[%s11532_s1 + $0x500] ss:$16 sps:$4 sm:$0xff]   ;;  %v8306_v18 = vld [vmem:[%s11532_s1 + $0x524] ss:$16 sps:$4 sm:$0xff]  }
  0xec   : > { %3788 = vmatprep.mubr.bf16.mxu0 %v7172_v42  ;;  %4353 = vmatprep.mubr.bf16.mxu1 %v7172_v42  ;;  %v7176_v0 = vcombine.high %v843_v1, %v853_v26  ;;  %v8283_v42 = vld [vmem:[%s11532_s1 + $0x4a8] ss:$16 sps:$4 sm:$0xff]   ;;  %v7175_v55 = vcombine.low %v843_v1, %v853_v26  ;;  %v8309_v21 = vld [vmem:[%s11532_s1 + $0x52c] ss:$16 sps:$4 sm:$0xff]  }
  0xed   : > { %4425 = vmatpush1.bf16.msra.mxu1 %v8253_v35  ;;  %3861 = vmatprep.subr.bf16.mxu0 %v8258_v30  ;;  %v871_v35 = vor.u32 %v870_v7, %v866_v11  ;;  %v8280_v30 = vld [vmem:[%s11532_s1 + $0x4a0] ss:$16 sps:$4 sm:$0xff]   ;;  %v918_v7 = vshrl.u32 %v9501_v45, 16  ;;  %v8315_v1 = vld [vmem:[%s11532_s1 + $0x54c] ss:$16 sps:$4 sm:$0xff]  }
  0xee   : > { %4426 = vmatprep.subr.bf16.mxu1 %v8261_v38  ;;  %v890_v38 = vrot.slane %v888_v23, 4  ;;  %v8304_v23 = vld [vmem:[%s11532_s1 + $0x520] ss:$16 sps:$4 sm:$0xff]  }
  0xef   : > { %3862 = vmatpush1.bf16.msra.mxu0 %v8256_v37  ;;  %v886_v37 = vrot.slane %v884_v22, 5  ;;  %v872_v41 = vrot.slane %v871_v35, 4  ;;  %v8312_v35 = vld [vmem:[%s11532_s1 + $0x544] ss:$16 sps:$4 sm:$0xff]  }
  0xf0   : > { %3863 = vmatprep.subr.bf16.mxu0 %v8264_v34  ;;  %v881_v34 = vor.u32 %v880_v33, %v876_v39 }
  0xf1   : > { %4427 = vmatpush1.bf16.msra.mxu1 %v8259_v19  ;;  %v8286_v19 = vld [vmem:[%s11532_s1 + $0x4c0] ss:$16 sps:$4 sm:$0xff]   ;;  %v891_v47 = vor.u32 %v890_v38, %v886_v37  ;;  %v877_v50 = vsel %vm9521_vm6, %v872_v41, %v876_v39  ;;  %v8318_v41 = vld [vmem:[%s11532_s1 + $0x564] ss:$16 sps:$4 sm:$0xff]  }
  0xf2   : > { %3789 = vmatmul.mubr.bf16.gmra.mrb[4].mxu0 %v7171_v62  ;;  %4428 = vmatprep.subr.bf16.mxu1 %v8267_v24  ;;  %v898_v24 = vshrl.u32 %v9458_v17, 16  ;;  %v8292_v17 = vld [vmem:[%s11532_s1 + $0x4e0] ss:$16 sps:$4 sm:$0xff]   ;;  %v7178_v60 = vcombine.high %v867_v49, %v877_v50  ;;  %v882_v20 = vrot.slane %v881_v34, 4  ;;  %v8324_v34 = vld [vmem:[%s11532_s1 + $0x584] ss:$16 sps:$4 sm:$0xff]  }
  0xf3   : > { %3864 = vmatpush1.bf16.msra.mxu0 %v8262_v56  ;;  %4354 = vmatmul.mubr.bf16.gmra.mrb[4].mxu1 %v7171_v62  ;;  %v8294_v56 = vld [vmem:[%s11532_s1 + $0x4e4] ss:$16 sps:$4 sm:$0xff]   ;;  %v892_v61 = vrot.slane %v891_v47, 4  ;;  %v9742_v47 = vld [vmem:[#allocation2 + $0x8] sm:$0xff] }
  0xf4   : > { %3798 = vmatprep.mubr.bf16.mxu0 %v7174_v8  ;;  %4363 = vmatprep.mubr.bf16.mxu1 %v7174_v8  ;;  %v900_v62 = vrot.slane %v898_v24, 4  ;;  %v887_v5 = vsel %vm9521_vm6, %v882_v20, %v886_v37  ;;  %v934_v37 = vshll.u32 %v766_v28, 16  ;;  %v8319_v24 = vld [vmem:[%s11532_s1 + $0x568] ss:$16 sps:$4 sm:$0xff]  }
  0xf5   : > { %4429 = vmatpush1.bf16.msra.mxu1 %v8265_v63  ;;  %3865 = vmatprep.subr.bf16.mxu0 %v8270_v2  ;;  %v906_v63 = vrot.slane %v904_v51, 5  ;;  %v8300_v2 = vld [vmem:[%s11532_s1 + $0x504] ss:$16 sps:$4 sm:$0xff]   ;;  %v897_v8 = vsel %vm9521_vm6, %v892_v61, %v896_v59  ;;  %v9772_v20 = vld [vmem:[#allocation2 + $0x18] sm:$0xff] }
  0xf6   : > { %4430 = vmatprep.subr.bf16.mxu1 %v8273_v4  ;;  %v8295_v4 = vld [vmem:[%s11532_s1 + $0x4e8] ss:$16 sps:$4 sm:$0xff]   ;;  %v901_v9 = vor.u32 %v900_v62, %v896_v59  ;;  %v7180_v45 = vcombine.high %v887_v5, %v897_v8  ;;  %v7179_v38 = vcombine.low %v887_v5, %v897_v8  ;;  %v936_v44 = vrot.slane %v934_v37, 5  ;;  %v8330_v59 = vld [vmem:[%s11532_s1 + $0x5a4] ss:$16 sps:$4 sm:$0xff]  }
  0xf7   : > { %3866 = vmatpush1.bf16.msra.mxu0 %v8268_v52  ;;  %v910_v52 = vrot.slane %v908_v54, 4  ;;  %v8334_v5 = vld [vmem:[%s11532_s1 + $0x5c0] ss:$16 sps:$4 sm:$0xff]   ;;  %v8339_v8 = vld [vmem:[%s11532_s1 + $0x5cc] ss:$16 sps:$4 sm:$0xff]  }
  0xf8   : > { %3867 = vmatprep.subr.bf16.mxu0 %v8276_v12  ;;  %v924_v12 = vshll.u32 %v9503_v15, 16  ;;  %v902_v22 = vrot.slane %v901_v9, 4  ;;  %v1065_v9 = vrot.slane %v9772_v20, 5  ;;  %v8352_v37 = vld [vmem:[%s11532_s1 + $0x620] ss:$16 sps:$4 sm:$0xff]  }
  0xf9   : > { %4431 = vmatpush1.bf16.msra.mxu1 %v8271_v13  ;;  %v911_v11 = vor.u32 %v910_v52, %v906_v63  ;;  %v928_v13 = vshrl.u32 %v9503_v15, 16  ;;  %v916_v15 = vrot.slane %v914_v6, 5  ;;  %v8336_v52 = vld [vmem:[%s11532_s1 + $0x5c4] ss:$16 sps:$4 sm:$0xff]   ;;  %v8337_v6 = vld [vmem:[%s11532_s1 + $0x5c8] ss:$16 sps:$4 sm:$0xff]  }
  0xfa   : > { %3799 = vmatmul.mubr.bf16.gmra.mrb[8].mxu0 %v7173_v29  ;;  %4432 = vmatprep.subr.bf16.mxu1 %v8279_v14  ;;  %v7177_v14 = vcombine.low %v867_v49, %v877_v50  ;;  %v926_v26 = vrot.slane %v924_v12, 5  ;;  %v8322_v49 = vld [vmem:[%s11532_s1 + $0x580] ss:$16 sps:$4 sm:$0xff]   ;;  %v8325_v50 = vld [vmem:[%s11532_s1 + $0x588] ss:$16 sps:$4 sm:$0xff]  }
  0xfb   : > { %3868 = vmatpush1.bf16.msra.mxu0 %v8274_v36  ;;  %4364 = vmatmul.mubr.bf16.gmra.mrb[8].mxu1 %v7173_v29  ;;  %v912_v36 = vrot.slane %v911_v11, 4  ;;  %v930_v27 = vrot.slane %v928_v13, 4  ;;  %v8307_v29 = vld [vmem:[%s11532_s1 + $0x528] ss:$16 sps:$4 sm:$0xff]   ;;  %v9801_v12 = vld [vmem:[#allocation2 + $0x20] sm:$0xff] }
  0xfc   : > { %3808 = vmatprep.mubr.bf16.mxu0 %v7176_v0  ;;  %4373 = vmatprep.mubr.bf16.mxu1 %v7176_v0 }
  0xfd   : > { %4433 = vmatpush1.bf16.msra.mxu1 %v8277_v25  ;;  %3869 = vmatprep.subr.bf16.mxu0 %v8282_v31  ;;  %v920_v25 = vrot.slane %v918_v7, 4  ;;  %v8310_v31 = vld [vmem:[%s11532_s1 + $0x540] ss:$16 sps:$4 sm:$0xff]   ;;  %v931_v33 = vor.u32 %v930_v27, %v926_v26  ;;  %v8342_v7 = vld [vmem:[%s11532_s1 + $0x5e4] ss:$16 sps:$4 sm:$0xff]  }
  0xfe   : > { %4434 = vmatprep.subr.bf16.mxu1 %v8285_v32  ;;  %v917_v32 = vsel %vm9521_vm6, %v912_v36, %v916_v15  ;;  %v8343_v36 = vld [vmem:[%s11532_s1 + $0x5e8] ss:$16 sps:$4 sm:$0xff]   ;;  %v8351_v27 = vld [vmem:[%s11532_s1 + $0x60c] ss:$16 sps:$4 sm:$0xff]  }
  0xff   : > { %3870 = vmatpush1.bf16.msra.mxu0 %v8280_v30  ;;  %v907_v30 = vsel %vm9521_vm6, %v902_v22, %v906_v63  ;;  %v921_v0 = vor.u32 %v920_v25, %v916_v15  ;;  %v1067_v15 = vrot.slane %v1065_v9, 4  ;;  %v8348_v25 = vld [vmem:[%s11532_s1 + $0x604] ss:$16 sps:$4 sm:$0xff]  }
 0x100   : > { %3871 = vmatprep.subr.bf16.mxu0 %v8288_v43  ;;  %v7182_v39 = vcombine.high %v907_v30, %v917_v32  ;;  %v8316_v43 = vld [vmem:[%s11532_s1 + $0x560] ss:$16 sps:$4 sm:$0xff]  }
 0x101   : > { %4435 = vmatpush1.bf16.msra.mxu1 %v8283_v42  ;;  %v8321_v42 = vld [vmem:[%s11532_s1 + $0x56c] ss:$16 sps:$4 sm:$0xff]  }
 0x102   : > { %3809 = vmatmul.mubr.bf16.gmra.mrb[12].mxu0 %v7175_v55  ;;  %4436 = vmatprep.subr.bf16.mxu1 %v8291_v46  ;;  %v932_v46 = vrot.slane %v931_v33, 4 }
 0x103   : > { %3872 = vmatpush1.bf16.msra.mxu0 %v8286_v19  ;;  %4374 = vmatmul.mubr.bf16.gmra.mrb[12].mxu1 %v7175_v55  ;;  %v922_v19 = vrot.slane %v921_v0, 4  ;;  %v1059_v55 = vrot.slane %v9742_v47, 5  ;;  %v8357_v0 = vld [vmem:[%s11532_s1 + $0x62c] ss:$16 sps:$4 sm:$0xff]  }
 0x104   : > { %3818 = vmatprep.mubr.bf16.mxu0 %v7178_v60  ;;  %4383 = vmatprep.mubr.bf16.mxu1 %v7178_v60  ;;  %v937_v54 = vsel %vm9521_vm6, %v932_v46, %v936_v44  ;;  %v8333_v60 = vld [vmem:[%s11532_s1 + $0x5ac] ss:$16 sps:$4 sm:$0xff]   ;;  %v8358_v46 = vld [vmem:[%s11532_s1 + $0x640] ss:$16 sps:$4 sm:$0xff]  }
 0x105   : > { %4437 = vmatpush1.bf16.msra.mxu1 %v8289_v48  ;;  %3873 = vmatprep.subr.bf16.mxu0 %v8294_v56  ;;  %v8327_v48 = vld [vmem:[%s11532_s1 + $0x58c] ss:$16 sps:$4 sm:$0xff]   ;;  %v927_v51 = vsel %vm9521_vm6, %v922_v19, %v926_v26  ;;  %v9761_v56 = vld [vmem:[#allocation2 + $0x10] sm:$0xff]  ;;  %v1061_v62 = vrot.slane %v1059_v55, 4  ;;  %v1026_v44 = vld [vmem:[#allocation2 + $0x40] sm:$0x11] }
 0x106   : > { %4438 = vmatprep.subr.bf16.mxu1 %v8297_v57  ;;  %v8328_v57 = vld [vmem:[%s11532_s1 + $0x5a0] ss:$16 sps:$4 sm:$0xff]   ;;  %v7184_v61 = vcombine.high %v927_v51, %v937_v54  ;;  %v1062_v63 = vrot.slane %v9761_v56, 5  ;;  %v7183_v13 = vcombine.low %v927_v51, %v937_v54  ;;  %v8363_v19 = vld [vmem:[%s11532_s1 + $0x64c] ss:$16 sps:$4 sm:$0xff]  }
 0x107   : > { %3874 = vmatpush1.bf16.msra.mxu0 %v8292_v17  ;;  %v7181_v17 = vcombine.low %v907_v30, %v917_v32  ;;  %v8346_v26 = vld [vmem:[%s11532_s1 + $0x600] ss:$16 sps:$4 sm:$0xff]   ;;  %v8354_v30 = vld [vmem:[%s11532_s1 + $0x624] ss:$16 sps:$4 sm:$0xff]   ;;  %v8369_v51 = vld [vmem:[%s11532_s1 + $0x66c] ss:$16 sps:$4 sm:$0xff]  }
 0x108   : > { %3875 = vmatprep.subr.bf16.mxu0 %v8300_v2  ;;  %v1018_v2 = vld [vmem:[#allocation2] sm:$0xee]  ;;  %v1063_v11 = vsel %vm9779_vm9, %v1061_v62, %v1062_v63  ;;  %v1064_v22 = vrot.slane %v1062_v63, 4  ;;  %v8375_v62 = vld [vmem:[%s11532_s1 + $0x68c] ss:$16 sps:$4 sm:$0xff]  }
 0x109   : > { %4439 = vmatpush1.bf16.msra.mxu1 %v8295_v4  ;;  %v11609_v4 = vmov 0 }
 0x10a   : > { %3819 = vmatmul.mubr.bf16.gmra.mrb[16].mxu0 %v7177_v14  ;;  %4440 = vmatprep.subr.bf16.mxu1 %v8303_v53  ;;  %v11610_v4 = vsel %vm9779_vm9, 4294967295, %v11609_v4  ;;  %v8331_v53 = vld [vmem:[%s11532_s1 + $0x5a8] ss:$16 sps:$4 sm:$0xff]  }
 0x10b   : > { %3876 = vmatpush1.bf16.msra.mxu0 %v8298_v10  ;;  %4384 = vmatmul.mubr.bf16.gmra.mrb[16].mxu1 %v7177_v14  ;;  %11611 = vst [vmem:[#allocation13_spill] sm:$0xff] %v11610_v4  ;;  %v7185_v10 = vrot.slane %v1018_v2, 9  ;;  %v8370_v2 = vld [vmem:[%s11532_s1 + $0x680] ss:$16 sps:$4 sm:$0xff]  }
 0x10c   : > { %3828 = vmatprep.mubr.bf16.mxu0 %v7180_v45  ;;  %4393 = vmatprep.mubr.bf16.mxu1 %v7180_v45 }
 0x10d   : > { %4441 = vmatpush1.bf16.msra.mxu1 %v8301_v16  ;;  %3877 = vmatprep.subr.bf16.mxu0 %v8306_v18  ;;  %v1060_v14 = vsel %vm9779_vm9, %v7185_v10, %v1059_v55  ;;  %v8340_v16 = vld [vmem:[%s11532_s1 + $0x5e0] ss:$16 sps:$4 sm:$0xff]   ;;  %v8345_v18 = vld [vmem:[%s11532_s1 + $0x5ec] ss:$16 sps:$4 sm:$0xff]  }
 0x10e   : > { %4442 = vmatprep.subr.bf16.mxu1 %v8309_v21  ;;  %v9811_v21 = vld [vmem:[#allocation2 + $0x28] sm:$0xff]  ;;  %v7188_v45 = vcombine.high %v1060_v14, %v1063_v11  ;;  %v7187_v32 = vcombine.low %v1060_v14, %v1063_v11 }
 0x10f   : > { %3878 = vmatpush1.bf16.msra.mxu0 %v8304_v23  ;;  %v1068_v23 = vrot.slane %v9801_v12, 5  ;;  %v8381_v14 = vld [vmem:[%s11532_s1 + $0x6ac] ss:$16 sps:$4 sm:$0xff]  }
 0x110   : > { %3879 = vmatprep.subr.bf16.mxu0 %v8312_v35  ;;  %v1066_v35 = vsel %vm9779_vm9, %v1064_v22, %v1065_v9  ;;  %v8378_v9 = vld [vmem:[%s11532_s1 + $0x6a4] ss:$16 sps:$4 sm:$0xff]   ;;  %v8376_v22 = vld [vmem:[%s11532_s1 + $0x6a0] ss:$16 sps:$4 sm:$0xff]  }
 0x111   : > { %4443 = vmatpush1.bf16.msra.mxu1 %v8307_v29  ;;  %v1069_v28 = vsel %vm9779_vm9, %v1067_v15, %v1068_v23  ;;  %v1071_v29 = vrot.slane %v9811_v21, 5  ;;  %v9911_v15 = vld [vmem:[#allocation2 + $0x60] sm:$0xff] }
 0x112   : > { %3829 = vmatmul.mubr.bf16.gmra.mrb[20].mxu0 %v7179_v38  ;;  %4444 = vmatprep.subr.bf16.mxu1 %v8315_v1  ;;  %v8349_v1 = vld [vmem:[%s11532_s1 + $0x608] ss:$16 sps:$4 sm:$0xff]   ;;  %v7190_v33 = vcombine.high %v1066_v35, %v1069_v28 }
 0x113   : > { %3880 = vmatpush1.bf16.msra.mxu0 %v8310_v31  ;;  %4394 = vmatmul.mubr.bf16.gmra.mrb[20].mxu1 %v7179_v38  ;;  %v9837_v31 = vld [vmem:[#allocation2 + $0x30] sm:$0xff] }
 0x114   : > { %3838 = vmatprep.mubr.bf16.mxu0 %v7182_v39  ;;  %4403 = vmatprep.mubr.bf16.mxu1 %v7182_v39  ;;  %v8360_v38 = vld [vmem:[%s11532_s1 + $0x644] ss:$16 sps:$4 sm:$0xff]   ;;  %v1074_v39 = vrot.slane %v9837_v31, 5 }
 0x115   : > { %4445 = vmatpush1.bf16.msra.mxu1 %v8313_v40  ;;  %3881 = vmatprep.subr.bf16.mxu0 %v8318_v41  ;;  %v1070_v40 = vrot.slane %v1068_v23, 4  ;;  %v1073_v41 = vrot.slane %v1071_v29, 4  ;;  %v8384_v23 = vld [vmem:[%s11532_s1 + $0x6c4] ss:$16 sps:$4 sm:$0xff]  }
 0x116   : > { %4446 = vmatprep.subr.bf16.mxu1 %v8321_v42  ;;  %v8355_v42 = vld [vmem:[%s11532_s1 + $0x628] ss:$16 sps:$4 sm:$0xff]   ;;  %v1076_v63 = vrot.slane %v1074_v39, 4 }
 0x117   : > { %3882 = vmatpush1.bf16.msra.mxu0 %v8316_v43  ;;  %v9852_v43 = vld [vmem:[#allocation2 + $0x38] sm:$0xff] }
 0x118   : > { %3883 = vmatprep.subr.bf16.mxu0 %v8324_v34  ;;  %v1072_v34 = vsel %vm9779_vm9, %v1070_v40, %v1071_v29  ;;  %v1077_v54 = vrot.slane %v9852_v43, 5  ;;  %v9930_v29 = vld [vmem:[#allocation2 + $0x68] sm:$0xff] }
 0x119   : > { %4447 = vmatpush1.bf16.msra.mxu1 %v8319_v24  ;;  %v1075_v24 = vsel %vm9779_vm9, %v1073_v41, %v1074_v39  ;;  %v1093_v40 = vrot.slane %v9930_v29, 5  ;;  %v9942_v41 = vld [vmem:[#allocation2 + $0x70] sm:$0xff] }
 0x11a   : > { %3839 = vmatmul.mubr.bf16.gmra.mrb[24].mxu0 %v7181_v17  ;;  %4448 = vmatprep.subr.bf16.mxu1 %v8327_v48  ;;  %v8366_v48 = vld [vmem:[%s11532_s1 + $0x664] ss:$16 sps:$4 sm:$0xff]   ;;  %v7192_v55 = vcombine.high %v1072_v34, %v1075_v24  ;;  %v7191_v10 = vcombine.low %v1072_v34, %v1075_v24  ;;  %v1078_v11 = vsel %vm9779_vm9, %v1076_v63, %v1077_v54  ;;  %v8388_v39 = vld [vmem:[%s11532_s1 + $0x6e0] ss:$16 sps:$4 sm:$0xff]  }
 0x11b   : > { %3884 = vmatpush1.bf16.msra.mxu0 %v8322_v49  ;;  %4404 = vmatmul.mubr.bf16.gmra.mrb[24].mxu1 %v7181_v17  ;;  %v8361_v49 = vld [vmem:[%s11532_s1 + $0x648] ss:$16 sps:$4 sm:$0xff]   ;;  %v8364_v17 = vld [vmem:[%s11532_s1 + $0x660] ss:$16 sps:$4 sm:$0xff]  }
 0x11c   : > { %3848 = vmatprep.mubr.bf16.mxu0 %v7184_v61  ;;  %4413 = vmatprep.mubr.bf16.mxu1 %v7184_v61  ;;  %v8367_v61 = vld [vmem:[%s11532_s1 + $0x668] ss:$16 sps:$4 sm:$0xff]   ;;  %v9979_v63 = vld [vmem:[#allocation2 + $0x80] sm:$0xff] }
 0x11d   : > { %4449 = vmatpush1.bf16.msra.mxu1 %v8325_v50  ;;  %3885 = vmatprep.subr.bf16.mxu0 %v8330_v59  ;;  %v7189_v50 = vcombine.low %v1066_v35, %v1069_v28  ;;  %v8372_v59 = vld [vmem:[%s11532_s1 + $0x684] ss:$16 sps:$4 sm:$0xff]   ;;  %v1090_v35 = vrot.slane %v9911_v15, 5  ;;  %v8382_v28 = vld [vmem:[%s11532_s1 + $0x6c0] ss:$16 sps:$4 sm:$0xff]  }
 0x11e   : > { %4450 = vmatprep.subr.bf16.mxu1 %v8333_v60  ;;  %v1080_v60 = vrot.slane %v1026_v44, 5  ;;  %v8399_v44 = vld [vmem:[%s11532_s1 + $0x70c] ss:$16 sps:$4 sm:$0xff]  }
 0x11f   : > { %3886 = vmatpush1.bf16.msra.mxu0 %v8328_v57  ;;  %v9877_v57 = vld [vmem:[#allocation2 + $0x50] sm:$0xff] }
 0x120   : > { %3887 = vmatprep.subr.bf16.mxu0 %v8336_v52  ;;  %v1079_v52 = vrot.slane %v1077_v54, 4  ;;  %v8397_v54 = vld [vmem:[%s11532_s1 + $0x708] ss:$16 sps:$4 sm:$0xff]  }
 0x121   : > { %4451 = vmatpush1.bf16.msra.mxu1 %v8331_v53  ;;  %v1027_v53 = vld [vmem:[#allocation2 + $0x48] sm:$0xee] }
 0x122   : > { %3849 = vmatmul.mubr.bf16.gmra.mrb[28].mxu0 %v7183_v13  ;;  %4452 = vmatprep.subr.bf16.mxu1 %v8339_v8  ;;  %v1081_v8 = vsel %vm9779_vm9, %v1079_v52, %v1080_v60  ;;  %v8408_v52 = vld [vmem:[%s11532_s1 + $0x744] ss:$16 sps:$4 sm:$0xff]  }
 0x123   : > { %3888 = vmatpush1.bf16.msra.mxu0 %v8334_v5  ;;  %4414 = vmatmul.mubr.bf16.gmra.mrb[28].mxu1 %v7183_v13  ;;  %v9891_v5 = vld [vmem:[#allocation2 + $0x58] sm:$0xff]  ;;  %v7194_v13 = vcombine.high %v1078_v11, %v1081_v8 }
 0x124   : > { %3891 = vmatprep.mubr.bf16.mxu0 %v7188_v45  ;;  %4456 = vmatprep.mubr.bf16.mxu1 %v7188_v45  ;;  %v1087_v45 = vrot.slane %v9891_v5, 5 }
 0x125   : > { %4453 = vmatpush1.bf16.msra.mxu1 %v8337_v6  ;;  %3889 = vmatprep.subr.bf16.mxu0 %v8342_v7  ;;  %v1084_v6 = vrot.slane %v9877_v57, 5  ;;  %v8373_v7 = vld [vmem:[%s11532_s1 + $0x688] ss:$16 sps:$4 sm:$0xff]  }
 0x126   : > { %4454 = vmatprep.subr.bf16.mxu1 %v8345_v18 }
 0x127   : > { %3890 = vmatpush1.bf16.msra.mxu0 %v8340_v16  ;;  %v7186_v16 = vrot.slane %v1027_v53, 9  ;;  %v1086_v18 = vrot.slane %v1084_v6, 4  ;;  %v8403_v53 = vld [vmem:[%s11532_s1 + $0x728] ss:$16 sps:$4 sm:$0xff]  }
 0x128   : > { %3972 = vmatprep.subr.bf16.mxu0 %v8348_v25  ;;  %v8387_v25 = vld [vmem:[%s11532_s1 + $0x6cc] ss:$16 sps:$4 sm:$0xff]  }
 0x129   : > { %4455 = vmatpush1.bf16.msra.mxu1 %v8343_v36  ;;  %v8379_v36 = vld [vmem:[%s11532_s1 + $0x6a8] ss:$16 sps:$4 sm:$0xff]  }
 0x12a   : > { %3892 = vmatmul.mubr.bf16.vlgmr.msra.gmra.mrb[0].mxu0 %v7187_v32  ;;  %4537 = vmatprep.subr.bf16.mxu1 %v8351_v27  ;;  %v1088_v27 = vsel %vm9779_vm9, %v1086_v18, %v1087_v45 }
 0x12b   : > { %3973 = vmatpush1.bf16.msra.mxu0 %v8346_v26  ;;  %3901 = vmatprep.mubr.bf16.mxu0 %v7190_v33  ;;  %v1085_v26 = vsel %vm9779_vm9, %v7186_v16, %v1084_v6  ;;  %v1221_v6 = vshll.u32 %v9742_v47, 16 }
 0x12c   : > { %4457 = vmatmul.mubr.bf16.vlgmr.msra.gmra.mrb[0].mxu1 %v7187_v32  ;;  %3974 = vmatprep.subr.bf16.mxu0 %v8354_v30  ;;  %v8390_v30 = vld [vmem:[%s11532_s1 + $0x6e4] ss:$16 sps:$4 sm:$0xff]   ;;  %v8385_v32 = vld [vmem:[%s11532_s1 + $0x6c8] ss:$16 sps:$4 sm:$0xff]  }
 0x12d   : > { %4466 = vmatprep.mubr.bf16.mxu1 %v7190_v33  ;;  %4538 = vmatpush1.bf16.msra.mxu1 %v8349_v1  ;;  %v7193_v1 = vcombine.low %v1078_v11, %v1081_v8  ;;  %v8393_v33 = vld [vmem:[%s11532_s1 + $0x6ec] ss:$16 sps:$4 sm:$0xff]   ;;  %v1102_v11 = vrot.slane %v9979_v63, 5 }
 0x12e   : > { %4539 = vmatprep.subr.bf16.mxu1 %v8357_v0  ;;  %v7196_v0 = vcombine.high %v1085_v26, %v1088_v27 }
 0x12f   : > { %3975 = vmatpush1.bf16.msra.mxu0 %v8352_v37  ;;  %v1089_v37 = vrot.slane %v1087_v45, 4 }
 0x130   : > { %3976 = vmatprep.subr.bf16.mxu0 %v8360_v38  ;;  %v1092_v38 = vrot.slane %v1090_v35, 4 }
 0x131   : > { %4540 = vmatpush1.bf16.msra.mxu1 %v8355_v42  ;;  %v8396_v42 = vld [vmem:[%s11532_s1 + $0x704] ss:$16 sps:$4 sm:$0xff]   ;;  %v1091_v34 = vsel %vm9779_vm9, %v1089_v37, %v1090_v35  ;;  %v8417_v35 = vld [vmem:[%s11532_s1 + $0x76c] ss:$16 sps:$4 sm:$0xff]  }
 0x132   : > { %3902 = vmatmul.mubr.bf16.gmra.mrb[4].mxu0 %v7189_v50  ;;  %4541 = vmatprep.subr.bf16.mxu1 %v8363_v19  ;;  %v8391_v19 = vld [vmem:[%s11532_s1 + $0x6e8] ss:$16 sps:$4 sm:$0xff]   ;;  %v1094_v24 = vsel %vm9779_vm9, %v1092_v38, %v1093_v40 }
 0x133   : > { %3977 = vmatpush1.bf16.msra.mxu0 %v8358_v46  ;;  %3911 = vmatprep.mubr.bf16.mxu0 %v7192_v55  ;;  %v1096_v46 = vrot.slane %v9942_v41, 5  ;;  %v7197_v16 = vcombine.low %v1091_v34, %v1094_v24 }
 0x134   : > { %4467 = vmatmul.mubr.bf16.gmra.mrb[4].mxu1 %v7189_v50  ;;  %3978 = vmatprep.subr.bf16.mxu0 %v8366_v48  ;;  %v9961_v48 = vld [vmem:[#allocation2 + $0x78] sm:$0xff]  ;;  %v7195_v50 = vcombine.low %v1085_v26, %v1088_v27  ;;  %v1223_v26 = vrot.slane %v1221_v6, 6  ;;  %v1231_v27 = vshll.u32 %v9761_v56, 16 }
 0x135   : > { %4476 = vmatprep.mubr.bf16.mxu1 %v7192_v55  ;;  %4542 = vmatpush1.bf16.msra.mxu1 %v8361_v49  ;;  %v8394_v49 = vld [vmem:[%s11532_s1 + $0x700] ss:$16 sps:$4 sm:$0xff]   ;;  %v7198_v55 = vcombine.high %v1091_v34, %v1094_v24  ;;  %v1099_v60 = vrot.slane %v9961_v48, 5  ;;  %v1241_v34 = vshll.u32 %v9772_v20, 16 }
 0x136   : > { %4543 = vmatprep.subr.bf16.mxu1 %v8369_v51  ;;  %v8402_v51 = vld [vmem:[%s11532_s1 + $0x724] ss:$16 sps:$4 sm:$0xff]   ;;  %v8418_v24 = vld [vmem:[%s11532_s1 + $0x780] ss:$16 sps:$4 sm:$0xff]  }
 0x137   : > { %3979 = vmatpush1.bf16.msra.mxu0 %v8364_v17  ;;  %v1095_v17 = vrot.slane %v1093_v40, 4 }
 0x138   : > { %3980 = vmatprep.subr.bf16.mxu0 %v8372_v59  ;;  %v1098_v59 = vrot.slane %v1096_v46, 4 }
 0x139   : > { %4544 = vmatpush1.bf16.msra.mxu1 %v8367_v61  ;;  %v8405_v61 = vld [vmem:[%s11532_s1 + $0x72c] ss:$16 sps:$4 sm:$0xff]   ;;  %v1097_v8 = vsel %vm9779_vm9, %v1095_v17, %v1096_v46 }
 0x13a   : > { %3912 = vmatmul.mubr.bf16.gmra.mrb[8].mxu0 %v7191_v10  ;;  %4545 = vmatprep.subr.bf16.mxu1 %v8375_v62  ;;  %v8400_v62 = vld [vmem:[%s11532_s1 + $0x720] ss:$16 sps:$4 sm:$0xff]  }
 0x13b   : > { %3981 = vmatpush1.bf16.msra.mxu0 %v8370_v2  ;;  %3921 = vmatprep.mubr.bf16.mxu0 %v7194_v13  ;;  %v1218_v2 = vshrl.u32 %v9742_v47, 16  ;;  %v8414_v47 = vld [vmem:[%s11532_s1 + $0x764] ss:$16 sps:$4 sm:$0xff]  }
 0x13c   : > { %4477 = vmatmul.mubr.bf16.gmra.mrb[8].mxu1 %v7191_v10  ;;  %3982 = vmatprep.subr.bf16.mxu0 %v8378_v9  ;;  %v1100_v9 = vsel %vm9779_vm9, %v1098_v59, %v1099_v60  ;;  %v8411_v10 = vld [vmem:[%s11532_s1 + $0x74c] ss:$16 sps:$4 sm:$0xff]  }
 0x13d   : > { %4486 = vmatprep.mubr.bf16.mxu1 %v7194_v13  ;;  %4546 = vmatpush1.bf16.msra.mxu1 %v8373_v7  ;;  %v1187_v7 = vld [vmem:[#allocation2] sm:$0xee]  ;;  %v7200_v18 = vcombine.high %v1097_v8, %v1100_v9  ;;  %v1220_v45 = vrot.slane %v1218_v2, 5  ;;  %v8429_v59 = vld [vmem:[%s11532_s1 + $0x7ac] ss:$16 sps:$4 sm:$0xff]  }
 0x13e   : > { %4547 = vmatprep.subr.bf16.mxu1 %v8381_v14  ;;  %v8406_v13 = vld [vmem:[%s11532_s1 + $0x740] ss:$16 sps:$4 sm:$0xff]   ;;  %v1035_v14 = vld [vmem:[#allocation2 + $0x88] sm:$0x11] }
 0x13f   : > { %3983 = vmatpush1.bf16.msra.mxu0 %v8376_v22  ;;  %v1228_v22 = vshrl.u32 %v9761_v56, 16  ;;  %v8420_v56 = vld [vmem:[%s11532_s1 + $0x784] ss:$16 sps:$4 sm:$0xff]   ;;  %v1224_v40 = vor.u32 %v1223_v26, %v1220_v45  ;;  %v8424_v2 = vld [vmem:[%s11532_s1 + $0x7a0] ss:$16 sps:$4 sm:$0xff]   ;;  %v1268_v26 = vshrl.u32 %v9837_v31, 16 }
 0x140   : > { %3984 = vmatprep.subr.bf16.mxu0 %v8384_v23  ;;  %v8409_v23 = vld [vmem:[%s11532_s1 + $0x748] ss:$16 sps:$4 sm:$0xff]  }
 0x141   : > { %4548 = vmatpush1.bf16.msra.mxu1 %v8379_v36  ;;  %v1209_v36 = vshrl.u32 %v1187_v7, 16 }
 0x142   : > { %3922 = vmatmul.mubr.bf16.gmra.mrb[12].mxu0 %v7193_v1  ;;  %4549 = vmatprep.subr.bf16.mxu1 %v8387_v25  ;;  %v1212_v25 = vshll.u32 %v1187_v7, 16  ;;  %v8435_v7 = vld [vmem:[%s11532_s1 + $0x7cc] ss:$16 sps:$4 sm:$0xff]  }
 0x143   : > { %3985 = vmatpush1.bf16.msra.mxu0 %v8382_v28  ;;  %3931 = vmatprep.mubr.bf16.mxu0 %v7196_v0  ;;  %v1101_v28 = vrot.slane %v1099_v60, 4  ;;  %v1211_v37 = vrot.slane %v1209_v36, 5 }
 0x144   : > { %4487 = vmatmul.mubr.bf16.gmra.mrb[12].mxu1 %v7193_v1  ;;  %3986 = vmatprep.subr.bf16.mxu0 %v8390_v30  ;;  %v1104_v1 = vrot.slane %v1102_v11, 4  ;;  %v1105_v30 = vrot.slane %v1035_v14, 5  ;;  %v1214_v38 = vrot.slane %v1212_v25, 6 }
 0x145   : > { %4496 = vmatprep.mubr.bf16.mxu1 %v7196_v0  ;;  %4550 = vmatpush1.bf16.msra.mxu1 %v8385_v32  ;;  %v8412_v32 = vld [vmem:[%s11532_s1 + $0x760] ss:$16 sps:$4 sm:$0xff]   ;;  %v1230_v0 = vrot.slane %v1228_v22, 5 }
 0x146   : > { %4551 = vmatprep.subr.bf16.mxu1 %v8393_v33  ;;  %v8415_v33 = vld [vmem:[%s11532_s1 + $0x768] ss:$16 sps:$4 sm:$0xff]   ;;  %v1106_v46 = vsel %vm9779_vm9, %v1104_v1, %v1105_v30 }
 0x147   : > { %3987 = vmatpush1.bf16.msra.mxu0 %v8388_v39  ;;  %v1233_v39 = vrot.slane %v1231_v27, 6  ;;  %v1271_v27 = vshll.u32 %v9837_v31, 16  ;;  %v8444_v31 = vld [vmem:[%s11532_s1 + $0x804] ss:$16 sps:$4 sm:$0xff]  }
 0x148   : > { %3988 = vmatprep.subr.bf16.mxu0 %v8396_v42  ;;  %v8423_v42 = vld [vmem:[%s11532_s1 + $0x78c] ss:$16 sps:$4 sm:$0xff]  }
 0x149   : > { %4552 = vmatpush1.bf16.msra.mxu1 %v8391_v19  ;;  %v1103_v19 = vsel %vm9779_vm9, %v1101_v28, %v1102_v11  ;;  %v1234_v17 = vor.u32 %v1233_v39, %v1230_v0  ;;  %v1261_v11 = vshll.u32 %v9811_v21, 16 }
 0x14a   : > { %3932 = vmatmul.mubr.bf16.gmra.mrb[16].mxu0 %v7195_v50  ;;  %4553 = vmatprep.subr.bf16.mxu1 %v8399_v44  ;;  %v1238_v44 = vshrl.u32 %v9772_v20, 16  ;;  %v1215_v20 = vor.u32 %v1214_v38, %v1211_v37  ;;  %v7201_v45 = vcombine.low %v1103_v19, %v1106_v46  ;;  %v1273_v37 = vrot.slane %v1271_v27, 6  ;;  %v8447_v38 = vld [vmem:[%s11532_s1 + $0x80c] ss:$16 sps:$4 sm:$0xff]  }
 0x14b   : > { %3989 = vmatpush1.bf16.msra.mxu0 %v8394_v49  ;;  %3941 = vmatprep.mubr.bf16.mxu0 %v7198_v55  ;;  %v7199_v49 = vcombine.low %v1097_v8, %v1100_v9  ;;  %v11612_v8 = vmov 0  ;;  %v1263_v25 = vrot.slane %v1261_v11, 6  ;;  %v1236_v28 = vrot.slane %v1234_v17, 4 }
 0x14c   : > { %4497 = vmatmul.mubr.bf16.gmra.mrb[16].mxu1 %v7195_v50  ;;  %3990 = vmatprep.subr.bf16.mxu0 %v8402_v51  ;;  %v8426_v50 = vld [vmem:[%s11532_s1 + $0x7a4] ss:$16 sps:$4 sm:$0xff]   ;;  %v8421_v51 = vld [vmem:[%s11532_s1 + $0x788] ss:$16 sps:$4 sm:$0xff]   ;;  %v1240_v60 = vrot.slane %v1238_v44, 5  ;;  %v11613_v8 = vsel %vm10051_vm12, 4294967295, %v11612_v8 }
 0x14d   : > { %4506 = vmatprep.mubr.bf16.mxu1 %v7198_v55  ;;  %4554 = vmatpush1.bf16.msra.mxu1 %v8397_v54  ;;  %v7202_v54 = vcombine.high %v1103_v19, %v1106_v46  ;;  %v1226_v55 = vrot.slane %v1224_v40, 4  ;;  %11614 = vst [vmem:[#allocation14_spill] sm:$0xff] %v11613_v8  ;;  %v1216_v9 = vrot.slane %v1215_v20, 4  ;;  %v1195_v19 = vld [vmem:[#allocation2 + $0x40] sm:$0x33] }
 0x14e   : > { %4555 = vmatprep.subr.bf16.mxu1 %v8405_v61  ;;  %v1243_v61 = vrot.slane %v1241_v34, 6  ;;  %v8450_v44 = vld [vmem:[%s11532_s1 + $0x824] ss:$16 sps:$4 sm:$0xff]   ;;  %v1278_v34 = vshrl.u32 %v9852_v43, 16 }
 0x14f   : > { %3991 = vmatpush1.bf16.msra.mxu0 %v8400_v62  ;;  %v1248_v62 = vshrl.u32 %v9801_v12, 16  ;;  %v1235_v6 = vsel %vm10051_vm12, %v1226_v55, %v1234_v17  ;;  %v8453_v55 = vld [vmem:[%s11532_s1 + $0x82c] ss:$16 sps:$4 sm:$0xff]   ;;  %v1288_v17 = vshrl.u32 %v1195_v19, 16 }
 0x150   : > { %3992 = vmatprep.subr.bf16.mxu0 %v8408_v52  ;;  %v1251_v52 = vshll.u32 %v9801_v12, 16  ;;  %v8427_v12 = vld [vmem:[%s11532_s1 + $0x7a8] ss:$16 sps:$4 sm:$0xff]  }
 0x151   : > { %4556 = vmatpush1.bf16.msra.mxu1 %v8403_v53  ;;  %v8432_v53 = vld [vmem:[%s11532_s1 + $0x7c4] ss:$16 sps:$4 sm:$0xff]   ;;  %v1250_v14 = vrot.slane %v1248_v62, 5  ;;  %v1280_v62 = vrot.slane %v1278_v34, 5  ;;  %v1290_v11 = vrot.slane %v1288_v17, 5  ;;  %v1336_v17 = vshrl.u32 %v9930_v29, 16 }
 0x152   : > { %3942 = vmatmul.mubr.bf16.gmra.mrb[20].mxu0 %v7197_v16  ;;  %4557 = vmatprep.subr.bf16.mxu1 %v8411_v10  ;;  %v1258_v10 = vshrl.u32 %v9811_v21, 16  ;;  %v8438_v21 = vld [vmem:[%s11532_s1 + $0x7e4] ss:$16 sps:$4 sm:$0xff]  }
 0x153   : > { %3993 = vmatpush1.bf16.msra.mxu0 %v8406_v13  ;;  %3951 = vmatprep.mubr.bf16.mxu0 %v7200_v18  ;;  %v1244_v13 = vor.u32 %v1243_v61, %v1240_v60  ;;  %v1196_v60 = vld [vmem:[#allocation2 + $0x48] sm:$0xee]  ;;  %v8456_v61 = vld [vmem:[%s11532_s1 + $0x844] ss:$16 sps:$4 sm:$0xff]  }
 0x154   : > { %4507 = vmatmul.mubr.bf16.gmra.mrb[20].mxu1 %v7197_v16  ;;  %3994 = vmatprep.subr.bf16.mxu0 %v8414_v47  ;;  %v1253_v16 = vrot.slane %v1251_v52, 6  ;;  %v1225_v47 = vsel %vm10051_vm12, %v1216_v9, %v1224_v40  ;;  %v1260_v36 = vrot.slane %v1258_v10, 5  ;;  %v8459_v10 = vld [vmem:[%s11532_s1 + $0x84c] ss:$16 sps:$4 sm:$0xff]   ;;  %v8474_v34 = vld [vmem:[%s11532_s1 + $0x8a4] ss:$16 sps:$4 sm:$0xff]  }
 0x155   : > { %4516 = vmatprep.mubr.bf16.mxu1 %v7200_v18  ;;  %4558 = vmatpush1.bf16.msra.mxu1 %v8409_v23  ;;  %v8430_v18 = vld [vmem:[%s11532_s1 + $0x7c0] ss:$16 sps:$4 sm:$0xff]   ;;  %v7204_v22 = vcombine.high %v1225_v47, %v1235_v6  ;;  %v8433_v23 = vld [vmem:[%s11532_s1 + $0x7c8] ss:$16 sps:$4 sm:$0xff]   ;;  %v1246_v1 = vrot.slane %v1244_v13, 4  ;;  %v1245_v40 = vsel %vm10051_vm12, %v1236_v28, %v1244_v13  ;;  %v7203_v46 = vcombine.low %v1225_v47, %v1235_v6 }
 0x156   : > { %4559 = vmatprep.subr.bf16.mxu1 %v8417_v35  ;;  %v8441_v35 = vld [vmem:[%s11532_s1 + $0x7ec] ss:$16 sps:$4 sm:$0xff]   ;;  %v1254_v30 = vor.u32 %v1253_v16, %v1250_v14  ;;  %v1264_v0 = vor.u32 %v1263_v25, %v1260_v36  ;;  %v1309_v6 = vshll.u32 %v9877_v57, 16  ;;  %v1297_v13 = vshrl.u32 %v1196_v60, 16  ;;  %v8454_v16 = vld [vmem:[%s11532_s1 + $0x840] ss:$16 sps:$4 sm:$0xff]  }
 0x157   : > { %3995 = vmatpush1.bf16.msra.mxu0 %v8412_v32  ;;  %v8436_v32 = vld [vmem:[%s11532_s1 + $0x7e0] ss:$16 sps:$4 sm:$0xff]   ;;  %v1300_v14 = vshll.u32 %v1196_v60, 16  ;;  %v1316_v36 = vshrl.u32 %v9891_v5, 16  ;;  %v1319_v25 = vshll.u32 %v9891_v5, 16 }
 0x158   : > { %3996 = vmatprep.subr.bf16.mxu0 %v8420_v56  ;;  %v8439_v56 = vld [vmem:[%s11532_s1 + $0x7e8] ss:$16 sps:$4 sm:$0xff]   ;;  %v1255_v39 = vsel %vm10051_vm12, %v1246_v1, %v1254_v30  ;;  %v8460_v1 = vld [vmem:[%s11532_s1 + $0x860] ss:$16 sps:$4 sm:$0xff]   ;;  %v8468_v5 = vld [vmem:[%s11532_s1 + $0x884] ss:$16 sps:$4 sm:$0xff]  }
 0x159   : > { %4560 = vmatpush1.bf16.msra.mxu1 %v8415_v33  ;;  %v1270_v33 = vrot.slane %v1268_v26, 5  ;;  %v8465_v26 = vld [vmem:[%s11532_s1 + $0x86c] ss:$16 sps:$4 sm:$0xff]   ;;  %v1302_v28 = vrot.slane %v1300_v14, 6  ;;  %v8480_v60 = vld [vmem:[%s11532_s1 + $0x8c4] ss:$16 sps:$4 sm:$0xff]  }
 0x15a   : > { %3952 = vmatmul.mubr.bf16.gmra.mrb[24].mxu0 %v7199_v49  ;;  %4561 = vmatprep.subr.bf16.mxu1 %v8423_v42  ;;  %v8442_v42 = vld [vmem:[%s11532_s1 + $0x800] ss:$16 sps:$4 sm:$0xff]  }
 0x15b   : > { %3997 = vmatpush1.bf16.msra.mxu0 %v8418_v24  ;;  %3961 = vmatprep.mubr.bf16.mxu0 %v7202_v54  ;;  %v1281_v24 = vshll.u32 %v9852_v43, 16  ;;  %v10108_v20 = vor.u32 %v1273_v37, %v1270_v33  ;;  %v8448_v43 = vld [vmem:[%s11532_s1 + $0x820] ss:$16 sps:$4 sm:$0xff]   ;;  %v1321_v33 = vrot.slane %v1319_v25, 6  ;;  %v1326_v37 = vshrl.u32 %v9911_v15, 16 }
 0x15c   : > { %4517 = vmatmul.mubr.bf16.gmra.mrb[24].mxu1 %v7199_v49  ;;  %3998 = vmatprep.subr.bf16.mxu0 %v8426_v50  ;;  %v8445_v49 = vld [vmem:[%s11532_s1 + $0x808] ss:$16 sps:$4 sm:$0xff]   ;;  %v7206_v50 = vcombine.high %v1245_v40, %v1255_v39 }
 0x15d   : > { %4526 = vmatprep.mubr.bf16.mxu1 %v7202_v54  ;;  %4562 = vmatpush1.bf16.msra.mxu1 %v8421_v51  ;;  %v1256_v51 = vrot.slane %v1254_v30, 4  ;;  %v1266_v54 = vrot.slane %v1264_v0, 4  ;;  %v1283_v52 = vrot.slane %v1281_v24, 6  ;;  %v1276_v30 = vrot.slane %v10108_v20, 4  ;;  %v8469_v24 = vld [vmem:[%s11532_s1 + $0x888] ss:$16 sps:$4 sm:$0xff]  }
 0x15e   : > { %4563 = vmatprep.subr.bf16.mxu1 %v8429_v59  ;;  %v1291_v59 = vshll.u32 %v1195_v19, 16  ;;  %v8466_v19 = vld [vmem:[%s11532_s1 + $0x880] ss:$16 sps:$4 sm:$0xff]   ;;  %v8487_v25 = vld [vmem:[%s11532_s1 + $0x8e8] ss:$16 sps:$4 sm:$0xff]  }
 0x15f   : > { %3999 = vmatpush1.bf16.msra.mxu0 %v8424_v2  ;;  %v1306_v2 = vshrl.u32 %v9877_v57, 16  ;;  %v1275_v9 = vsel %vm10051_vm12, %v1266_v54, %v10108_v20  ;;  %v8462_v57 = vld [vmem:[%s11532_s1 + $0x864] ss:$16 sps:$4 sm:$0xff]   ;;  %v1284_v47 = vor.u32 %v1283_v52, %v1280_v62  ;;  %v8477_v54 = vld [vmem:[%s11532_s1 + $0x8ac] ss:$16 sps:$4 sm:$0xff]   ;;  %v1346_v62 = vshrl.u32 %v9942_v41, 16 }
 0x160   : > { %4000 = vmatprep.subr.bf16.mxu0 %v8432_v53  ;;  %v8451_v53 = vld [vmem:[%s11532_s1 + $0x828] ss:$16 sps:$4 sm:$0xff]   ;;  %v1349_v52 = vshll.u32 %v9942_v41, 16  ;;  %v8486_v41 = vld [vmem:[%s11532_s1 + $0x8e4] ss:$16 sps:$4 sm:$0xff]  }
 0x161   : > { %4564 = vmatpush1.bf16.msra.mxu1 %v8427_v12  ;;  %v1265_v12 = vsel %vm10051_vm12, %v1256_v51, %v1264_v0  ;;  %v1318_v0 = vrot.slane %v1316_v36, 5  ;;  %v1328_v51 = vrot.slane %v1326_v37, 5  ;;  %v8492_v36 = vld [vmem:[%s11532_s1 + $0x904] ss:$16 sps:$4 sm:$0xff]  }
 0x162   : > { %3962 = vmatmul.mubr.bf16.gmra.mrb[28].mxu0 %v7201_v45  ;;  %4565 = vmatprep.subr.bf16.mxu1 %v8435_v7  ;;  %v1293_v7 = vrot.slane %v1291_v59, 6  ;;  %v1339_v59 = vshll.u32 %v9930_v29, 16 }
 0x163   : > { %4001 = vmatpush1.bf16.msra.mxu0 %v8430_v18  ;;  %4004 = vmatprep.mubr.bf16.mxu0 %v7204_v22  ;;  %v7205_v18 = vcombine.low %v1245_v40, %v1255_v39 }
 0x164   : > { %4527 = vmatmul.mubr.bf16.gmra.mrb[28].mxu1 %v7201_v45  ;;  %4002 = vmatprep.subr.bf16.mxu0 %v8438_v21  ;;  %v1308_v45 = vrot.slane %v1306_v2, 5  ;;  %v7208_v21 = vcombine.high %v1265_v12, %v1275_v9  ;;  %v1294_v27 = vor.u32 %v1293_v7, %v1290_v11  ;;  %v8483_v2 = vld [vmem:[%s11532_s1 + $0x8cc] ss:$16 sps:$4 sm:$0xff]   ;;  %v8481_v7 = vld [vmem:[%s11532_s1 + $0x8c8] ss:$16 sps:$4 sm:$0xff]  }
 0x165   : > { %4566 = vmatpush1.bf16.msra.mxu1 %v8433_v23  ;;  %4569 = vmatprep.mubr.bf16.mxu1 %v7204_v22  ;;  %v8457_v22 = vld [vmem:[%s11532_s1 + $0x848] ss:$16 sps:$4 sm:$0xff]   ;;  %v1311_v23 = vrot.slane %v1309_v6, 6  ;;  %v1341_v6 = vrot.slane %v1339_v59, 6 }
 0x166   : > { %4567 = vmatprep.subr.bf16.mxu1 %v8441_v35  ;;  %v1299_v35 = vrot.slane %v1297_v13, 5 }
 0x167   : > { %4003 = vmatpush1.bf16.msra.mxu0 %v8436_v32  ;;  %v1286_v32 = vrot.slane %v1284_v47, 4 }
 0x168   : > { %4085 = vmatprep.subr.bf16.mxu0 %v8444_v31  ;;  %v8463_v31 = vld [vmem:[%s11532_s1 + $0x868] ss:$16 sps:$4 sm:$0xff]   ;;  %v1303_v39 = vor.u32 %v1302_v28, %v1299_v35  ;;  %v8495_v35 = vld [vmem:[%s11532_s1 + $0x90c] ss:$16 sps:$4 sm:$0xff]  }
 0x169   : > { %4568 = vmatpush1.bf16.msra.mxu1 %v8439_v56  ;;  %v1312_v56 = vor.u32 %v1311_v23, %v1308_v45  ;;  %v1295_v40 = vsel %vm10051_vm12, %v1286_v32, %v1294_v27  ;;  %v8484_v23 = vld [vmem:[%s11532_s1 + $0x8e0] ss:$16 sps:$4 sm:$0xff]   ;;  %v1366_v27 = vshrl.u32 %v9979_v63, 16 }
 0x16a   : > { %4005 = vmatmul.mubr.bf16.vlgmr.msra.gmra.mrb[0].mxu0 %v7203_v46  ;;  %4650 = vmatprep.subr.bf16.mxu1 %v8447_v38  ;;  %v8471_v38 = vld [vmem:[%s11532_s1 + $0x88c] ss:$16 sps:$4 sm:$0xff]   ;;  %v1304_v20 = vrot.slane %v1303_v39, 4  ;;  %v8490_v32 = vld [vmem:[%s11532_s1 + $0x900] ss:$16 sps:$4 sm:$0xff]  }
 0x16b   : > { %4086 = vmatpush1.bf16.msra.mxu0 %v8442_v42  ;;  %4014 = vmatprep.mubr.bf16.mxu0 %v7206_v50  ;;  %v1329_v42 = vshll.u32 %v9911_v15, 16  ;;  %v8501_v39 = vld [vmem:[%s11532_s1 + $0x92c] ss:$16 sps:$4 sm:$0xff]  }
 0x16c   : > { %4570 = vmatmul.mubr.bf16.vlgmr.msra.gmra.mrb[0].mxu1 %v7203_v46  ;;  %4087 = vmatprep.subr.bf16.mxu0 %v8450_v44  ;;  %v7207_v46 = vcombine.low %v1265_v12, %v1275_v9  ;;  %v1285_v44 = vsel %vm10051_vm12, %v1276_v30, %v1284_v47  ;;  %v1338_v9 = vrot.slane %v1336_v17, 5  ;;  %v1369_v30 = vshll.u32 %v9979_v63, 16  ;;  %v8502_v17 = vld [vmem:[%s11532_s1 + $0x940] ss:$16 sps:$4 sm:$0xff]  }
 0x16d   : > { %4579 = vmatprep.mubr.bf16.mxu1 %v7206_v50  ;;  %4651 = vmatpush1.bf16.msra.mxu1 %v8445_v49  ;;  %v7210_v15 = vcombine.high %v1285_v44, %v1295_v40  ;;  %v1314_v49 = vrot.slane %v1312_v56, 4  ;;  %v1322_v50 = vor.u32 %v1321_v33, %v1318_v0  ;;  %v7209_v11 = vcombine.low %v1285_v44, %v1295_v40  ;;  %v8498_v0 = vld [vmem:[%s11532_s1 + $0x924] ss:$16 sps:$4 sm:$0xff]   ;;  %v8493_v33 = vld [vmem:[%s11532_s1 + $0x908] ss:$16 sps:$4 sm:$0xff]  }
 0x16e   : > { %4652 = vmatprep.subr.bf16.mxu1 %v8453_v55  ;;  %v1331_v55 = vrot.slane %v1329_v42, 6  ;;  %v1342_v45 = vor.u32 %v1341_v6, %v1338_v9  ;;  %v1368_v40 = vrot.slane %v1366_v27, 5  ;;  %v8516_v9 = vld [vmem:[%s11532_s1 + $0x984] ss:$16 sps:$4 sm:$0xff]   ;;  %v8511_v6 = vld [vmem:[%s11532_s1 + $0x968] ss:$16 sps:$4 sm:$0xff]  }
 0x16f   : > { %4088 = vmatpush1.bf16.msra.mxu0 %v8448_v43  ;;  %v8472_v43 = vld [vmem:[%s11532_s1 + $0x8a0] ss:$16 sps:$4 sm:$0xff]   ;;  %v1323_v29 = vsel %vm10051_vm12, %v1314_v49, %v1322_v50  ;;  %v1324_v14 = vrot.slane %v1322_v50, 4  ;;  %v8507_v50 = vld [vmem:[%s11532_s1 + $0x94c] ss:$16 sps:$4 sm:$0xff]   ;;  %v11615_v27 = vmov 0 }
 0x170   : > { %4089 = vmatprep.subr.bf16.mxu0 %v8456_v61  ;;  %v8475_v61 = vld [vmem:[%s11532_s1 + $0x8a8] ss:$16 sps:$4 sm:$0xff]   ;;  %v1332_v12 = vor.u32 %v1331_v55, %v1328_v51  ;;  %v11616_v27 = vsel %vm10307_vm15, 4294967295, %v11615_v27 }
 0x171   : > { %4653 = vmatpush1.bf16.msra.mxu1 %v8451_v53  ;;  %v1313_v53 = vsel %vm10051_vm12, %v1304_v20, %v1312_v56  ;;  %11617 = vst [vmem:[#allocation15_spill] sm:$0xff] %v11616_v27 }
 0x172   : > { %4015 = vmatmul.mubr.bf16.gmra.mrb[4].mxu0 %v7205_v18  ;;  %4654 = vmatprep.subr.bf16.mxu1 %v8459_v10  ;;  %v8478_v10 = vld [vmem:[%s11532_s1 + $0x8c0] ss:$16 sps:$4 sm:$0xff]   ;;  %v7212_v13 = vcombine.high %v1313_v53, %v1323_v29  ;;  %v1334_v47 = vrot.slane %v1332_v12, 4  ;;  %v7211_v56 = vcombine.low %v1313_v53, %v1323_v29  ;;  %v8513_v29 = vld [vmem:[%s11532_s1 + $0x96c] ss:$16 sps:$4 sm:$0xff]  }
 0x173   : > { %4090 = vmatpush1.bf16.msra.mxu0 %v8454_v16  ;;  %4024 = vmatprep.mubr.bf16.mxu0 %v7208_v21  ;;  %v1348_v16 = vrot.slane %v1346_v62, 5  ;;  %v8508_v53 = vld [vmem:[%s11532_s1 + $0x960] ss:$16 sps:$4 sm:$0xff]  }
 0x174   : > { %4580 = vmatmul.mubr.bf16.gmra.mrb[4].mxu1 %v7205_v18  ;;  %4091 = vmatprep.subr.bf16.mxu0 %v8462_v57  ;;  %v1351_v18 = vrot.slane %v1349_v52, 6  ;;  %v8489_v57 = vld [vmem:[%s11532_s1 + $0x8ec] ss:$16 sps:$4 sm:$0xff]   ;;  %v1343_v28 = vsel %vm10051_vm12, %v1334_v47, %v1342_v45 }
 0x175   : > { %4589 = vmatprep.mubr.bf16.mxu1 %v7208_v21  ;;  %4655 = vmatpush1.bf16.msra.mxu1 %v8457_v22  ;;  %v1356_v22 = vshrl.u32 %v9961_v48, 16  ;;  %v1359_v21 = vshll.u32 %v9961_v48, 16  ;;  %v1333_v48 = vsel %vm10051_vm12, %v1324_v14, %v1332_v12  ;;  %v1465_v12 = vld [vmem:[#allocation2 + $0x8] sm:$0xff]  ;;  %v1466_v14 = vld [vmem:[#allocation2 + $0x10] sm:$0xff] }
 0x176   : > { %4656 = vmatprep.subr.bf16.mxu1 %v8465_v26  ;;  %v1352_v26 = vor.u32 %v1351_v18, %v1348_v16  ;;  %v7214_v37 = vcombine.high %v1333_v48, %v1343_v28  ;;  %v7213_v59 = vcombine.low %v1333_v48, %v1343_v28  ;;  %v8522_v18 = vld [vmem:[%s11532_s1 + $0x9a4] ss:$16 sps:$4 sm:$0xff]  }
 0x177   : > { %4092 = vmatpush1.bf16.msra.mxu0 %v8460_v1  ;;  %v1358_v1 = vrot.slane %v1356_v22, 5  ;;  %v8528_v48 = vld [vmem:[%s11532_s1 + $0x9c4] ss:$16 sps:$4 sm:$0xff]  }
 0x178   : > { %4093 = vmatprep.subr.bf16.mxu0 %v8468_v5  ;;  %v1361_v5 = vrot.slane %v1359_v21, 6  ;;  %v1354_v63 = vrot.slane %v1352_v26, 4  ;;  %v1508_v21 = vrot.slane %v1466_v14, 6 }
 0x179   : > { %4657 = vmatpush1.bf16.msra.mxu1 %v8463_v31  ;;  %v1204_v31 = vld [vmem:[#allocation2 + $0x88] sm:$0x33] }
 0x17a   : > { %4025 = vmatmul.mubr.bf16.gmra.mrb[8].mxu0 %v7207_v46  ;;  %4658 = vmatprep.subr.bf16.mxu1 %v8471_v38  ;;  %v1344_v38 = vrot.slane %v1342_v45, 4  ;;  %v1362_v42 = vor.u32 %v1361_v5, %v1358_v1  ;;  %v1379_v44 = vshll.u32 %v1204_v31, 16  ;;  %v8525_v45 = vld [vmem:[%s11532_s1 + $0x9ac] ss:$16 sps:$4 sm:$0xff]  }
 0x17b   : > { %4094 = vmatpush1.bf16.msra.mxu0 %v8466_v19  ;;  %4034 = vmatprep.mubr.bf16.mxu0 %v7210_v15  ;;  %v1371_v19 = vrot.slane %v1369_v30, 6  ;;  %v8526_v30 = vld [vmem:[%s11532_s1 + $0x9c0] ss:$16 sps:$4 sm:$0xff]  }
 0x17c   : > { %4590 = vmatmul.mubr.bf16.gmra.mrb[8].mxu1 %v7207_v46  ;;  %4095 = vmatprep.subr.bf16.mxu0 %v8474_v34  ;;  %v1376_v46 = vshrl.u32 %v1204_v31, 16  ;;  %v8496_v34 = vld [vmem:[%s11532_s1 + $0x920] ss:$16 sps:$4 sm:$0xff]   ;;  %v1353_v49 = vsel %vm10051_vm12, %v1344_v38, %v1352_v26  ;;  %v1363_v51 = vsel %vm10051_vm12, %v1354_v63, %v1362_v42  ;;  %v1381_v55 = vrot.slane %v1379_v44, 6  ;;  %v8523_v26 = vld [vmem:[%s11532_s1 + $0x9a8] ss:$16 sps:$4 sm:$0xff]  }
 0x17d   : > { %4599 = vmatprep.mubr.bf16.mxu1 %v7210_v15  ;;  %4659 = vmatpush1.bf16.msra.mxu1 %v8469_v24  ;;  %v8504_v24 = vld [vmem:[%s11532_s1 + $0x944] ss:$16 sps:$4 sm:$0xff]   ;;  %v8499_v15 = vld [vmem:[%s11532_s1 + $0x928] ss:$16 sps:$4 sm:$0xff]   ;;  %v1364_v62 = vrot.slane %v1362_v42, 4  ;;  %v7215_v16 = vcombine.low %v1353_v49, %v1363_v51  ;;  %v1510_v63 = vrot.slane %v1508_v21, 4 }
 0x17e   : > { %4660 = vmatprep.subr.bf16.mxu1 %v8477_v54  ;;  %v1372_v54 = vor.u32 %v1371_v19, %v1368_v40  ;;  %v1378_v20 = vrot.slane %v1376_v46, 5  ;;  %v8537_v38 = vld [vmem:[%s11532_s1 + $0x9ec] ss:$16 sps:$4 sm:$0xff]   ;;  %v8532_v42 = vld [vmem:[%s11532_s1 + $0x9e0] ss:$16 sps:$4 sm:$0xff]  }
 0x17f   : > { %4096 = vmatpush1.bf16.msra.mxu0 %v8472_v43  ;;  %v8510_v43 = vld [vmem:[%s11532_s1 + $0x964] ss:$16 sps:$4 sm:$0xff]   ;;  %v1469_v19 = vld [vmem:[#allocation2 + $0x28] sm:$0xff] }
 0x180   : > { %4097 = vmatprep.subr.bf16.mxu0 %v8480_v60  ;;  %v8505_v60 = vld [vmem:[%s11532_s1 + $0x948] ss:$16 sps:$4 sm:$0xff]   ;;  %v1374_v52 = vrot.slane %v1372_v54, 4 }
 0x181   : > { %4661 = vmatpush1.bf16.msra.mxu1 %v8475_v61  ;;  %v7216_v61 = vcombine.high %v1353_v49, %v1363_v51  ;;  %v8535_v46 = vld [vmem:[%s11532_s1 + $0x9e8] ss:$16 sps:$4 sm:$0xff]  }
 0x182   : > { %4035 = vmatmul.mubr.bf16.gmra.mrb[12].mxu0 %v7209_v11  ;;  %4662 = vmatprep.subr.bf16.mxu1 %v8483_v2  ;;  %v1382_v2 = vor.u32 %v1381_v55, %v1378_v20  ;;  %v1471_v55 = vld [vmem:[#allocation2 + $0x38] sm:$0xff] }
 0x183   : > { %4098 = vmatpush1.bf16.msra.mxu0 %v8478_v10  ;;  %4044 = vmatprep.mubr.bf16.mxu0 %v7212_v13  ;;  %v8519_v10 = vld [vmem:[%s11532_s1 + $0x98c] ss:$16 sps:$4 sm:$0xff]  }
 0x184   : > { %4600 = vmatmul.mubr.bf16.gmra.mrb[12].mxu1 %v7209_v11  ;;  %4099 = vmatprep.subr.bf16.mxu0 %v8486_v41  ;;  %v1373_v11 = vsel %vm10051_vm12, %v1364_v62, %v1372_v54  ;;  %v1383_v41 = vsel %vm10051_vm12, %v1374_v52, %v1382_v2  ;;  %v1474_v52 = vld [vmem:[#allocation2 + $0x50] sm:$0xff] }
 0x185   : > { %4609 = vmatprep.mubr.bf16.mxu1 %v7212_v13  ;;  %4663 = vmatpush1.bf16.msra.mxu1 %v8481_v7  ;;  %v1505_v7 = vrot.slane %v1465_v12, 6  ;;  %v8514_v13 = vld [vmem:[%s11532_s1 + $0x980] ss:$16 sps:$4 sm:$0xff]   ;;  %v7218_v47 = vcombine.high %v1373_v11, %v1383_v41  ;;  %v7217_v31 = vcombine.low %v1373_v11, %v1383_v41 }
 0x186   : > { %4664 = vmatprep.subr.bf16.mxu1 %v8489_v57  ;;  %v8517_v57 = vld [vmem:[%s11532_s1 + $0x988] ss:$16 sps:$4 sm:$0xff]  }
 0x187   : > { %4100 = vmatpush1.bf16.msra.mxu0 %v8484_v23  ;;  %v1507_v22 = vrot.slane %v1505_v7, 4  ;;  %v8520_v23 = vld [vmem:[%s11532_s1 + $0x9a0] ss:$16 sps:$4 sm:$0xff]  }
 0x188   : > { %4101 = vmatprep.subr.bf16.mxu0 %v8492_v36  ;;  %v1464_v36 = vld [vmem:[#allocation2] sm:$0xcc] }
 0x189   : > { %4665 = vmatpush1.bf16.msra.mxu1 %v8487_v25  ;;  %v1467_v25 = vld [vmem:[#allocation2 + $0x18] sm:$0xff]  ;;  %v7219_v28 = vrot.slane %v1464_v36, 10  ;;  %v1509_v1 = vsel %vm10307_vm15, %v1507_v22, %v1508_v21  ;;  %v1477_v22 = vld [vmem:[#allocation2 + $0x68] sm:$0xff] }
 0x18a   : > { %4045 = vmatmul.mubr.bf16.gmra.mrb[16].mxu0 %v7211_v56  ;;  %4666 = vmatprep.subr.bf16.mxu1 %v8495_v35  ;;  %v8531_v35 = vld [vmem:[%s11532_s1 + $0x9cc] ss:$16 sps:$4 sm:$0xff]   ;;  %v1511_v5 = vrot.slane %v1467_v25, 6 }
 0x18b   : > { %4102 = vmatpush1.bf16.msra.mxu0 %v8490_v32  ;;  %4054 = vmatprep.mubr.bf16.mxu0 %v7214_v37  ;;  %v1468_v32 = vld [vmem:[#allocation2 + $0x20] sm:$0xff] }
 0x18c   : > { %4610 = vmatmul.mubr.bf16.gmra.mrb[16].mxu1 %v7211_v56  ;;  %4103 = vmatprep.subr.bf16.mxu0 %v8498_v0  ;;  %v1506_v56 = vsel %vm10307_vm15, %v7219_v28, %v1505_v7  ;;  %v8534_v0 = vld [vmem:[%s11532_s1 + $0x9e4] ss:$16 sps:$4 sm:$0xff]   ;;  %v1513_v40 = vrot.slane %v1511_v5, 4  ;;  %v1512_v44 = vsel %vm10307_vm15, %v1510_v63, %v1511_v5  ;;  %v1479_v5 = vld [vmem:[#allocation2 + $0x78] sm:$0xff] }
 0x18d   : > { %4619 = vmatprep.mubr.bf16.mxu1 %v7214_v37  ;;  %4667 = vmatpush1.bf16.msra.mxu1 %v8493_v33  ;;  %v8529_v33 = vld [vmem:[%s11532_s1 + $0x9c8] ss:$16 sps:$4 sm:$0xff]   ;;  %v7222_v37 = vcombine.high %v1506_v56, %v1509_v1  ;;  %v7221_v49 = vcombine.low %v1506_v56, %v1509_v1 }
 0x18e   : > { %4668 = vmatprep.subr.bf16.mxu1 %v8501_v39  ;;  %v1514_v39 = vrot.slane %v1468_v32, 6 }
 0x18f   : > { %4104 = vmatpush1.bf16.msra.mxu0 %v8496_v34 }
 0x190   : > { %4105 = vmatprep.subr.bf16.mxu0 %v8504_v24  ;;  %v1515_v34 = vsel %vm10307_vm15, %v1513_v40, %v1514_v39  ;;  %v1517_v24 = vrot.slane %v1469_v19, 6  ;;  %v1516_v51 = vrot.slane %v1514_v39, 4  ;;  %v1481_v40 = vld [vmem:[#allocation2 + $0x88] sm:$0x33] }
 0x191   : > { %4669 = vmatpush1.bf16.msra.mxu1 %v8499_v15  ;;  %v1470_v15 = vld [vmem:[#allocation2 + $0x30] sm:$0xff] }
 0x192   : > { %4055 = vmatmul.mubr.bf16.gmra.mrb[20].mxu0 %v7213_v59  ;;  %4670 = vmatprep.subr.bf16.mxu1 %v8507_v50  ;;  %v7224_v50 = vcombine.high %v1512_v44, %v1515_v34  ;;  %v1519_v54 = vrot.slane %v1517_v24, 4  ;;  %v1520_v20 = vrot.slane %v1470_v15, 6 }
 0x193   : > { %4106 = vmatpush1.bf16.msra.mxu0 %v8502_v17  ;;  %4064 = vmatprep.mubr.bf16.mxu0 %v7216_v61  ;;  %v1518_v17 = vsel %vm10307_vm15, %v1516_v51, %v1517_v24 }
 0x194   : > { %4620 = vmatmul.mubr.bf16.gmra.mrb[20].mxu1 %v7213_v59  ;;  %4107 = vmatprep.subr.bf16.mxu0 %v8510_v43  ;;  %v1521_v59 = vsel %vm10307_vm15, %v1519_v54, %v1520_v20  ;;  %v1472_v43 = vld [vmem:[#allocation2 + $0x40] sm:$0x33]  ;;  %v1522_v2 = vrot.slane %v1520_v20, 4 }
 0x195   : > { %4629 = vmatprep.mubr.bf16.mxu1 %v7216_v61  ;;  %4671 = vmatpush1.bf16.msra.mxu1 %v8505_v60  ;;  %v7223_v60 = vcombine.low %v1512_v44, %v1515_v34  ;;  %v1523_v61 = vrot.slane %v1471_v55, 6  ;;  %v1526_v62 = vrot.slane %v1472_v43, 6  ;;  %v7225_v11 = vcombine.low %v1518_v17, %v1521_v59 }
 0x196   : > { %4672 = vmatprep.subr.bf16.mxu1 %v8513_v29  ;;  %v7226_v29 = vcombine.high %v1518_v17, %v1521_v59  ;;  %v1551_v44 = vrot.slane %v1481_v40, 6 }
 0x197   : > { %4108 = vmatpush1.bf16.msra.mxu0 %v8508_v53  ;;  %v1525_v53 = vrot.slane %v1523_v61, 4  ;;  %v1524_v41 = vsel %vm10307_vm15, %v1522_v2, %v1523_v61 }
 0x198   : > { %4109 = vmatprep.subr.bf16.mxu0 %v8516_v9  ;;  %v1530_v9 = vrot.slane %v1474_v52, 6 }
 0x199   : > { %4673 = vmatpush1.bf16.msra.mxu1 %v8511_v6  ;;  %v1527_v12 = vsel %vm10307_vm15, %v1525_v53, %v1526_v62  ;;  %v1473_v6 = vld [vmem:[#allocation2 + $0x48] sm:$0xcc] }
 0x19a   : > { %4065 = vmatmul.mubr.bf16.gmra.mrb[24].mxu0 %v7215_v16  ;;  %4674 = vmatprep.subr.bf16.mxu1 %v8519_v10  ;;  %v1475_v10 = vld [vmem:[#allocation2 + $0x58] sm:$0xff]  ;;  %v7228_v7 = vcombine.high %v1524_v41, %v1527_v12  ;;  %v1532_v14 = vrot.slane %v1530_v9, 4  ;;  %v7227_v21 = vcombine.low %v1524_v41, %v1527_v12 }
 0x19b   : > { %4110 = vmatpush1.bf16.msra.mxu0 %v8514_v13  ;;  %4074 = vmatprep.mubr.bf16.mxu0 %v7218_v47  ;;  %v7220_v13 = vrot.slane %v1473_v6, 10 }
 0x19c   : > { %4630 = vmatmul.mubr.bf16.gmra.mrb[24].mxu1 %v7215_v16  ;;  %4111 = vmatprep.subr.bf16.mxu0 %v8522_v18  ;;  %v1533_v16 = vrot.slane %v1475_v10, 6  ;;  %v1476_v18 = vld [vmem:[#allocation2 + $0x60] sm:$0xff] }
 0x19d   : > { %4639 = vmatprep.mubr.bf16.mxu1 %v7218_v47  ;;  %4675 = vmatpush1.bf16.msra.mxu1 %v8517_v57  ;;  %v1531_v57 = vsel %vm10307_vm15, %v7220_v13, %v1530_v9 }
 0x19e   : > { %4676 = vmatprep.subr.bf16.mxu1 %v8525_v45  ;;  %v1534_v47 = vsel %vm10307_vm15, %v1532_v14, %v1533_v16  ;;  %v1536_v45 = vrot.slane %v1476_v18, 6  ;;  %v1535_v36 = vrot.slane %v1533_v16, 4 }
 0x19f   : > { %4112 = vmatpush1.bf16.msra.mxu0 %v8520_v23  ;;  %v7230_v23 = vcombine.high %v1531_v57, %v1534_v47 }
 0x1a0   : > { %4113 = vmatprep.subr.bf16.mxu0 %v8528_v48  ;;  %v1538_v25 = vrot.slane %v1536_v45, 4  ;;  %v1539_v48 = vrot.slane %v1477_v22, 6 }
 0x1a1   : > { %4677 = vmatpush1.bf16.msra.mxu1 %v8523_v26  ;;  %v1478_v26 = vld [vmem:[#allocation2 + $0x70] sm:$0xff] }
 0x1a2   : > { %4075 = vmatmul.mubr.bf16.gmra.mrb[28].mxu0 %v7217_v31  ;;  %4678 = vmatprep.subr.bf16.mxu1 %v8531_v35  ;;  %v1537_v35 = vsel %vm10307_vm15, %v1535_v36, %v1536_v45  ;;  %v1540_v28 = vsel %vm10307_vm15, %v1538_v25, %v1539_v48  ;;  %v1542_v1 = vrot.slane %v1478_v26, 6 }
 0x1a3   : > { %4114 = vmatpush1.bf16.msra.mxu0 %v8526_v30  ;;  %4117 = vmatprep.mubr.bf16.mxu0 %v7222_v37  ;;  %v7229_v30 = vcombine.low %v1531_v57, %v1534_v47  ;;  %v7232_v32 = vcombine.high %v1537_v35, %v1540_v28  ;;  %v7231_v39 = vcombine.low %v1537_v35, %v1540_v28 }
 0x1a4   : > { %4640 = vmatmul.mubr.bf16.gmra.mrb[28].mxu1 %v7217_v31  ;;  %4115 = vmatprep.subr.bf16.mxu0 %v8534_v0  ;;  %v1541_v31 = vrot.slane %v1539_v48, 4  ;;  %v1544_v56 = vrot.slane %v1542_v1, 4  ;;  %v1545_v0 = vrot.slane %v1479_v5, 6 }
 0x1a5   : > { %4679 = vmatpush1.bf16.msra.mxu1 %v8529_v33  ;;  %4682 = vmatprep.mubr.bf16.mxu1 %v7222_v37  ;;  %v1480_v33 = vld [vmem:[#allocation2 + $0x80] sm:$0xff] }
 0x1a6   : > { %4680 = vmatprep.subr.bf16.mxu1 %v8537_v38  ;;  %v1543_v37 = vsel %vm10307_vm15, %v1541_v31, %v1542_v1  ;;  %v1546_v38 = vsel %vm10307_vm15, %v1544_v56, %v1545_v0  ;;  %v1548_v63 = vrot.slane %v1480_v33, 6  ;;  %v1547_v19 = vrot.slane %v1545_v0, 4 }
 0x1a7   : > { %4116 = vmatpush1.bf16.msra.mxu0 %v8532_v42  ;;  %v7234_v42 = vcombine.high %v1543_v37, %v1546_v38  ;;  %v7233_v15 = vcombine.low %v1543_v37, %v1546_v38 }
 0x1a8   : > { %v1549_v34 = vsel %vm10307_vm15, %v1547_v19, %v1548_v63 }
 0x1a9   : > { %4681 = vmatpush1.bf16.msra.mxu1 %v8535_v46  ;;  %v1550_v46 = vrot.slane %v1548_v63, 4 }
 0x1aa   : > { %4118 = vmatmul.mubr.bf16.vlgmr.msra.gmra.mrb[0].mxu0 %v7221_v49 }
 0x1ab   : > { %4127 = vmatprep.mubr.bf16.mxu0 %v7224_v50  ;;  %v1552_v24 = vsel %vm10307_vm15, %v1550_v46, %v1551_v44 }
 0x1ac   : > { %4683 = vmatmul.mubr.bf16.vlgmr.msra.gmra.mrb[0].mxu1 %v7221_v49  ;;  %v7236_v49 = vcombine.high %v1549_v34, %v1552_v24 }
 0x1ad   : > { %4692 = vmatprep.mubr.bf16.mxu1 %v7224_v50  ;;  %v7235_v50 = vcombine.low %v1549_v34, %v1552_v24 }
 0x1b2   : > { %4128 = vmatmul.mubr.bf16.gmra.mrb[4].mxu0 %v7223_v60 }
 0x1b3   : > { %4137 = vmatprep.mubr.bf16.mxu0 %v7226_v29 }
 0x1b4   : > { %4693 = vmatmul.mubr.bf16.gmra.mrb[4].mxu1 %v7223_v60 }
 0x1b5   : > { %4702 = vmatprep.mubr.bf16.mxu1 %v7226_v29 }
 0x1ba   : > { %4138 = vmatmul.mubr.bf16.gmra.mrb[8].mxu0 %v7225_v11 }
 0x1bb   : > { %4147 = vmatprep.mubr.bf16.mxu0 %v7228_v7 }
 0x1bc   : > { %4703 = vmatmul.mubr.bf16.gmra.mrb[8].mxu1 %v7225_v11 }
 0x1bd   : > { %4712 = vmatprep.mubr.bf16.mxu1 %v7228_v7 }
 0x1c2   : > { %4148 = vmatmul.mubr.bf16.gmra.mrb[12].mxu0 %v7227_v21 }
 0x1c3   : > { %4157 = vmatprep.mubr.bf16.mxu0 %v7230_v23 }
 0x1c4   : > { %4713 = vmatmul.mubr.bf16.gmra.mrb[12].mxu1 %v7227_v21 }
 0x1c5   : > { %4722 = vmatprep.mubr.bf16.mxu1 %v7230_v23 }
 0x1ca   : > { %4158 = vmatmul.mubr.bf16.gmra.mrb[16].mxu0 %v7229_v30 }
 0x1cb   : > { %4167 = vmatprep.mubr.bf16.mxu0 %v7232_v32 }
 0x1cc   : > { %4723 = vmatmul.mubr.bf16.gmra.mrb[16].mxu1 %v7229_v30 }
 0x1cd   : > { %4732 = vmatprep.mubr.bf16.mxu1 %v7232_v32 }
 0x1d2   : > { %4168 = vmatmul.mubr.bf16.gmra.mrb[20].mxu0 %v7231_v39 }
 0x1d3   : > { %4177 = vmatprep.mubr.bf16.mxu0 %v7234_v42 }
 0x1d4   : > { %4733 = vmatmul.mubr.bf16.gmra.mrb[20].mxu1 %v7231_v39 }
 0x1d5   : > { %4742 = vmatprep.mubr.bf16.mxu1 %v7234_v42 }
 0x1da   : > { %4178 = vmatmul.mubr.bf16.gmra.mrb[24].mxu0 %v7233_v15 }
 0x1db   : > { %4187 = vmatprep.mubr.bf16.mxu0 %v7236_v49 }
 0x1dc   : > { %4743 = vmatmul.mubr.bf16.gmra.mrb[24].mxu1 %v7233_v15 }
 0x1dd   : > { %4752 = vmatprep.mubr.bf16.mxu1 %v7236_v49 }
 0x1e2   : > { %4188 = vmatmul.mubr.bf16.gmra.mrb[28].mxu0 %v7235_v50 }
 0x1e4   : > { %4753 = vmatmul.mubr.bf16.gmra.mrb[28].mxu1 %v7235_v50 }
 0x27d   : > { %v4119_v51 = vpop.f32.mrb[0].mxu0 }
 0x27e   : > { %v4763_v54 = vrot.slane %v4119_v51, 4  ;;  %v4121_v20 = vpop.f32.mrb[1].mxu0 }
 0x27f   : > { %v4684_v55 = vpop.f32.mrb[0].mxu1  ;;  %v4769_v17 = vrot.slane %v4121_v20, 4  ;;  %v4123_v59 = vpop.f32.mrb[2].mxu0 }
 0x280   : > { %v4764_v43 = vmax.f32 %v4119_v51, %v4763_v54  ;;  %v4775_v60 = vrot.slane %v4684_v55, 4  ;;  %v4686_v61 = vpop.f32.mrb[1].mxu1  ;;  %v4787_v29 = vrot.slane %v4123_v59, 4  ;;  %v4125_v62 = vpop.f32.mrb[3].mxu0 }
 0x281   : > { %v4770_v52 = vmax.f32 %v4121_v20, %v4769_v17  ;;  %v4781_v2 = vrot.slane %v4686_v61, 4  ;;  %v4688_v53 = vpop.f32.mrb[2].mxu1  ;;  %v4793_v12 = vrot.slane %v4125_v62, 4 }
 0x282   : > { %v4765_v9 = vrot.slane %v4764_v43, 2  ;;  %v4776_v6 = vmax.f32 %v4684_v55, %v4775_v60  ;;  %v4788_v10 = vmax.f32 %v4123_v59, %v4787_v29  ;;  %v4799_v11 = vrot.slane %v4688_v53, 4  ;;  %v4690_v41 = vpop.f32.mrb[3].mxu1 }
 0x283   : > { %v4771_v7 = vrot.slane %v4770_v52, 2  ;;  %v4782_v13 = vmax.f32 %v4686_v61, %v4781_v2  ;;  %v4794_v14 = vmax.f32 %v4125_v62, %v4793_v12  ;;  %v4805_v16 = vrot.slane %v4690_v41, 4 }
 0x284   : > { %v4766_v18 = vmax.f32 %v4764_v43, %v4765_v9  ;;  %v4777_v57 = vrot.slane %v4776_v6, 2  ;;  %v4789_v47 = vrot.slane %v4788_v10, 2  ;;  %v4800_v45 = vmax.f32 %v4688_v53, %v4799_v11 }
 0x285   : > { %v4772_v22 = vmax.f32 %v4770_v52, %v4771_v7  ;;  %v4783_v21 = vrot.slane %v4782_v13, 2  ;;  %v4795_v23 = vrot.slane %v4794_v14, 2  ;;  %v4806_v36 = vmax.f32 %v4690_v41, %v4805_v16  ;;  %v4129_v25 = vpop.f32.mrb[4].mxu0 }
 0x286   : > { %v4790_v48 = vmax.f32 %v4788_v10, %v4789_v47  ;;  %v4801_v26 = vrot.slane %v4800_v45, 2  ;;  %v4131_v35 = vpop.f32.mrb[5].mxu0  ;;  %v4767_v28 = vrot.slane %v4766_v18, 1  ;;  %v10364_v1 = vmax.f32 %v4776_v6, %v4777_v57 }
 0x287   : > { %v4796_v5 = vmax.f32 %v4794_v14, %v4795_v23  ;;  %v4807_v30 = vrot.slane %v4806_v36, 2  ;;  %v4694_v32 = vpop.f32.mrb[4].mxu1  ;;  %v4133_v31 = vpop.f32.mrb[6].mxu0  ;;  %v4773_v56 = vrot.slane %v4772_v22, 1  ;;  %v10366_v0 = vmax.f32 %v4782_v13, %v4783_v21 }
 0x288   : > { %v4696_v33 = vpop.f32.mrb[5].mxu1  ;;  %v4135_v37 = vpop.f32.mrb[7].mxu0  ;;  %v4791_v38 = vrot.slane %v4790_v48, 1  ;;  %v4802_v63 = vmax.f32 %v4800_v45, %v4801_v26  ;;  %v4811_v42 = vrot.slane %v4129_v25, 4  ;;  %v10368_v46 = vmax.f32 %v4766_v18, %v4767_v28 }
 0x289   : > { %v4698_v40 = vpop.f32.mrb[6].mxu1  ;;  %v4797_v39 = vrot.slane %v4796_v5, 1  ;;  %v4779_v44 = vrot.slane %v10364_v1, 1  ;;  %v4808_v34 = vmax.f32 %v4806_v36, %v4807_v30  ;;  %v4823_v24 = vrot.slane %v4694_v32, 4 }
 0x28a   : > { %v4700_v19 = vpop.f32.mrb[7].mxu1  ;;  %11618 = vst [vmem:[#allocation16_spill] sm:$0xff] %v10368_v46  ;;  %v10371_v15 = vmax.f32 %v4772_v22, %v4773_v56  ;;  %v4785_v49 = vrot.slane %v10366_v0, 1  ;;  %v4812_v50 = vmax.f32 %v4129_v25, %v4811_v42  ;;  %v4817_v51 = vrot.slane %v4131_v35, 4 }
 0x28b   : > { %v10374_v54 = vmax.f32 %v4790_v48, %v4791_v38  ;;  %v4803_v20 = vrot.slane %v4802_v63, 1  ;;  %v4824_v55 = vmax.f32 %v4694_v32, %v4823_v24  ;;  %v4829_v17 = vrot.slane %v4696_v33, 4 }
 0x28c   : > { %11619 = vst [vmem:[#allocation17_spill] sm:$0xff] %v10371_v15  ;;  %v10378_v43 = vmax.f32 %v4796_v5, %v4797_v39  ;;  %v4813_v60 = vrot.slane %v4812_v50, 2  ;;  %v4818_v61 = vmax.f32 %v4131_v35, %v4817_v51  ;;  %v4835_v29 = vrot.slane %v4133_v31, 4 }
 0x28d   : > { %11620 = vst [vmem:[#allocation18_spill] sm:$0xff] %v10374_v54  ;;  %v10376_v59 = vpop.f32.mrb[8].mxu0  ;;  %v4809_v52 = vrot.slane %v4808_v34, 1  ;;  %v4825_v2 = vrot.slane %v4824_v55, 2  ;;  %v4830_v53 = vmax.f32 %v4696_v33, %v4829_v17  ;;  %v4847_v12 = vrot.slane %v4698_v40, 4 }
 0x28e   : > { %11621 = vst [vmem:[#allocation19_spill] sm:$0xff] %v10378_v43  ;;  %v10380_v62 = vpop.f32.mrb[9].mxu0  ;;  %v4814_v10 = vmax.f32 %v4812_v50, %v4813_v60  ;;  %v4819_v11 = vrot.slane %v4818_v61, 2  ;;  %v4836_v41 = vmax.f32 %v4133_v31, %v4835_v29  ;;  %v4841_v7 = vrot.slane %v4135_v37, 4 }
 0x28f   : > { %v4704_v9 = vpop.f32.mrb[8].mxu1  ;;  %v10382_v6 = vpop.f32.mrb[10].mxu0  ;;  %v4826_v16 = vmax.f32 %v4824_v55, %v4825_v2  ;;  %v4831_v18 = vrot.slane %v4830_v53, 2  ;;  %v4848_v57 = vmax.f32 %v4698_v40, %v4847_v12  ;;  %v4853_v47 = vrot.slane %v4700_v19, 4 }
 0x290   : > { %v10384_v13 = vpop.f32.mrb[9].mxu1  ;;  %v10386_v14 = vpop.f32.mrb[11].mxu0  ;;  %v4815_v22 = vrot.slane %v4814_v10, 1  ;;  %v4820_v21 = vmax.f32 %v4818_v61, %v4819_v11  ;;  %v4837_v23 = vrot.slane %v4836_v41, 2  ;;  %v4842_v36 = vmax.f32 %v4135_v37, %v4841_v7 }
 0x291   : > { %v10388_v45 = vpop.f32.mrb[10].mxu1  ;;  %v4827_v48 = vrot.slane %v4826_v16, 1  ;;  %v4832_v26 = vmax.f32 %v4830_v53, %v4831_v18  ;;  %v4849_v35 = vrot.slane %v4848_v57, 2  ;;  %v4854_v28 = vmax.f32 %v4700_v19, %v4853_v47 }
 0x292   : > { %v10390_v25 = vpop.f32.mrb[11].mxu1  ;;  %v10392_v5 = vmax.f32 %v4802_v63, %v4803_v20  ;;  %v10394_v30 = vmax.f32 %v4808_v34, %v4809_v52  ;;  %v4821_v32 = vrot.slane %v4820_v21, 1  ;;  %v4843_v31 = vrot.slane %v4842_v36, 2 }
 0x293   : > { %v10396_v56 = vmax.f32 %v4814_v10, %v4815_v22  ;;  %v10398_v33 = vmax.f32 %v4826_v16, %v4827_v48  ;;  %v4838_v38 = vmax.f32 %v4836_v41, %v4837_v23  ;;  %v4855_v40 = vrot.slane %v4854_v28, 2 }
 0x294   : > { %11622 = vst [vmem:[#allocation20_spill] sm:$0xff] %v10392_v5  ;;  %11623 = vst [vmem:[#allocation21_spill] sm:$0xff] %v10394_v30  ;;  %v10403_v37 = vmax.f32 %v10364_v1, %v4779_v44  ;;  %v10406_v42 = vmax.f32 %v10366_v0, %v4785_v49  ;;  %v4833_v63 = vrot.slane %v4832_v26, 1  ;;  %v4850_v19 = vmax.f32 %v4848_v57, %v4849_v35 }
 0x295   : > { %11624 = vst [vmem:[#allocation22_spill] sm:$0xff] %v10396_v56  ;;  %11625 = vst [vmem:[#allocation23_spill] sm:$0xff] %v10398_v33  ;;  %v10400_v39 = vpop.f32.mrb[12].mxu0  ;;  %v5212_v24 = vsel %vm5211_vm0, %v10374_v54, %v10368_v46  ;;  %v5225_v50 = vsel %vm5211_vm0, %v10378_v43, %v10371_v15  ;;  %v10416_v51 = vmax.f32 %v4820_v21, %v4821_v32  ;;  %v4859_v17 = vrot.slane %v10376_v59, 4 }
 0x296   : > { %11626 = vst [vmem:[#allocation24_spill] sm:$0xff] %v10403_v37  ;;  %11627 = vst [vmem:[#allocation25_spill] sm:$0xff] %v10406_v42  ;;  %v10408_v34 = vpop.f32.mrb[13].mxu0  ;;  %v4844_v20 = vmax.f32 %v4842_v36, %v4843_v31  ;;  %v5232_v0 = vsel %vm5211_vm0, %v10392_v5, %v10403_v37  ;;  %v5239_v49 = vsel %vm5211_vm0, %v10394_v30, %v10406_v42  ;;  %v4839_v2 = vrot.slane %v4838_v38, 1 }
 0x297   : > { %11628 = vst [vmem:[#allocation26_spill] sm:$0xff] %v10416_v51  ;;  %v10418_v1 = vpop.f32.mrb[12].mxu1  ;;  %v10420_v44 = vpop.f32.mrb[14].mxu0  ;;  %v4856_v55 = vmax.f32 %v4854_v28, %v4855_v40  ;;  %v5214_v29 = vsel %vm5213_vm1, %v10396_v56, %v5212_v24  ;;  %v5233_v52 = vsel %vm5213_vm1, %v10398_v33, %v5232_v0  ;;  %v4871_v53 = vrot.slane %v4704_v9, 4 }
 0x298   : > { %v10429_v60 = vpop.f32.mrb[13].mxu1  ;;  %v10431_v61 = vpop.f32.mrb[15].mxu0  ;;  %v10439_v10 = vmax.f32 %v4832_v26, %v4833_v63  ;;  %v4851_v11 = vrot.slane %v4850_v19, 1  ;;  %v4860_v41 = vmax.f32 %v10376_v59, %v4859_v17  ;;  %v4865_v7 = vrot.slane %v10380_v62, 4 }
 0x299   : > { %v10437_v12 = vpop.f32.mrb[14].mxu1  ;;  %v5226_v18 = vsel %vm5213_vm1, %v10416_v51, %v5225_v50  ;;  %v4845_v57 = vrot.slane %v4844_v20, 1  ;;  %v4872_v47 = vmax.f32 %v4704_v9, %v4871_v53  ;;  %v4877_v22 = vrot.slane %v10384_v13, 4 }
 0x29a   : > { %11629 = vst [vmem:[#allocation27_spill] sm:$0xff] %v10439_v10  ;;  %v10443_v16 = vpop.f32.mrb[15].mxu1  ;;  %v4857_v21 = vrot.slane %v4856_v55, 1  ;;  %v4861_v23 = vrot.slane %v4860_v41, 2  ;;  %v4866_v36 = vmax.f32 %v10380_v62, %v4865_v7  ;;  %v4883_v48 = vrot.slane %v10382_v6, 4 }
 0x29b   : > { %v10450_v26 = vmax.f32 %v4838_v38, %v4839_v2  ;;  %v4873_v59 = vrot.slane %v4872_v47, 2  ;;  %v4878_v35 = vmax.f32 %v10384_v13, %v4877_v22  ;;  %v4895_v28 = vrot.slane %v10388_v45, 4 }
 0x29c   : > { %v4862_v31 = vmax.f32 %v4860_v41, %v4861_v23  ;;  %v4867_v40 = vrot.slane %v4866_v36, 2  ;;  %v4884_v9 = vmax.f32 %v10382_v6, %v4883_v48  ;;  %v4889_v63 = vrot.slane %v10386_v14, 4 }
 0x29d   : > { %11630 = vst [vmem:[#allocation28_spill] sm:$0xff] %v10450_v26  ;;  %v10454_v32 = vpop.f32.mrb[16].mxu0  ;;  %v10460_v62 = vmax.f32 %v4850_v19, %v4851_v11  ;;  %v4879_v50 = vrot.slane %v4878_v35, 2  ;;  %v4896_v38 = vmax.f32 %v10388_v45, %v4895_v28  ;;  %v4901_v0 = vrot.slane %v10390_v25, 4 }
 0x29e   : > { %v10458_v24 = vpop.f32.mrb[17].mxu0  ;;  %v5240_v2 = vsel %vm5213_vm1, %v10439_v10, %v5239_v49  ;;  %v10470_v53 = vmax.f32 %v4844_v20, %v4845_v57  ;;  %v10472_v6 = vmax.f32 %v4856_v55, %v4857_v21  ;;  %v4890_v41 = vmax.f32 %v10386_v14, %v4889_v63 }
 0x29f   : > { %11631 = vst [vmem:[#allocation29_spill] sm:$0xff] %v10460_v62  ;;  %v10464_v13 = vpop.f32.mrb[16].mxu1  ;;  %v10466_v17 = vpop.f32.mrb[18].mxu0  ;;  %v4863_v45 = vrot.slane %v4862_v31, 1  ;;  %v4874_v7 = vmax.f32 %v4872_v47, %v4873_v59  ;;  %v4885_v22 = vrot.slane %v4884_v9, 2  ;;  %v4902_v23 = vmax.f32 %v10390_v25, %v4901_v0 }
 0x2a0   : > { %11632 = vst [vmem:[#allocation30_spill] sm:$0xff] %v10470_v53  ;;  %11633 = vst [vmem:[#allocation31_spill] sm:$0xff] %v10472_v6  ;;  %v10475_v19 = vpop.f32.mrb[17].mxu1  ;;  %v10477_v11 = vpop.f32.mrb[19].mxu0  ;;  %v4868_v28 = vmax.f32 %v4866_v36, %v4867_v40  ;;  %v4880_v3 = vmax.f32 %v4878_v35, %v4879_v50  ;;  %v10486_v20 = vsel %vm5215_vm2, %v10450_v26, %v5214_v29  ;;  %v4897_v55 = vrot.slane %v4896_v38, 2 }
 0x2a1   : > { %v10480_v48 = vpop.f32.mrb[18].mxu1  ;;  %v10490_v14 = vsel %vm5215_vm2, %v10460_v62, %v5233_v52  ;;  %v4891_v57 = vrot.slane %v4890_v41, 2  ;;  %v10494_v47 = vsel %vm5215_vm2, %v10470_v53, %v5226_v18  ;;  %v10498_v25 = vsel %vm5215_vm2, %v10472_v6, %v5240_v2 }
 0x2a2   : > { %v10482_v49 = vpop.f32.mrb[19].mxu1  ;;  %11634 = vst [vmem:[#allocation32_spill] sm:$0xff] %v10498_v25  ;;  %v4903_v21 = vrot.slane %v4902_v23, 2  ;;  %v4907_v36 = vrot.slane %v10400_v39, 4  ;;  %v10501_v59 = vmax.f32 %v4862_v31, %v4863_v45  ;;  %v4875_v29 = vrot.slane %v4874_v7, 1 }
 0x2a3   : > { %v4886_v35 = vmax.f32 %v4884_v9, %v4885_v22  ;;  %v4919_v52 = vrot.slane %v10418_v1, 4  ;;  %v4869_v63 = vrot.slane %v4868_v28, 1  ;;  %v4881_v50 = vrot.slane %v4880_v3, 1 }
 0x2a4   : > { %11635 = vst [vmem:[#allocation33_spill] sm:$0xff] %v10501_v59  ;;  %v4908_v18 = vmax.f32 %v10400_v39, %v4907_v36  ;;  %v4913_v0 = vrot.slane %v10408_v34, 4  ;;  %v4898_v2 = vmax.f32 %v4896_v38, %v4897_v55  ;;  %v4892_v8 = vmax.f32 %v4890_v41, %v4891_v57 }
 0x2a5   : > { %v10504_v40 = vpop.f32.mrb[20].mxu0  ;;  %v4920_v4 = vmax.f32 %v10418_v1, %v4919_v52  ;;  %v4925_v31 = vrot.slane %v10429_v60, 4  ;;  %v4904_v22 = vmax.f32 %v4902_v23, %v4903_v21  ;;  %v4931_v39 = vrot.slane %v10420_v44, 4 }
 0x2a6   : > { %v10508_v27 = vpop.f32.mrb[21].mxu0  ;;  %v4909_v58 = vrot.slane %v4908_v18, 2  ;;  %v4914_v26 = vmax.f32 %v10408_v34, %v4913_v0  ;;  %v4887_v38 = vrot.slane %v4886_v35, 1  ;;  %v4943_v55 = vrot.slane %v10437_v12, 4 }
 0x2a7   : > { %v10512_v45 = vpop.f32.mrb[20].mxu1  ;;  %v10514_v9 = vpop.f32.mrb[22].mxu0  ;;  %v4921_v41 = vrot.slane %v4920_v4, 2  ;;  %v4926_v1 = vmax.f32 %v10429_v60, %v4925_v31  ;;  %v4932_v23 = vmax.f32 %v10420_v44, %v4931_v39  ;;  %v4937_v34 = vrot.slane %v10431_v61, 4 }
 0x2a8   : > { %v10518_v36 = vpop.f32.mrb[21].mxu1  ;;  %v10520_v6 = vpop.f32.mrb[23].mxu0  ;;  %v4910_v52 = vmax.f32 %v4908_v18, %v4909_v58  ;;  %v4915_v10 = vrot.slane %v4914_v26, 2  ;;  %v4899_v0 = vrot.slane %v4898_v2, 1  ;;  %v4944_v54 = vmax.f32 %v10437_v12, %v4943_v55 }
 0x2a9   : > { %v10524_v57 = vpop.f32.mrb[22].mxu1  ;;  %v4927_v56 = vrot.slane %v4926_v1, 2  ;;  %v4949_v30 = vrot.slane %v10443_v16, 4  ;;  %v4893_v42 = vrot.slane %v4892_v8, 1  ;;  %v4905_v60 = vrot.slane %v4904_v22, 1 }
 0x2aa   : > { %v10528_v21 = vpop.f32.mrb[23].mxu1  ;;  %v4933_v31 = vrot.slane %v4932_v23, 2  ;;  %v4938_v46 = vmax.f32 %v10431_v61, %v4937_v34  ;;  %v10533_v62 = vmax.f32 %v4874_v7, %v4875_v29  ;;  %v4911_v58 = vrot.slane %v4910_v52, 1 }
 0x2ab   : > { %v10535_v18 = vmax.f32 %v4920_v4, %v4921_v41  ;;  %v4945_v44 = vrot.slane %v4944_v54, 2  ;;  %v10539_v33 = vmax.f32 %v4868_v28, %v4869_v63  ;;  %v10541_v5 = vmax.f32 %v4880_v3, %v4881_v50 }
 0x2ac   : > { %v10543_v12 = vmax.f32 %v4914_v26, %v4915_v10  ;;  %v10545_v55 = vmax.f32 %v4926_v1, %v4927_v56  ;;  %v10549_v15 = vmax.f32 %v4886_v35, %v4887_v38  ;;  %v10551_v61 = vmax.f32 %v4898_v2, %v4899_v0 }
 0x2ad   : > { %v10537_v39 = vpop.f32.mrb[24].mxu0  ;;  %11636 = vst [vmem:[#allocation34_spill] sm:$0xff] %v10541_v5  ;;  %v10553_v7 = vmax.f32 %v4932_v23, %v4933_v31  ;;  %v4950_v4 = vmax.f32 %v10443_v16, %v4949_v30  ;;  %v10560_v3 = vmax.f32 %v4892_v8, %v4893_v42  ;;  %v10562_v10 = vmax.f32 %v4904_v22, %v4905_v60 }
 0x2ae   : > { %v10547_v37 = vpop.f32.mrb[25].mxu0  ;;  %11637 = vst [vmem:[#allocation35_spill] sm:$0xff] %v10549_v15  ;;  %v4939_v56 = vrot.slane %v4938_v46, 2  ;;  %v4955_v26 = vrot.slane %v10454_v32, 4  ;;  %v10569_v50 = vmax.f32 %v4910_v52, %v4911_v58  ;;  %v4923_v2 = vrot.slane %v10535_v18, 1 }
 0x2af   : > { %v10556_v29 = vpop.f32.mrb[24].mxu1  ;;  %v10558_v28 = vpop.f32.mrb[26].mxu0  ;;  %11638 = vst [vmem:[#allocation36_spill] sm:$0xff] %v10562_v10  ;;  %v4946_v30 = vmax.f32 %v4944_v54, %v4945_v44  ;;  %v4967_v16 = vrot.slane %v10464_v13, 4  ;;  %v4917_v8 = vrot.slane %v10543_v12, 1  ;;  %v4929_v42 = vrot.slane %v10545_v55, 1 }
 0x2b0   : > { %v10565_v63 = vpop.f32.mrb[25].mxu1  ;;  %v10567_v35 = vpop.f32.mrb[27].mxu0  ;;  %11639 = vst [vmem:[#allocation37_spill] sm:$0xff] %v10569_v50  ;;  %v4956_v22 = vmax.f32 %v10454_v32, %v4955_v26  ;;  %v4961_v41 = vrot.slane %v10458_v24, 4  ;;  %v4935_v52 = vrot.slane %v10553_v7, 1  ;;  %v4951_v23 = vrot.slane %v4950_v4, 2 }
 0x2b1   : > { %v10573_v38 = vpop.f32.mrb[26].mxu1  ;;  %v4968_v34 = vmax.f32 %v10464_v13, %v4967_v16  ;;  %v4973_v54 = vrot.slane %v10475_v19, 4  ;;  %v4940_v0 = vmax.f32 %v4938_v46, %v4939_v56  ;;  %v4979_v58 = vrot.slane %v10466_v17, 4 }
 0x2b2   : > { %v10579_v1 = vpop.f32.mrb[27].mxu1  ;;  %v4957_v60 = vrot.slane %v4956_v22, 2  ;;  %v4962_v31 = vmax.f32 %v10458_v24, %v4961_v41  ;;  %v4947_v32 = vrot.slane %v4946_v30, 1  ;;  %v4991_v53 = vrot.slane %v10480_v48, 4 }
 0x2b3   : > { %v4969_v44 = vrot.slane %v4968_v34, 2  ;;  %v4974_v26 = vmax.f32 %v10475_v19, %v4973_v54  ;;  %v4980_v43 = vmax.f32 %v10466_v17, %v4979_v58  ;;  %v4985_v46 = vrot.slane %v10477_v11, 4 }
 0x2b4   : > { %v4958_v13 = vmax.f32 %v4956_v22, %v4957_v60  ;;  %v4963_v16 = vrot.slane %v4962_v31, 2  ;;  %v10594_v24 = vmax.f32 %v4950_v4, %v4951_v23  ;;  %v4992_v10 = vmax.f32 %v10480_v48, %v4991_v53 }
 0x2b5   : > { %v10588_v51 = vpop.f32.mrb[28].mxu0  ;;  %v4970_v41 = vmax.f32 %v4968_v34, %v4969_v44  ;;  %v4997_v19 = vrot.slane %v10482_v49, 4  ;;  %v4975_v22 = vrot.slane %v4974_v26, 2  ;;  %v4981_v60 = vrot.slane %v4980_v43, 2 }
 0x2b6   : > { %11640 = vst [vmem:[#allocation38_spill] sm:$0xff] %v10588_v51  ;;  %v10592_v56 = vpop.f32.mrb[29].mxu0  ;;  %v4964_v51 = vmax.f32 %v4962_v31, %v4963_v16  ;;  %v4986_v17 = vmax.f32 %v10477_v11, %v4985_v46  ;;  %v10608_v4 = vmax.f32 %v10535_v18, %v4923_v2  ;;  %v4941_v23 = vrot.slane %v4940_v0, 1 }
 0x2b7   : > { %v10598_v54 = vpop.f32.mrb[28].mxu1  ;;  %v10600_v5 = vpop.f32.mrb[30].mxu0  ;;  %v4993_v53 = vrot.slane %v4992_v10, 2  ;;  %v4998_v48 = vmax.f32 %v10482_v49, %v4997_v19  ;;  %v10614_v44 = vmax.f32 %v10543_v12, %v4917_v8  ;;  %v10617_v31 = vmax.f32 %v10545_v55, %v4929_v42 }
 0x2b8   : > { %11641 = vst [vmem:[#allocation39_spill] sm:$0xff] %v10600_v5  ;;  %v10603_v58 = vpop.f32.mrb[29].mxu1  ;;  %v10605_v25 = vpop.f32.mrb[31].mxu0  ;;  %v4959_v11 = vrot.slane %v4958_v13, 1  ;;  %v4982_v16 = vmax.f32 %v4980_v43, %v4981_v60  ;;  %v10624_v18 = vmax.f32 %v4946_v30, %v4947_v32  ;;  %v4971_v2 = vrot.slane %v4970_v41, 1 }
 0x2b9   : > { %11642 = vst [vmem:[#allocation40_spill] sm:$0xff] %v10605_v25  ;;  %v10611_v34 = vpop.f32.mrb[30].mxu1  ;;  %v10622_v25 = vmax.f32 %v10553_v7, %v4935_v52  ;;  %v4987_v5 = vrot.slane %v4986_v17, 2  ;;  %v4965_v19 = vrot.slane %v4964_v51, 1  ;;  %v5015_v12 = vrot.slane %v10512_v45, 4 }
 0x2ba   : > { %11643 = vst [vmem:[#allocation41_spill] sm:$0xff] %v10611_v34  ;;  %v10619_v46 = vpop.f32.mrb[31].mxu1  ;;  %v4976_v34 = vmax.f32 %v4974_v26, %v4975_v22  ;;  %v10628_v8 = vmax.f32 %v4940_v0, %v4941_v23  ;;  %v4994_v55 = vmax.f32 %v4992_v10, %v4993_v53  ;;  %v4999_v42 = vrot.slane %v4998_v48, 2 }
 0x2bb   : > { %11644 = vst [vmem:[#allocation42_spill] sm:$0xff] %v10622_v25  ;;  %v5218_v43 = vsel %vm471_vm3, %v10501_v59, %v10486_v20  ;;  %v10633_v7 = vmax.f32 %v4958_v13, %v4959_v11  ;;  %v4983_v30 = vrot.slane %v4982_v16, 1  ;;  %v5016_v52 = vmax.f32 %v10512_v45, %v5015_v12 }
 0x2bc   : > { %v5220_v32 = vsel %vm5219_vm4, %v10549_v15, %v5218_v43  ;;  %v10638_v60 = vmax.f32 %v4970_v41, %v4971_v2  ;;  %v4988_v26 = vmax.f32 %v4986_v17, %v4987_v5  ;;  %v5003_v10 = vrot.slane %v10504_v40, 4 }
 0x2bd   : > { %11645 = vst [vmem:[#allocation43_spill] sm:$0xff] %v10633_v7  ;;  %v5222_v0 = vsel %vm5221_vm5, %v10569_v50, %v5220_v32  ;;  %v10643_v22 = vmax.f32 %v4964_v51, %v4965_v19  ;;  %v4977_v23 = vrot.slane %v4976_v34, 1  ;;  %v5017_v20 = vrot.slane %v5016_v52, 2 }
 0x2be   : > { %v5224_v13 = vsel %vm5223_vm7, %v10622_v25, %v5222_v0  ;;  %v4995_v53 = vrot.slane %v4994_v55, 1  ;;  %v5000_v45 = vmax.f32 %v4998_v48, %v4999_v42  ;;  %v5004_v41 = vmax.f32 %v10504_v40, %v5003_v10 }
 0x2bf   : > { %5282 = vrot.lane.b32.xlu0 %v5224_v13, %s8725_s12  ;;  %v5009_v5 = vrot.slane %v10508_v27, 4  ;;  %v10650_v17 = vmax.f32 %v4982_v16, %v4983_v30  ;;  %v5018_v11 = vmax.f32 %v5016_v52, %v5017_v20  ;;  %v5021_v51 = vrot.slane %v10518_v36, 4 }
 0x2c0   : > { %v5027_v2 = vrot.slane %v10514_v9, 4  ;;  %v4989_v19 = vrot.slane %v4988_v26, 1  ;;  %v5005_v12 = vrot.slane %v5004_v41, 2  ;;  %v5039_v48 = vrot.slane %v10524_v57, 4 }
 0x2c1   : > { %11646 = vst [vmem:[#allocation44_spill] sm:$0xff] %v10650_v17  ;;  %v5010_v43 = vmax.f32 %v10508_v27, %v5009_v5  ;;  %v5019_v42 = vrot.slane %v5018_v11, 1  ;;  %v5022_v32 = vmax.f32 %v10518_v36, %v5021_v51  ;;  %v5033_v0 = vrot.slane %v10520_v6, 4 }
 0x2c2   : > { %v5028_v40 = vmax.f32 %v10514_v9, %v5027_v2  ;;  %v5006_v16 = vmax.f32 %v5004_v41, %v5005_v12  ;;  %v5040_v52 = vmax.f32 %v10524_v57, %v5039_v48  ;;  %v5045_v10 = vrot.slane %v10528_v21, 4 }
 0x2c3   : > { %v5011_v30 = vrot.slane %v5010_v43, 2  ;;  %v10661_v20 = vmax.f32 %v4994_v55, %v4995_v53  ;;  %v5023_v13 = vrot.slane %v5022_v32, 2  ;;  %v5034_v27 = vmax.f32 %v10520_v6, %v5033_v0 }
 0x2c4   : > { %v5029_v49 = vrot.slane %v5028_v40, 2  ;;  %v5007_v5 = vrot.slane %v5006_v16, 1  ;;  %v5041_v50 = vrot.slane %v5040_v52, 2  ;;  %v5046_v36 = vmax.f32 %v10528_v21, %v5045_v10 }
 0x2c5   : > { %11647 = vst [vmem:[#allocation45_spill] sm:$0xff] %v10661_v20  ;;  %v5012_v25 = vmax.f32 %v5010_v43, %v5011_v30  ;;  %v5001_v9 = vrot.slane %v5000_v45, 1  ;;  %v5024_v51 = vmax.f32 %v5022_v32, %v5023_v13  ;;  %v5035_v41 = vrot.slane %v5034_v27, 2 }
 0x2c6   : > { %v5030_v2 = vmax.f32 %v5028_v40, %v5029_v49  ;;  %v10665_v12 = vmax.f32 %v4988_v26, %v4989_v19  ;;  %v10667_v57 = vmax.f32 %v5018_v11, %v5019_v42  ;;  %v5042_v48 = vmax.f32 %v5040_v52, %v5041_v50 }
 0x2c7   : > { %v5047_v55 = vrot.slane %v5046_v36, 2  ;;  %v10669_v53 = vmax.f32 %v5006_v16, %v5007_v5  ;;  %v5013_v15 = vrot.slane %v5012_v25, 1  ;;  %v5025_v59 = vrot.slane %v5024_v51, 1 }
 0x2c8   : > { %11648 = vst [vmem:[#allocation46_spill] sm:$0xff] %v10667_v57  ;;  %v5228_v6 = vsel %vm471_vm3, %v10539_v33, %v10494_v47  ;;  %v10674_v43 = vmax.f32 %v4976_v34, %v4977_v23  ;;  %v5246_v21 = vsel %vm5211_vm0, %v10650_v17, %v10633_v7  ;;  %v5031_v49 = vrot.slane %v5030_v2, 1 }
 0x2c9   : > { %11649 = vst [vmem:[#allocation47_spill] sm:$0xff] %v10669_v53  ;;  %v5036_v26 = vmax.f32 %v5034_v27, %v5035_v41  ;;  %v5260_v50 = vsel %vm5211_vm0, %v10661_v20, %v10638_v60  ;;  %v10682_v11 = vmax.f32 %v5000_v45, %v5001_v9  ;;  %v5043_v19 = vrot.slane %v5042_v48, 1 }
 0x2ca   : > { %11650 = vst [vmem:[#allocation48_spill] sm:$0xff] %v10674_v43  ;;  %v5229_v42 = vsel %vm5219_vm4, %v10560_v3, %v5228_v6  ;;  %v5253_v47 = vsel %vm5211_vm0, %v10665_v12, %v10643_v22  ;;  %v5261_v34 = vsel %vm5213_vm1, %v10667_v57, %v5260_v50  ;;  %v5048_v23 = vmax.f32 %v5046_v36, %v5047_v55 }
 0x2cb   : > { %11651 = vst [vmem:[#allocation49_spill] sm:$0xff] %v10682_v11  ;;  %v5230_v32 = vsel %vm5221_vm5, %v10614_v44, %v5229_v42  ;;  %v5247_v40 = vsel %vm5213_vm1, %v10669_v53, %v5246_v21  ;;  %v10695_v45 = vmax.f32 %v5012_v25, %v5013_v15  ;;  %v10697_v0 = vmax.f32 %v5024_v51, %v5025_v59 }
 0x2cc   : > { %v5231_v16 = vsel %vm5223_vm7, %v10628_v8, %v5230_v32  ;;  %v10701_v30 = vmax.f32 %v5030_v2, %v5031_v49  ;;  %v5037_v52 = vrot.slane %v5036_v26, 1  ;;  %v5063_v10 = vrot.slane %v10556_v29, 4 }
 0x2cd   : > { %11652 = vst [vmem:[#allocation50_spill] sm:$0xff] %v10697_v0  ;;  %5286 = vrot.lane.b32.xlu0 %v5231_v16, %s8725_s12  ;;  %v5235_v13 = vsel %vm471_vm3, %v10533_v62, %v10490_v14  ;;  %v10708_v27 = vmax.f32 %v5042_v48, %v5043_v19  ;;  %v5051_v25 = vrot.slane %v10537_v39, 4  ;;  %v5057_v59 = vrot.slane %v10547_v37, 4 }
 0x2ce   : > { %11653 = vst [vmem:[#allocation51_spill] sm:$0xff] %v10701_v30  ;;  %v5236_v15 = vsel %vm5219_vm4, %v10551_v61, %v5235_v13  ;;  %v5049_v5 = vrot.slane %v5048_v23, 1  ;;  %v5064_v36 = vmax.f32 %v10556_v29, %v5063_v10  ;;  %v5069_v51 = vrot.slane %v10565_v63, 4 }
 0x2cf   : > { %11654 = vst [vmem:[#allocation52_spill] sm:$0xff] %v10708_v27  ;;  %v5237_v9 = vsel %vm5221_vm5, %v10608_v4, %v5236_v15  ;;  %v5052_v2 = vmax.f32 %v10537_v39, %v5051_v25  ;;  %v5058_v41 = vmax.f32 %v10547_v37, %v5057_v59  ;;  %v5075_v48 = vrot.slane %v10558_v28, 4 }
 0x2d0   : > { %v5238_v14 = vsel %vm5223_vm7, %v10624_v18, %v5237_v9  ;;  %v5065_v55 = vrot.slane %v5064_v36, 2  ;;  %v5070_v6 = vmax.f32 %v10565_v63, %v5069_v51  ;;  %v5087_v29 = vrot.slane %v10573_v38, 4 }
 0x2d1   : > { %5290 = vrot.lane.b32.xlu0 %v5238_v14, %s8725_s12  ;;  %v5081_v21 = vrot.slane %v10567_v35, 4  ;;  %v5053_v49 = vrot.slane %v5052_v2, 2  ;;  %v5059_v50 = vrot.slane %v5058_v41, 2  ;;  %v5076_v19 = vmax.f32 %v10558_v28, %v5075_v48 }
 0x2d2   : > { %v5093_v42 = vrot.slane %v10579_v1, 4  ;;  %v5066_v39 = vmax.f32 %v5064_v36, %v5065_v55  ;;  %v5071_v32 = vrot.slane %v5070_v6, 2  ;;  %v5088_v37 = vmax.f32 %v10573_v38, %v5087_v29 }
 0x2d3   : > { %v5082_v16 = vmax.f32 %v10567_v35, %v5081_v21  ;;  %v10731_v10 = vmax.f32 %v5036_v26, %v5037_v52  ;;  %v5054_v13 = vmax.f32 %v5052_v2, %v5053_v49  ;;  %v5060_v63 = vmax.f32 %v5058_v41, %v5059_v50  ;;  %v11657_v21 = vld [vmem:[#allocation34_spill] sm:$0xff] }
 0x2d4   : > { %v5077_v15 = vrot.slane %v5076_v19, 2  ;;  %v5254_v25 = vsel %vm5213_vm1, %v10695_v45, %v5253_v47  ;;  %v5067_v59 = vrot.slane %v5066_v39, 1  ;;  %v10735_v9 = vmax.f32 %v5070_v6, %v5071_v32 }
 0x2d5   : > { %v5094_v28 = vmax.f32 %v10579_v1, %v5093_v42  ;;  %v11655_v36 = vrot.slane %v10594_v24, 1  ;;  %v5267_v35 = vsel %vm5211_vm0, %v10682_v11, %v10674_v43  ;;  %v5089_v38 = vrot.slane %v5088_v37, 2 }
 0x2d6   : > { %v5083_v26 = vrot.slane %v5082_v16, 2  ;;  %v10748_v52 = vsel %vm5213_vm1, %v10697_v0, %v5267_v35  ;;  %v10752_v47 = vsel %vm5215_vm2, %v10701_v30, %v5247_v40  ;;  %v5055_v1 = vrot.slane %v5054_v13, 1  ;;  %v11656_v40 = vld [vmem:[#allocation32_spill] sm:$0xff] }
 0x2d7   : > { %v10741_v51 = vmax.f32 %v10594_v24, %v11655_v36  ;;  %v5061_v14 = vrot.slane %v5060_v63, 1  ;;  %v10756_v24 = vsel %vm5215_vm2, %v10708_v27, %v5261_v34  ;;  %v10760_v2 = vsel %vm5215_vm2, %v10731_v10, %v5254_v25  ;;  %v11658_v34 = vld [vmem:[#allocation36_spill] sm:$0xff]  ;;  %v11659_v36 = vld [vmem:[#allocation38_spill] sm:$0xff] }
 0x2d8   : > { %v10762_v41 = vmax.f32 %v5048_v23, %v5049_v5  ;;  %v5078_v48 = vmax.f32 %v5076_v19, %v5077_v15  ;;  %v10764_v55 = vmax.f32 %v5066_v39, %v5067_v59  ;;  %v5073_v6 = vrot.slane %v10735_v9, 1  ;;  %v11660_v59 = vld [vmem:[#allocation39_spill] sm:$0xff] }
 0x2d9   : > { %v5095_v29 = vrot.slane %v5094_v28, 2  ;;  %v5242_v49 = vsel %vm471_vm3, %v11657_v21, %v11656_v40  ;;  %v5090_v50 = vmax.f32 %v5088_v37, %v5089_v38  ;;  %v5084_v42 = vmax.f32 %v5082_v16, %v5083_v26  ;;  %v11661_v26 = vld [vmem:[#allocation41_spill] sm:$0xff] }
 0x2da   : > { %v5243_v32 = vsel %vm5219_vm4, %v11658_v34, %v5242_v49  ;;  %v5099_v25 = vrot.slane %v11659_v36, 4  ;;  %v10773_v35 = vmax.f32 %v5054_v13, %v5055_v1  ;;  %v10775_v23 = vmax.f32 %v5060_v63, %v5061_v14  ;;  %v11662_v49 = vld [vmem:[#allocation40_spill] sm:$0xff] }
 0x2db   : > { %v5244_v5 = vsel %vm5221_vm5, %v10617_v31, %v5243_v32  ;;  %v5111_v19 = vrot.slane %v10598_v54, 4  ;;  %v5079_v39 = vrot.slane %v5078_v48, 1  ;;  %v5105_v16 = vrot.slane %v10592_v56, 4 }
 0x2dc   : > { %v5245_v15 = vsel %vm5223_vm7, %v10741_v51, %v5244_v5  ;;  %v5100_v37 = vmax.f32 %v11659_v36, %v5099_v25  ;;  %v5117_v63 = vrot.slane %v10603_v58, 4  ;;  %v5123_v38 = vrot.slane %v11660_v59, 4 }
 0x2dd   : > { %5294 = vrot.lane.b32.xlu0 %v5245_v15, %s8725_s12  ;;  %v5112_v13 = vmax.f32 %v10598_v54, %v5111_v19  ;;  %v5135_v1 = vrot.slane %v11661_v26, 4  ;;  %v5106_v40 = vmax.f32 %v10592_v56, %v5105_v16  ;;  %v5129_v32 = vrot.slane %v11662_v49, 4 }
 0x2de   : > { %v5101_v14 = vrot.slane %v5100_v37, 2  ;;  %v5141_v5 = vrot.slane %v10619_v46, 4  ;;  %v5118_v25 = vmax.f32 %v10603_v58, %v5117_v63  ;;  %v5124_v15 = vmax.f32 %v11660_v59, %v5123_v38 }
 0x2df   : > { %v5113_v36 = vrot.slane %v5112_v13, 2  ;;  %v5136_v54 = vmax.f32 %v11661_v26, %v5135_v1  ;;  %v5107_v30 = vrot.slane %v5106_v40, 2  ;;  %v5130_v53 = vmax.f32 %v11662_v49, %v5129_v32 }
 0x2e0   : > { %v5102_v19 = vmax.f32 %v5100_v37, %v5101_v14  ;;  %v5142_v0 = vmax.f32 %v10619_v46, %v5141_v5  ;;  %v5085_v11 = vrot.slane %v5084_v42, 1  ;;  %v5125_v56 = vrot.slane %v5124_v15, 2 }
 0x2e1   : > { %v5114_v17 = vmax.f32 %v5112_v13, %v5113_v36  ;;  %v5137_v16 = vrot.slane %v5136_v54, 2  ;;  %v5108_v7 = vmax.f32 %v5106_v40, %v5107_v30  ;;  %v5119_v27 = vrot.slane %v5118_v25, 2 }
 0x2e2   : > { %v5103_v43 = vrot.slane %v5102_v19, 1  ;;  %v5131_v57 = vrot.slane %v5130_v53, 2  ;;  %v10797_v20 = vmax.f32 %v5078_v48, %v5079_v39  ;;  %v5091_v58 = vrot.slane %v5090_v50, 1 }
 0x2e3   : > { %v5096_v63 = vmax.f32 %v5094_v28, %v5095_v29  ;;  %v5126_v59 = vmax.f32 %v5124_v15, %v5125_v56  ;;  %v5109_v37 = vrot.slane %v5108_v7, 1  ;;  %v5143_v1 = vrot.slane %v5142_v0, 2 }
 0x2e4   : > { %v10799_v38 = vmax.f32 %v5102_v19, %v5103_v43  ;;  %v5132_v26 = vmax.f32 %v5130_v53, %v5131_v57  ;;  %v10801_v14 = vmax.f32 %v5084_v42, %v5085_v11  ;;  %v5115_v46 = vrot.slane %v5114_v17, 1 }
 0x2e5   : > { %v5127_v13 = vrot.slane %v5126_v59, 1  ;;  %v5138_v49 = vmax.f32 %v5136_v54, %v5137_v16  ;;  %v10803_v32 = vmax.f32 %v5108_v7, %v5109_v37  ;;  %v5120_v30 = vmax.f32 %v5118_v25, %v5119_v27  ;;  %v8538_v37 = vld [vmem:[%s11534_s3] ss:$8 sps:$4 sm:$0xff]  }
 0x2e6   : > { %v5133_v40 = vrot.slane %v5132_v26, 1  ;;  %v5249_v48 = vsel %vm471_vm3, %v10773_v35, %v10752_v47  ;;  %v10809_v28 = vmax.f32 %v10735_v9, %v5073_v6  ;;  %v5097_v43 = vrot.slane %v5096_v63, 1 }
 0x2e7   : > { %v10811_v29 = vmax.f32 %v5126_v59, %v5127_v13  ;;  %v5250_v57 = vsel %vm5219_vm4, %v10797_v20, %v5249_v48  ;;  %v10815_v53 = vmax.f32 %v5090_v50, %v5091_v58  ;;  %v5144_v11 = vmax.f32 %v5142_v0, %v5143_v1  ;;  %v8541_v1 = vld [vmem:[%s11534_s3 + $0x100] ss:$8 sps:$4 sm:$0xff]   ;;  %v8546_v13 = vld [vmem:[%s11534_s3 + $0x14] ss:$8 sps:$4 sm:$0xff]   ;;  %v8547_v48 = vld [vmem:[%s11534_s3 + $0x110] ss:$8 sps:$4 sm:$0xff]  }
 0x2e8   : > { %v5251_v7 = vsel %vm5221_vm5, %v10799_v38, %v5250_v57  ;;  %v5256_v27 = vsel %vm471_vm3, %v10775_v23, %v10760_v2  ;;  %v5139_v47 = vrot.slane %v5138_v49, 1  ;;  %v10822_v42 = vmax.f32 %v5132_v26, %v5133_v40  ;;  %v8540_v26 = vld [vmem:[%s11534_s3 + $0x4] ss:$8 sps:$4 sm:$0xff]  }
 0x2e9   : > { %v5252_v9 = vsel %vm5223_vm7, %v10811_v29, %v5251_v7  ;;  %v5257_v6 = vsel %vm5219_vm4, %v10801_v14, %v5256_v27  ;;  %v10828_v39 = vmax.f32 %v5114_v17, %v5115_v46  ;;  %v5121_v50 = vrot.slane %v5120_v30, 1  ;;  %v8543_v46 = vld [vmem:[%s11534_s3 + $0x104] ss:$8 sps:$4 sm:$0xff]   ;;  %6560 = vmatprep.subr.bf16.mxu1 %v8540_v26 }
 0x2ea   : > { %5284 = vrot.lane.b32.xlu1 %v5252_v9, %s8725_s12  ;;  %v5258_v0 = vsel %vm5221_vm5, %v10803_v32, %v5257_v6  ;;  %v5263_v2 = vsel %vm471_vm3, %v10764_v55, %v10756_v24  ;;  %v5269_v5 = vsel %vm5215_vm2, %v10762_v41, %v10748_v52  ;;  %v10839_v36 = vmax.f32 %v5096_v63, %v5097_v43  ;;  %v8552_v43 = vld [vmem:[%s11534_s3 + $0x24] ss:$8 sps:$4 sm:$0xff]  }
 0x2eb   : > { %v10841_v25 = vmax.f32 %v5138_v49, %v5139_v47  ;;  %v5145_v17 = vrot.slane %v5144_v11, 1  ;;  %v5259_v15 = vsel %vm5223_vm7, %v10822_v42, %v5258_v0  ;;  %v5264_v54 = vsel %vm5219_vm4, %v10815_v53, %v5263_v2  ;;  %v8549_v49 = vld [vmem:[%s11534_s3 + $0x114] ss:$8 sps:$4 sm:$0xff]   ;;  %6561 = vmatpush1.bf16.msra.mxu1 %v8538_v37  ;;  %6603 = vmatprep.subr.bf16.mxu0 %v8543_v46  ;;  %v8555_v57 = vld [vmem:[%s11534_s3 + $0x124] ss:$8 sps:$4 sm:$0xff]  }
 0x2ec   : > { %v10847_v19 = vmax.f32 %v5120_v30, %v5121_v50  ;;  %v5265_v24 = vsel %vm5221_vm5, %v10828_v39, %v5264_v54  ;;  %v5270_v52 = vsel %vm471_vm3, %v10809_v28, %v5269_v5  ;;  %v8544_v30 = vld [vmem:[%s11534_s3 + $0x10] ss:$8 sps:$4 sm:$0xff]   ;;  %v11591_v40 = vlaneseq  ;;  %6604 = vmatpush1.bf16.msra.mxu0 %v8541_v1  ;;  %6562 = vmatprep.subr.bf16.mxu1 %v8546_v13  ;;  %v8553_v47 = vld [vmem:[%s11534_s3 + $0x120] ss:$8 sps:$4 sm:$0xff]  }
 0x2ed   : > { %v10854_v56 = vmax.f32 %v5144_v11, %v5145_v17  ;;  %v5266_v16 = vsel %vm5223_vm7, %v10841_v25, %v5265_v24  ;;  %v5271_v58 = vsel %vm5219_vm4, %v10839_v36, %v5270_v52  ;;  %6605 = vmatprep.subr.bf16.mxu0 %v8549_v49  ;;  %v8550_v11 = vld [vmem:[%s11534_s3 + $0x20] ss:$8 sps:$4 sm:$0xff]   ;;  %v11666_v46 = vld [vmem:[#allocation17_spill] sm:$0xff] }
 0x2ee   : > { %5288 = vrot.lane.b32.xlu1 %v5259_v15, %s8725_s12  ;;  %v5272_v63 = vsel %vm5221_vm5, %v10847_v19, %v5271_v58  ;;  %v10902_v27 = vand.u32 127, %v11591_v40  ;;  %v11663_v24 = vld [vmem:[#allocation19_spill] sm:$0xff] }
 0x2ef   : > { %v5273_v59 = vsel %vm5223_vm7, %v10854_v56, %v5272_v63  ;;  %6563 = vmatpush1.bf16.msra.mxu1 %v8544_v30  ;;  %v11665_v63 = vld [vmem:[#allocation30_spill] sm:$0xff] }
 0x2f0   : > { %6606 = vmatpush1.bf16.msra.mxu0 %v8547_v48  ;;  %6564 = vmatprep.subr.bf16.mxu1 %v8552_v43  ;;  %vm5300_vm8 = vcmp.lt.s32.totalorder %v10902_v27, 64 }
 0x2f1   : > { %6607 = vmatprep.subr.bf16.mxu0 %v8555_v57 }
 0x2f2   : > { %5292 = vrot.lane.b32.xlu1 %v5266_v16, %s8725_s12  ;;  %v11664_v16 = vld [vmem:[#allocation26_spill] sm:$0xff] }
 0x2f3   : > { %6565 = vmatpush1.bf16.msra.mxu1 %v8550_v11 }
 0x2f4   : > { %6608 = vmatpush1.bf16.msra.mxu0 %v8553_v47 }
 0x2f6   : > { %5296 = vrot.lane.b32.xlu1 %v5273_v59, %s8725_s12 }
 0x331   : > { %v10899_v7 = vpop.permute.xlu0 %5282 }
 0x33f   : > { %v5287_v9 = vpop.permute.xlu0 %5286 }
 0x340   : > { %v5305_v6 = vsel %vm5300_vm8, %v10899_v7, %v5287_v9 }
 0x341   : > { %v5318_v50 = vrot.slane %v5305_v6, 1  ;;  %v5322_v0 = vrot.slane %v5305_v6, 2  ;;  %v5326_v2 = vrot.slane %v5305_v6, 3  ;;  %v5330_v5 = vrot.slane %v5305_v6, 4 }
 0x342   : > { %v5334_v17 = vrot.slane %v5305_v6, 5  ;;  %v5338_v15 = vrot.slane %v5305_v6, 6  ;;  %v5342_v54 = vrot.slane %v5305_v6, 7  ;;  %v5438_v13 = vmax.f32 %v11666_v46, %v5305_v6 }
 0x343   : > { %v5442_v52 = vmax.f32 %v11663_v24, %v5318_v50  ;;  %v5446_v58 = vmax.f32 %v11664_v16, %v5322_v0  ;;  %v5450_v59 = vmax.f32 %v11665_v63, %v5326_v2  ;;  %v5454_v37 = vmax.f32 %v10539_v33, %v5330_v5  ;;  %v5291_v26 = vpop.permute.xlu0 %5290  ;;  %v11667_v16 = vld [vmem:[#allocation24_spill] sm:$0xff] }
 0x344   : > { %v5458_v1 = vmax.f32 %v10560_v3, %v5334_v17  ;;  %v5303_v48 = vsel %vm5300_vm8, %v5287_v9, %v5291_v26  ;;  %v5462_v43 = vmax.f32 %v10614_v44, %v5338_v15  ;;  %v5466_v57 = vmax.f32 %v10628_v8, %v5342_v54 }
 0x345   : > { %v5533_v49 = vrot.slane %v5442_v52, 7  ;;  %v5535_v30 = vrot.slane %v5446_v58, 6  ;;  %v5537_v47 = vrot.slane %v5450_v59, 5  ;;  %v5539_v50 = vrot.slane %v5454_v37, 4  ;;  %v11668_v59 = vld [vmem:[#allocation20_spill] sm:$0xff] }
 0x346   : > { %v5541_v0 = vrot.slane %v5458_v1, 3  ;;  %v5319_v2 = vrot.slane %v5303_v48, 1  ;;  %v5323_v3 = vrot.slane %v5303_v48, 2  ;;  %v5327_v5 = vrot.slane %v5303_v48, 3  ;;  %v11669_v1 = vld [vmem:[#allocation23_spill] sm:$0xff] }
 0x347   : > { %v5534_v11 = vsel %vm5211_vm0, %v5533_v49, %v5438_v13  ;;  %v5331_v17 = vrot.slane %v5303_v48, 4  ;;  %v5335_v24 = vrot.slane %v5303_v48, 5  ;;  %v5339_v52 = vrot.slane %v5303_v48, 6  ;;  %v11670_v13 = vld [vmem:[#allocation29_spill] sm:$0xff] }
 0x348   : > { %v5536_v33 = vsel %vm5213_vm1, %v5535_v30, %v5534_v11  ;;  %v5543_v44 = vrot.slane %v5462_v43, 2  ;;  %v5545_v15 = vrot.slane %v5466_v57, 1  ;;  %v5343_v54 = vrot.slane %v5303_v48, 7 }
 0x349   : > { %v5538_v6 = vsel %vm5215_vm2, %v5537_v47, %v5536_v33  ;;  %v5439_v58 = vmax.f32 %v11667_v16, %v5303_v48  ;;  %v5443_v37 = vmax.f32 %v11668_v59, %v5319_v2  ;;  %v5447_v46 = vmax.f32 %v11669_v1, %v5323_v3 }
 0x34a   : > { %v5540_v9 = vsel %vm471_vm3, %v5539_v50, %v5538_v6  ;;  %v5451_v49 = vmax.f32 %v11670_v13, %v5327_v5  ;;  %v5455_v11 = vmax.f32 %v10533_v62, %v5331_v17  ;;  %v5459_v43 = vmax.f32 %v10551_v61, %v5335_v24 }
 0x34b   : > { %v5542_v8 = vsel %vm5219_vm4, %v5541_v0, %v5540_v9  ;;  %v5463_v47 = vmax.f32 %v10608_v4, %v5339_v52  ;;  %v5467_v2 = vmax.f32 %v10624_v18, %v5343_v54 }
 0x34c   : > { %v5544_v63 = vsel %vm5221_vm5, %v5543_v44, %v5542_v8 }
 0x34d   : > { %v5546_v30 = vsel %vm5223_vm7, %v5545_v15, %v5544_v63 }
 0x34e   : > { %v5590_v57 = vrot.slane %v5546_v30, 1  ;;  %v5592_v50 = vrot.slane %v5546_v30, 2  ;;  %v5594_v0 = vrot.slane %v5546_v30, 3  ;;  %v5596_v48 = vrot.slane %v5546_v30, 4 }
 0x34f   : > { %v5598_v33 = vrot.slane %v5546_v30, 5  ;;  %v5600_v6 = vrot.slane %v5546_v30, 6  ;;  %v5602_v9 = vrot.slane %v5546_v30, 7  ;;  %v5295_v3 = vpop.permute.xlu0 %5294  ;;  %v5650_v4 = vmax.f32 %v5439_v58, %v5546_v30 }
 0x350   : > { %v5652_v44 = vmax.f32 %v5443_v37, %v5590_v57  ;;  %v5654_v5 = vmax.f32 %v5447_v46, %v5592_v50  ;;  %v5656_v8 = vmax.f32 %v5451_v49, %v5594_v0  ;;  %v5658_v15 = vmax.f32 %v5455_v11, %v5596_v48 }
 0x351   : > { %v5660_v16 = vmax.f32 %v5459_v43, %v5598_v33  ;;  %v5662_v62 = vmax.f32 %v5463_v47, %v5600_v6  ;;  %v5664_v17 = vmax.f32 %v5467_v2, %v5602_v9  ;;  %v5301_v61 = vsel %vm5300_vm8, %v5291_v26, %v5295_v3 }
 0x352   : > { %v5697_v24 = vrot.slane %v5652_v44, 7  ;;  %v5699_v52 = vrot.slane %v5654_v5, 6  ;;  %v5701_v63 = vrot.slane %v5656_v8, 5  ;;  %v5703_v59 = vrot.slane %v5658_v15, 4  ;;  %v11671_v5 = vld [vmem:[#allocation16_spill] sm:$0xff]  ;;  %v11672_v15 = vld [vmem:[#allocation25_spill] sm:$0xff] }
 0x353   : > { %v5705_v1 = vrot.slane %v5660_v16, 3  ;;  %v5707_v13 = vrot.slane %v5662_v62, 2  ;;  %v10941_v18 = vsel %vm5300_vm8, %v5295_v3, %v10899_v7  ;;  %v5709_v37 = vrot.slane %v5664_v17, 1  ;;  %v11673_v62 = vld [vmem:[#allocation21_spill] sm:$0xff] }
 0x354   : > { %v5698_v54 = vsel %vm5211_vm0, %v5697_v24, %v5650_v4  ;;  %v5317_v46 = vrot.slane %v10941_v18, 1  ;;  %v5320_v49 = vrot.slane %v5301_v61, 1  ;;  %v5321_v58 = vrot.slane %v10941_v18, 2  ;;  %v11674_v24 = vld [vmem:[#allocation18_spill] sm:$0xff] }
 0x355   : > { %v5700_v26 = vsel %vm5213_vm1, %v5699_v52, %v5698_v54  ;;  %v5324_v30 = vrot.slane %v5301_v61, 2  ;;  %v5325_v11 = vrot.slane %v10941_v18, 3  ;;  %v5328_v47 = vrot.slane %v5301_v61, 3 }
 0x356   : > { %v5702_v43 = vsel %vm5215_vm2, %v5701_v63, %v5700_v26  ;;  %v5329_v57 = vrot.slane %v10941_v18, 4  ;;  %v5332_v7 = vrot.slane %v5301_v61, 4  ;;  %v5333_v0 = vrot.slane %v10941_v18, 5  ;;  %v11675_v63 = vld [vmem:[#allocation22_spill] sm:$0xff]  ;;  %v11677_v26 = vld [vmem:[#allocation31_spill] sm:$0xff] }
 0x357   : > { %v5704_v50 = vsel %vm471_vm3, %v5703_v59, %v5702_v43  ;;  %v5336_v48 = vrot.slane %v5301_v61, 5  ;;  %v5340_v33 = vrot.slane %v5301_v61, 6  ;;  %v5337_v9 = vrot.slane %v10941_v18, 6 }
 0x358   : > { %v5706_v6 = vsel %vm5219_vm4, %v5705_v1, %v5704_v50  ;;  %v5341_v2 = vrot.slane %v10941_v18, 7  ;;  %v5344_v3 = vrot.slane %v5301_v61, 7  ;;  %v5437_v8 = vmax.f32 %v11671_v5, %v10941_v18  ;;  %v11676_v1 = vld [vmem:[#allocation27_spill] sm:$0xff]  ;;  %v11678_v50 = vld [vmem:[#allocation28_spill] sm:$0xff] }
 0x359   : > { %v5708_v44 = vsel %vm5221_vm5, %v5707_v13, %v5706_v6  ;;  %v5440_v16 = vmax.f32 %v11672_v15, %v5301_v61  ;;  %v5444_v17 = vmax.f32 %v11673_v62, %v5320_v49  ;;  %v5441_v52 = vmax.f32 %v11674_v24, %v5317_v46  ;;  %v11679_v15 = vld [vmem:[#allocation33_spill] sm:$0xff] }
 0x35a   : > { %v10961_v4 = vsel %vm5223_vm7, %v5709_v37, %v5708_v44  ;;  %v10965_v59 = vmax.f32 %v11675_v63, %v5321_v58  ;;  %v5448_v54 = vmax.f32 %v11676_v1, %v5324_v30  ;;  %v5452_v43 = vmax.f32 %v11677_v26, %v5328_v47  ;;  %v11681_v24 = vld [vmem:[#allocation37_spill] sm:$0xff] }
 0x35b   : > { %v5456_v13 = vmax.f32 %v11657_v21, %v5332_v7  ;;  %v5460_v18 = vmax.f32 %v11658_v34, %v5336_v48  ;;  %v5464_v61 = vmax.f32 %v10617_v31, %v5340_v33  ;;  %v10973_v49 = vmax.f32 %v11678_v50, %v5325_v11  ;;  %v11680_v31 = vld [vmem:[#allocation35_spill] sm:$0xff] }
 0x35c   : > { %v5468_v37 = vmax.f32 %v10741_v51, %v5344_v3  ;;  %v5547_v6 = vrot.slane %v5444_v17, 7  ;;  %v5549_v46 = vrot.slane %v5448_v54, 6  ;;  %v10976_v44 = vpop.permute.xlu1 %5284  ;;  %v5551_v58 = vrot.slane %v5452_v43, 5  ;;  %v11682_v54 = vld [vmem:[#allocation42_spill] sm:$0xff] }
 0x35d   : > { %v5553_v5 = vrot.slane %v5456_v13, 4  ;;  %v5555_v30 = vrot.slane %v5460_v18, 3  ;;  %v10979_v47 = vmax.f32 %v11679_v15, %v5329_v57  ;;  %v5557_v34 = vrot.slane %v5464_v61, 2 }
 0x35e   : > { %v5548_v21 = vsel %vm5211_vm0, %v5547_v6, %v5440_v16  ;;  %v5559_v7 = vrot.slane %v5468_v37, 1  ;;  %v10983_v48 = vmax.f32 %v11680_v31, %v5333_v0  ;;  %v5725_v51 = vrot.slane %v10961_v4, 1 }
 0x35f   : > { %v5550_v11 = vsel %vm5213_vm1, %v5549_v46, %v5548_v21  ;;  %v5726_v33 = vrot.slane %v10961_v4, 2  ;;  %v5727_v3 = vrot.slane %v10961_v4, 3  ;;  %v5728_v57 = vrot.slane %v10961_v4, 4 }
 0x360   : > { %v5552_v62 = vsel %vm5215_vm2, %v5551_v58, %v5550_v11  ;;  %v5289_v17 = vpop.permute.xlu1 %5288  ;;  %v5729_v16 = vrot.slane %v10961_v4, 5  ;;  %v10993_v63 = vmax.f32 %v11681_v24, %v5337_v9  ;;  %v11000_v26 = vmax.f32 %v11682_v54, %v5341_v2 }
 0x361   : > { %v5554_v0 = vsel %vm471_vm3, %v5553_v5, %v5552_v62  ;;  %v5306_v1 = vsel %vm5300_vm8, %v10976_v44, %v5289_v17  ;;  %v5730_v43 = vrot.slane %v10961_v4, 6  ;;  %v5731_v21 = vrot.slane %v10961_v4, 7 }
 0x362   : > { %v5556_v13 = vsel %vm5219_vm4, %v5555_v30, %v5554_v0  ;;  %v5346_v18 = vrot.slane %v5306_v1, 1  ;;  %v5350_v61 = vrot.slane %v5306_v1, 2  ;;  %v5354_v50 = vrot.slane %v5306_v1, 3 }
 0x363   : > { %v5558_v37 = vsel %vm5221_vm5, %v5557_v34, %v5556_v13  ;;  %v5358_v9 = vrot.slane %v5306_v1, 4  ;;  %v5362_v6 = vrot.slane %v5306_v1, 5  ;;  %v5366_v46 = vrot.slane %v5306_v1, 6 }
 0x364   : > { %v11006_v58 = vsel %vm5223_vm7, %v5559_v7, %v5558_v37  ;;  %v5370_v5 = vrot.slane %v5306_v1, 7  ;;  %v5474_v15 = vmax.f32 %v10665_v12, %v5346_v18  ;;  %v5293_v2 = vpop.permute.xlu1 %5292  ;;  %v5470_v30 = vmax.f32 %v10643_v22, %v5306_v1 }
 0x365   : > { %v5589_v31 = vrot.slane %v11006_v58, 1  ;;  %v5478_v11 = vmax.f32 %v10695_v45, %v5350_v61  ;;  %v5482_v34 = vmax.f32 %v10731_v10, %v5354_v50  ;;  %v5486_v62 = vmax.f32 %v10775_v23, %v5358_v9 }
 0x366   : > { %v5490_v24 = vmax.f32 %v10801_v14, %v5362_v6  ;;  %v5494_v7 = vmax.f32 %v10803_v32, %v5366_v46  ;;  %v5498_v0 = vmax.f32 %v10822_v42, %v5370_v5  ;;  %v11019_v12 = vmax.f32 %v5437_v8, %v11006_v58 }
 0x367   : > { %v11021_v54 = vmax.f32 %v5441_v52, %v5589_v31  ;;  %v5561_v13 = vrot.slane %v5474_v15, 7  ;;  %v5563_v18 = vrot.slane %v5478_v11, 6  ;;  %v5565_v22 = vrot.slane %v5482_v34, 5  ;;  %v11683_v11 = vld [vmem:[#allocation45_spill] sm:$0xff] }
 0x368   : > { %v5567_v1 = vrot.slane %v5486_v62, 4  ;;  %v5569_v45 = vrot.slane %v5490_v24, 3  ;;  %v5571_v61 = vrot.slane %v5494_v7, 2  ;;  %v5297_v10 = vpop.permute.xlu1 %5296  ;;  %v5573_v50 = vrot.slane %v5498_v0, 1  ;;  %v11684_v62 = vld [vmem:[#allocation46_spill] sm:$0xff]  ;;  %v11685_v7 = vld [vmem:[#allocation52_spill] sm:$0xff] }
 0x369   : > { %v5562_v23 = vsel %vm5211_vm0, %v5561_v13, %v5470_v30  ;;  %v5304_v14 = vsel %vm5300_vm8, %v5289_v17, %v5293_v2  ;;  %v11028_v32 = vsel %vm5300_vm8, %v5293_v2, %v5297_v10  ;;  %v11037_v17 = vsel %vm5300_vm8, %v5297_v10, %v10976_v44 }
 0x36a   : > { %v5564_v42 = vsel %vm5213_vm1, %v5563_v18, %v5562_v23  ;;  %v5347_v8 = vrot.slane %v5304_v14, 1  ;;  %v5351_v52 = vrot.slane %v5304_v14, 2  ;;  %v5355_v37 = vrot.slane %v5304_v14, 3 }
 0x36b   : > { %v5566_v9 = vsel %vm5215_vm2, %v5565_v22, %v5564_v42  ;;  %v5359_v6 = vrot.slane %v5304_v14, 4  ;;  %v5363_v46 = vrot.slane %v5304_v14, 5  ;;  %v5367_v5 = vrot.slane %v5304_v14, 6 }
 0x36c   : > { %v5568_v15 = vsel %vm471_vm3, %v5567_v1, %v5566_v9  ;;  %v5371_v31 = vrot.slane %v5304_v14, 7  ;;  %v5471_v30 = vmax.f32 %v10638_v60, %v5304_v14  ;;  %v5475_v34 = vmax.f32 %v11683_v11, %v5347_v8 }
 0x36d   : > { %v5570_v2 = vsel %vm5219_vm4, %v5569_v45, %v5568_v15  ;;  %v5479_v24 = vmax.f32 %v11684_v62, %v5351_v52  ;;  %v5483_v0 = vmax.f32 %v11685_v7, %v5355_v37  ;;  %v5487_v18 = vmax.f32 %v10764_v55, %v5359_v6 }
 0x36e   : > { %v5572_v13 = vsel %vm5221_vm5, %v5571_v61, %v5570_v2  ;;  %v5491_v22 = vmax.f32 %v10815_v53, %v5363_v46  ;;  %v5495_v60 = vmax.f32 %v10828_v39, %v5367_v5  ;;  %v5499_v44 = vmax.f32 %v10841_v25, %v5371_v31 }
 0x36f   : > { %v5574_v1 = vsel %vm5223_vm7, %v5573_v50, %v5572_v13  ;;  %v5345_v45 = vrot.slane %v11037_v17, 1  ;;  %v5348_v10 = vrot.slane %v11028_v32, 1  ;;  %v5349_v55 = vrot.slane %v11037_v17, 2 }
 0x370   : > { %v5604_v23 = vrot.slane %v5574_v1, 1  ;;  %v5606_v14 = vrot.slane %v5574_v1, 2  ;;  %v5608_v42 = vrot.slane %v5574_v1, 3  ;;  %v5610_v8 = vrot.slane %v5574_v1, 4 }
 0x371   : > { %v5612_v52 = vrot.slane %v5574_v1, 5  ;;  %v5614_v61 = vrot.slane %v5574_v1, 6  ;;  %v5616_v37 = vrot.slane %v5574_v1, 7  ;;  %v5666_v50 = vmax.f32 %v5471_v30, %v5574_v1 }
 0x372   : > { %v5668_v53 = vmax.f32 %v5475_v34, %v5604_v23  ;;  %v5670_v9 = vmax.f32 %v5479_v24, %v5606_v14  ;;  %v5672_v39 = vmax.f32 %v5483_v0, %v5608_v42  ;;  %v5674_v6 = vmax.f32 %v5487_v18, %v5610_v8 }
 0x373   : > { %v5676_v46 = vmax.f32 %v5491_v22, %v5612_v52  ;;  %v5678_v25 = vmax.f32 %v5495_v60, %v5614_v61  ;;  %v11052_v5 = vmax.f32 %v5499_v44, %v5616_v37  ;;  %v5352_v11 = vrot.slane %v11028_v32, 2  ;;  %v11686_v61 = vld [vmem:[#allocation43_spill] sm:$0xff] }
 0x374   : > { %v5711_v15 = vrot.slane %v5668_v53, 7  ;;  %v5713_v31 = vrot.slane %v5670_v9, 6  ;;  %v5715_v2 = vrot.slane %v5672_v39, 5  ;;  %v5717_v62 = vrot.slane %v5674_v6, 4  ;;  %v11687_v53 = vld [vmem:[#allocation48_spill] sm:$0xff] }
 0x375   : > { %v5719_v7 = vrot.slane %v5676_v46, 3  ;;  %v5721_v13 = vrot.slane %v5678_v25, 2  ;;  %v5723_v40 = vrot.slane %v11052_v5, 1  ;;  %v5353_v24 = vrot.slane %v11037_v17, 3  ;;  %v11688_v6 = vld [vmem:[#allocation44_spill] sm:$0xff]  ;;  %v11689_v46 = vld [vmem:[#allocation49_spill] sm:$0xff] }
 0x376   : > { %v5712_v34 = vsel %vm5211_vm0, %v5711_v15, %v5666_v50  ;;  %v5356_v30 = vrot.slane %v11028_v32, 3  ;;  %v5357_v0 = vrot.slane %v11037_v17, 4  ;;  %v5360_v22 = vrot.slane %v11028_v32, 4  ;;  %v11690_v15 = vld [vmem:[#allocation50_spill] sm:$0xff] }
 0x377   : > { %v5714_v18 = vsel %vm5213_vm1, %v5713_v31, %v5712_v34  ;;  %v5361_v60 = vrot.slane %v11037_v17, 5  ;;  %v5364_v1 = vrot.slane %v11028_v32, 5  ;;  %v5365_v23 = vrot.slane %v11037_v17, 6 }
 0x378   : > { %v5716_v44 = vsel %vm5215_vm2, %v5715_v2, %v5714_v18  ;;  %v5368_v14 = vrot.slane %v11028_v32, 6  ;;  %v5372_v42 = vrot.slane %v11028_v32, 7  ;;  %v5369_v52 = vrot.slane %v11037_v17, 7 }
 0x379   : > { %v5718_v8 = vsel %vm471_vm3, %v5717_v62, %v5716_v44  ;;  %v5469_v37 = vmax.f32 %v11686_v61, %v11037_v17  ;;  %v5472_v9 = vmax.f32 %v11687_v53, %v11028_v32  ;;  %v11076_v50 = vmax.f32 %v11688_v6, %v5345_v45  ;;  %v11691_v62 = vld [vmem:[#allocation47_spill] sm:$0xff] }
 0x37a   : > { %v5720_v39 = vsel %vm5219_vm4, %v5719_v7, %v5718_v8  ;;  %v5476_v25 = vmax.f32 %v11689_v46, %v5348_v10  ;;  %v5480_v31 = vmax.f32 %v11690_v15, %v5352_v11  ;;  %v11082_v34 = vmax.f32 %v11691_v62, %v5349_v55  ;;  %v11692_v61 = vld [vmem:[#allocation51_spill] sm:$0xff] }
 0x37b   : > { %v5722_v2 = vsel %vm5221_vm5, %v5721_v13, %v5720_v39  ;;  %v5484_v18 = vmax.f32 %v10762_v41, %v5356_v30  ;;  %v5488_v44 = vmax.f32 %v10809_v28, %v5360_v22  ;;  %v11087_v32 = vmax.f32 %v11692_v61, %v5353_v24  ;;  %v8594_v17 = vld [vmem:[%s11534_s3 + $0x94] ss:$8 sps:$4 sm:$0xff]  }
 0x37c   : > { %v5492_v7 = vmax.f32 %v10839_v36, %v5364_v1  ;;  %v5496_v45 = vmax.f32 %v10847_v19, %v5368_v14  ;;  %v5500_v10 = vmax.f32 %v10854_v56, %v5372_v42  ;;  %v5575_v8 = vrot.slane %v5476_v25, 7  ;;  %v11100_v19 = vld [vmem:[%s11533_s2] ss:$0 sm:$0xff] }
 0x37d   : > { %v5577_v11 = vrot.slane %v5480_v31, 6  ;;  %v5579_v53 = vrot.slane %v5484_v18, 5  ;;  %v5581_v13 = vrot.slane %v5488_v44, 4  ;;  %v5591_v41 = vrot.slane %v11006_v58, 2 }
 0x37e   : > { %v5583_v39 = vrot.slane %v5492_v7, 3  ;;  %v5585_v55 = vrot.slane %v5496_v45, 2  ;;  %v5587_v6 = vrot.slane %v5500_v10, 1  ;;  %v5576_v28 = vsel %vm5211_vm0, %v5575_v8, %v5472_v9 }
 0x37f   : > { %v5593_v24 = vrot.slane %v11006_v58, 3  ;;  %v5595_v30 = vrot.slane %v11006_v58, 4  ;;  %v5597_v36 = vrot.slane %v11006_v58, 5  ;;  %v5578_v56 = vsel %vm5213_vm1, %v5577_v11, %v5576_v28 }
 0x380   : > { %v5653_v22 = vmax.f32 %v10965_v59, %v5591_v41  ;;  %v5755_v1 = vmax.f32 %v11019_v12, %v10961_v4  ;;  %v5756_v14 = vmax.f32 %v11021_v54, %v5725_v51  ;;  %v5580_v42 = vsel %vm5215_vm2, %v5579_v53, %v5578_v56  ;;  %v8559_v41 = vld [vmem:[%s11534_s3 + $0x130] ss:$8 sps:$4 sm:$0xff]   ;;  %v8562_v4 = vld [vmem:[%s11534_s3 + $0x40] ss:$8 sps:$4 sm:$0xff]  }
 0x381   : > { %v5655_v9 = vmax.f32 %v10973_v49, %v5593_v24  ;;  %v5657_v46 = vmax.f32 %v10979_v47, %v5595_v30  ;;  %v5659_v25 = vmax.f32 %v10983_v48, %v5597_v36  ;;  %v5582_v15 = vsel %vm471_vm3, %v5581_v13, %v5580_v42 }
 0x382   : > { %v5757_v59 = vmax.f32 %v5653_v22, %v5726_v33  ;;  %v5778_v31 = vadd.f32 %v11100_v19, %v5755_v1  ;;  %v5779_v12 = vadd.f32 %v11100_v19, %v5756_v14  ;;  %v5584_v62 = vsel %vm5219_vm4, %v5583_v39, %v5582_v15  ;;  %v8556_v39 = vld [vmem:[%s11534_s3 + $0x30] ss:$8 sps:$4 sm:$0xff]  }
 0x383   : > { %v5758_v51 = vmax.f32 %v5655_v9, %v5727_v3  ;;  %v5759_v49 = vmax.f32 %v5657_v46, %v5728_v57  ;;  %v5760_v47 = vmax.f32 %v5659_v25, %v5729_v16  ;;  %v5586_v48 = vsel %vm5221_vm5, %v5585_v55, %v5584_v62 }
 0x384   : > { %v5780_v54 = vadd.f32 %v11100_v19, %v5757_v59  ;;  %v5794_v33 = vmax.f32 %v5778_v31, 0.0  ;;  %v5795_v18 = vmax.f32 %v5779_v12, 0.0  ;;  %v11128_v44 = vsel %vm5223_vm7, %v5587_v6, %v5586_v48 }
 0x385   : > { %v5781_v61 = vadd.f32 %v11100_v19, %v5758_v51  ;;  %v5782_v7 = vadd.f32 %v11100_v19, %v5759_v49  ;;  %v5783_v3 = vadd.f32 %v11100_v19, %v5760_v47  ;;  %v11136_v57 = vsel %vm5223_vm7, %v5723_v40, %v5722_v2  ;;  %v8558_v2 = vld [vmem:[%s11534_s3 + $0x34] ss:$8 sps:$4 sm:$0xff]  }
 0x386   : > { %v5603_v16 = vrot.slane %v11128_v44, 1  ;;  %v5796_v45 = vmax.f32 %v5780_v54, 0.0  ;;  %v7676_v10 = vpack.c.bf16 %v5794_v33, %v5794_v33  ;;  %v7677_v13 = vpack.c.bf16 %v5795_v18, %v5795_v18  ;;  %6566 = vmatprep.subr.bf16.mxu1 %v8558_v2 }
 0x387   : > { %v5797_v8 = vmax.f32 %v5781_v61, 0.0  ;;  %v5798_v11 = vmax.f32 %v5782_v7, 0.0  ;;  %v5799_v53 = vmax.f32 %v5783_v3, 0.0  ;;  %v11143_v55 = vmax.f32 %v5469_v37, %v11128_v44  ;;  %v8561_v37 = vld [vmem:[%s11534_s3 + $0x134] ss:$8 sps:$4 sm:$0xff]   ;;  %6567 = vmatpush1.bf16.msra.mxu1 %v8556_v39 }
 0x388   : > { %v7678_v6 = vpack.c.bf16 %v5796_v45, %v5796_v45  ;;  %v5878_v5 = vunpack.c.l.b16 %v7676_v10  ;;  %v5599_v40 = vrot.slane %v11006_v58, 6  ;;  %v5879_v36 = vunpack.c.l.b16 %v7677_v13  ;;  %6609 = vmatprep.subr.bf16.mxu0 %v8561_v37  ;;  %v8565_v10 = vld [vmem:[%s11534_s3 + $0x140] ss:$8 sps:$4 sm:$0xff]  }
 0x389   : > { %v7679_v28 = vpack.c.bf16 %v5797_v8, %v5797_v8  ;;  %v7680_v24 = vpack.c.bf16 %v5798_v11, %v5798_v11  ;;  %v7681_v30 = vpack.c.bf16 %v5799_v53, %v5799_v53  ;;  %v5601_v1 = vrot.slane %v11006_v58, 7  ;;  %6610 = vmatpush1.bf16.msra.mxu0 %v8559_v41  ;;  %v8567_v8 = vld [vmem:[%s11534_s3 + $0x144] ss:$8 sps:$4 sm:$0xff]  }
 0x38a   : > { %v5880_v56 = vunpack.c.l.b16 %v7678_v6  ;;  %v5894_v22 = vrot.slane %v5878_v5, 6  ;;  %v5661_v14 = vmax.f32 %v10993_v63, %v5599_v40  ;;  %v5895_v25 = vrot.slane %v5879_v36, 5  ;;  %6611 = vmatprep.subr.bf16.mxu0 %v8567_v8  ;;  %v8573_v40 = vld [vmem:[%s11534_s3 + $0x154] ss:$8 sps:$4 sm:$0xff]   ;;  %v8576_v36 = vld [vmem:[%s11534_s3 + $0x64] ss:$8 sps:$4 sm:$0xff]  }
 0x38b   : > { %v5881_v42 = vunpack.c.l.b16 %v7679_v28  ;;  %v5882_v9 = vunpack.c.l.b16 %v7680_v24  ;;  %v5883_v46 = vunpack.c.l.b16 %v7681_v30  ;;  %v5667_v15 = vmax.f32 %v11076_v50, %v5603_v16  ;;  %v8571_v30 = vld [vmem:[%s11534_s3 + $0x150] ss:$8 sps:$4 sm:$0xff]   ;;  %v8588_v8 = vld [vmem:[%s11534_s3 + $0x84] ss:$8 sps:$4 sm:$0xff]  }
 0x38c   : > { %v5897_v59 = vrot.slane %v5880_v56, 4  ;;  %v5663_v31 = vmax.f32 %v11000_v26, %v5601_v1  ;;  %v5761_v12 = vmax.f32 %v5661_v14, %v5730_v43  ;;  %v5896_v58 = vsel %vm5215_vm2, %v5895_v25, %v5894_v22  ;;  %v8579_v14 = vld [vmem:[%s11534_s3 + $0x164] ss:$8 sps:$4 sm:$0xff]  }
 0x38d   : > { %v5899_v62 = vrot.slane %v5881_v42, 3  ;;  %v5901_v63 = vrot.slane %v5882_v9, 2  ;;  %v5485_v51 = vmax.f32 %v10773_v35, %v5357_v0  ;;  %v5903_v47 = vrot.slane %v5883_v46, 1  ;;  %6612 = vmatpush1.bf16.msra.mxu0 %v8565_v10  ;;  %v8583_v10 = vld [vmem:[%s11534_s3 + $0x170] ss:$8 sps:$4 sm:$0xff]  }
 0x38e   : > { %v5898_v49 = vsel %vm471_vm3, %v5897_v59, %v5896_v58  ;;  %v5762_v50 = vmax.f32 %v5663_v31, %v5731_v21  ;;  %v5784_v26 = vadd.f32 %v11100_v19, %v5761_v12  ;;  %v5605_v43 = vrot.slane %v11128_v44, 2  ;;  %v8564_v21 = vld [vmem:[%s11534_s3 + $0x44] ss:$8 sps:$4 sm:$0xff]   ;;  %6613 = vmatprep.subr.bf16.mxu0 %v8573_v40  ;;  %v8574_v12 = vld [vmem:[%s11534_s3 + $0x60] ss:$8 sps:$4 sm:$0xff]  }
 0x38f   : > { %v5900_v48 = vsel %vm5219_vm4, %v5899_v62, %v5898_v49  ;;  %v5607_v54 = vrot.slane %v11128_v44, 3  ;;  %v5609_v33 = vrot.slane %v11128_v44, 4  ;;  %v5611_v61 = vrot.slane %v11128_v44, 5  ;;  %6568 = vmatprep.subr.bf16.mxu1 %v8564_v21  ;;  %v8577_v49 = vld [vmem:[%s11534_s3 + $0x160] ss:$8 sps:$4 sm:$0xff]  }
 0x390   : > { %v5902_v18 = vsel %vm5221_vm5, %v5901_v63, %v5900_v48  ;;  %v5785_v35 = vadd.f32 %v11100_v19, %v5762_v50  ;;  %v5800_v0 = vmax.f32 %v5784_v26, 0.0  ;;  %v5489_v3 = vmax.f32 %v10797_v20, %v5361_v60  ;;  %v8568_v20 = vld [vmem:[%s11534_s3 + $0x50] ss:$8 sps:$4 sm:$0xff]   ;;  %v8570_v60 = vld [vmem:[%s11534_s3 + $0x54] ss:$8 sps:$4 sm:$0xff]   ;;  %6569 = vmatpush1.bf16.msra.mxu1 %v8562_v4 }
 0x391   : > { %v5904_v7 = vsel %vm5223_vm7, %v5903_v47, %v5902_v18  ;;  %v5669_v16 = vmax.f32 %v11082_v34, %v5605_v43  ;;  %v5671_v45 = vmax.f32 %v11087_v32, %v5607_v54  ;;  %v5673_v39 = vmax.f32 %v5485_v51, %v5609_v33  ;;  %6570 = vmatprep.subr.bf16.mxu1 %v8570_v60  ;;  %v8582_v47 = vld [vmem:[%s11534_s3 + $0x74] ss:$8 sps:$4 sm:$0xff]   ;;  %v8580_v21 = vld [vmem:[%s11534_s3 + $0x70] ss:$8 sps:$4 sm:$0xff]  }
 0x392   : > { %v5920_v11 = vpack.c.b16 %v5904_v7, %v5904_v7  ;;  %v5801_v53 = vmax.f32 %v5785_v35, 0.0  ;;  %v7682_v13 = vpack.c.bf16 %v5800_v0, %v5800_v0  ;;  %v5732_v34 = vrot.slane %v11136_v57, 1  ;;  %6614 = vmatpush1.bf16.msra.mxu0 %v8571_v30  ;;  %v8585_v54 = vld [vmem:[%s11534_s3 + $0x174] ss:$8 sps:$4 sm:$0xff]  }
 0x393   : > { %v5733_v32 = vrot.slane %v11136_v57, 2  ;;  %v5734_v6 = vrot.slane %v11136_v57, 3  ;;  %v5735_v5 = vrot.slane %v11136_v57, 4  ;;  %v5675_v41 = vmax.f32 %v5489_v3, %v5611_v61  ;;  %6615 = vmatprep.subr.bf16.mxu0 %v8579_v14 }
 0x394   : > { %5924 = vrot.lane.b32.xlu0 %v5920_v11, %s8726_s23  ;;  %v7683_v2 = vpack.c.bf16 %v5801_v53, %v5801_v53  ;;  %v5736_v28 = vrot.slane %v11136_v57, 5  ;;  %v5763_v24 = vmax.f32 %v11143_v55, %v11136_v57  ;;  %v5764_v37 = vmax.f32 %v5667_v15, %v5732_v34  ;;  %6571 = vmatpush1.bf16.msra.mxu1 %v8568_v20 }
 0x395   : > { %v5765_v56 = vmax.f32 %v5669_v16, %v5733_v32  ;;  %v5766_v22 = vmax.f32 %v5671_v45, %v5734_v6  ;;  %v5767_v1 = vmax.f32 %v5673_v39, %v5735_v5  ;;  %v5884_v42 = vunpack.c.l.b16 %v7682_v13  ;;  %6572 = vmatprep.subr.bf16.mxu1 %v8576_v36  ;;  %v8597_v36 = vld [vmem:[%s11534_s3 + $0x194] ss:$8 sps:$4 sm:$0xff]  }
 0x396   : > { %v5885_v55 = vunpack.c.l.b16 %v7683_v2  ;;  %v5768_v9 = vmax.f32 %v5675_v41, %v5736_v28  ;;  %v5786_v46 = vadd.f32 %v11100_v19, %v5763_v24  ;;  %v5787_v25 = vadd.f32 %v11100_v19, %v5764_v37  ;;  %6616 = vmatpush1.bf16.msra.mxu0 %v8577_v49  ;;  %v8586_v2 = vld [vmem:[%s11534_s3 + $0x80] ss:$8 sps:$4 sm:$0xff]   ;;  %v8606_v49 = vld [vmem:[%s11534_s3 + $0xb4] ss:$8 sps:$4 sm:$0xff]  }
 0x397   : > { %v5788_v59 = vadd.f32 %v11100_v19, %v5765_v56  ;;  %v5789_v15 = vadd.f32 %v11100_v19, %v5766_v22  ;;  %v5790_v31 = vadd.f32 %v11100_v19, %v5767_v1  ;;  %v5493_v51 = vmax.f32 %v10799_v38, %v5365_v23  ;;  %6617 = vmatprep.subr.bf16.mxu0 %v8585_v54  ;;  %v8607_v54 = vld [vmem:[%s11534_s3 + $0x1b0] ss:$8 sps:$4 sm:$0xff]  }
 0x398   : > { %v5905_v58 = vrot.slane %v5885_v55, 7  ;;  %v5791_v62 = vadd.f32 %v11100_v19, %v5768_v9  ;;  %v5802_v63 = vmax.f32 %v5786_v46, 0.0  ;;  %v5803_v50 = vmax.f32 %v5787_v25, 0.0  ;;  %6573 = vmatpush1.bf16.msra.mxu1 %v8574_v12  ;;  %v8595_v46 = vld [vmem:[%s11534_s3 + $0x190] ss:$8 sps:$4 sm:$0xff]  }
 0x399   : > { %v5804_v26 = vmax.f32 %v5788_v59, 0.0  ;;  %v5805_v48 = vmax.f32 %v5789_v15, 0.0  ;;  %v5806_v43 = vmax.f32 %v5790_v31, 0.0  ;;  %v5613_v18 = vrot.slane %v11128_v44, 6  ;;  %6574 = vmatprep.subr.bf16.mxu1 %v8582_v47  ;;  %v8600_v15 = vld [vmem:[%s11534_s3 + $0xa4] ss:$8 sps:$4 sm:$0xff]  }
 0x39a   : > { %v5906_v38 = vsel %vm5211_vm0, %v5905_v58, %v5884_v42  ;;  %v5807_v23 = vmax.f32 %v5791_v62, 0.0  ;;  %v7684_v33 = vpack.c.bf16 %v5802_v63, %v5802_v63  ;;  %v7685_v0 = vpack.c.bf16 %v5803_v50, %v5803_v50  ;;  %6618 = vmatpush1.bf16.msra.mxu0 %v8583_v10  ;;  %v8592_v42 = vld [vmem:[%s11534_s3 + $0x90] ss:$8 sps:$4 sm:$0xff]   ;;  %v8603_v31 = vld [vmem:[%s11534_s3 + $0x1a4] ss:$8 sps:$4 sm:$0xff]  }
 0x39b   : > { %v5921_v35 = vpack.c.b16 %v5906_v38, %v5906_v38  ;;  %v7686_v61 = vpack.c.bf16 %v5804_v26, %v5804_v26  ;;  %v7687_v4 = vpack.c.bf16 %v5805_v48, %v5805_v48  ;;  %v7688_v7 = vpack.c.bf16 %v5806_v43, %v5806_v43  ;;  %v8598_v58 = vld [vmem:[%s11534_s3 + $0xa0] ss:$8 sps:$4 sm:$0xff]   ;;  %v8609_v47 = vld [vmem:[%s11534_s3 + $0x1b4] ss:$8 sps:$4 sm:$0xff]   ;;  %v8604_v26 = vld [vmem:[%s11534_s3 + $0xb0] ss:$8 sps:$4 sm:$0xff]  }
 0x39c   : > { %v7689_v3 = vpack.c.bf16 %v5807_v23, %v5807_v23  ;;  %v5886_v16 = vunpack.c.l.b16 %v7684_v33  ;;  %v5615_v45 = vrot.slane %v11128_v44, 7  ;;  %v5887_v11 = vunpack.c.l.b16 %v7685_v0  ;;  %v8591_v44 = vld [vmem:[%s11534_s3 + $0x184] ss:$8 sps:$4 sm:$0xff]   ;;  %6575 = vmatpush1.bf16.msra.mxu1 %v8580_v21  ;;  %v8613_v0 = vld [vmem:[%s11534_s3 + $0x1c0] ss:$8 sps:$4 sm:$0xff]  }
 0x39d   : > { %5926 = vrot.lane.b32.xlu0 %v5921_v35, %s8726_s23  ;;  %v5888_v53 = vunpack.c.l.b16 %v7686_v61  ;;  %v5889_v13 = vunpack.c.l.b16 %v7687_v4  ;;  %v5890_v39 = vunpack.c.l.b16 %v7688_v7  ;;  %v5497_v60 = vmax.f32 %v10811_v29, %v5369_v52  ;;  %6576 = vmatprep.subr.bf16.mxu1 %v8588_v8  ;;  %v8589_v29 = vld [vmem:[%s11534_s3 + $0x180] ss:$8 sps:$4 sm:$0xff]   ;;  %v8612_v38 = vld [vmem:[%s11534_s3 + $0xc4] ss:$8 sps:$4 sm:$0xff]   ;;  %v8618_v61 = vld [vmem:[%s11534_s3 + $0xd4] ss:$8 sps:$4 sm:$0xff]  }
 0x39e   : > { %v5891_v20 = vunpack.c.l.b16 %v7689_v3  ;;  %v5677_v34 = vmax.f32 %v5493_v51, %v5613_v18  ;;  %v5907_v32 = vrot.slane %v5886_v16, 6  ;;  %v5908_v6 = vrot.slane %v5887_v11, 5  ;;  %6619 = vmatprep.subr.bf16.mxu0 %v8591_v44  ;;  %v8601_v51 = vld [vmem:[%s11534_s3 + $0x1a0] ss:$8 sps:$4 sm:$0xff]   ;;  %v8615_v23 = vld [vmem:[%s11534_s3 + $0x1c4] ss:$8 sps:$4 sm:$0xff]  }
 0x39f   : > { %v5910_v5 = vrot.slane %v5888_v53, 4  ;;  %v5737_v40 = vrot.slane %v11136_v57, 6  ;;  %v5679_v41 = vmax.f32 %v5497_v60, %v5615_v45  ;;  %v5738_v28 = vrot.slane %v11136_v57, 7  ;;  %6620 = vmatpush1.bf16.msra.mxu0 %v8589_v29  ;;  %v8610_v35 = vld [vmem:[%s11534_s3 + $0xc0] ss:$8 sps:$4 sm:$0xff]  }
 0x3a0   : > { %v5909_v52 = vsel %vm5215_vm2, %v5908_v6, %v5907_v32  ;;  %v5912_v24 = vrot.slane %v5889_v13, 3  ;;  %v5914_v37 = vrot.slane %v5890_v39, 2  ;;  %v5916_v1 = vrot.slane %v5891_v20, 1  ;;  %6577 = vmatpush1.bf16.msra.mxu1 %v8586_v2  ;;  %6621 = vmatprep.subr.bf16.mxu0 %v8597_v36  ;;  %v8621_v4 = vld [vmem:[%s11534_s3 + $0x1d4] ss:$8 sps:$4 sm:$0xff]  }
 0x3a1   : > { %v5769_v30 = vmax.f32 %v5677_v34, %v5737_v40  ;;  %v5911_v57 = vsel %vm471_vm3, %v5910_v5, %v5909_v52  ;;  %v5770_v56 = vmax.f32 %v5679_v41, %v5738_v28  ;;  %6578 = vmatprep.subr.bf16.mxu1 %v8594_v17  ;;  %v8616_v21 = vld [vmem:[%s11534_s3 + $0xd0] ss:$8 sps:$4 sm:$0xff]   ;;  %v8624_v3 = vld [vmem:[%s11534_s3 + $0xe4] ss:$8 sps:$4 sm:$0xff]   ;;  %v8622_v45 = vld [vmem:[%s11534_s3 + $0xe0] ss:$8 sps:$4 sm:$0xff]  }
 0x3a2   : > { %v5913_v22 = vsel %vm5219_vm4, %v5912_v24, %v5911_v57  ;;  %v8619_v7 = vld [vmem:[%s11534_s3 + $0x1d0] ss:$8 sps:$4 sm:$0xff]   ;;  %v8627_v16 = vld [vmem:[%s11534_s3 + $0x1e4] ss:$8 sps:$4 sm:$0xff]   ;;  %v8625_v10 = vld [vmem:[%s11534_s3 + $0x1e0] ss:$8 sps:$4 sm:$0xff]  }
 0x3a3   : > { %v5792_v14 = vadd.f32 %v11100_v19, %v5769_v30  ;;  %v5915_v55 = vsel %vm5221_vm5, %v5914_v37, %v5913_v22  ;;  %v5793_v9 = vadd.f32 %v11100_v19, %v5770_v56  ;;  %6622 = vmatpush1.bf16.msra.mxu0 %v8595_v46  ;;  %v8630_v8 = vld [vmem:[%s11534_s3 + $0xf4] ss:$8 sps:$4 sm:$0xff]   ;;  %v8628_v53 = vld [vmem:[%s11534_s3 + $0xf0] ss:$8 sps:$4 sm:$0xff]   ;;  %v8637_v44 = vld [vmem:[%s11534_s3 + $0x204] ss:$8 sps:$4 sm:$0xff]  }
 0x3a4   : > { %v5917_v25 = vsel %vm5223_vm7, %v5916_v1, %v5915_v55  ;;  %6579 = vmatpush1.bf16.msra.mxu1 %v8592_v42  ;;  %6623 = vmatprep.subr.bf16.mxu0 %v8603_v31  ;;  %v8633_v11 = vld [vmem:[%s11534_s3 + $0x1f4] ss:$8 sps:$4 sm:$0xff]   ;;  %v8631_v13 = vld [vmem:[%s11534_s3 + $0x1f0] ss:$8 sps:$4 sm:$0xff]   ;;  %vm5936_vm3 = vcmask 650369  }
 0x3a5   : > { %v5808_v59 = vmax.f32 %v5792_v14, 0.0  ;;  %v5922_v12 = vpack.c.b16 %v5917_v25, %v5917_v25  ;;  %v5809_v19 = vmax.f32 %v5793_v9, 0.0  ;;  %6580 = vmatprep.subr.bf16.mxu1 %v8600_v15 }
 0x3a7   : > { %5928 = vrot.lane.b32.xlu1 %v5922_v12, %s8726_s23  ;;  %v7690_v62 = vpack.c.bf16 %v5808_v59, %v5808_v59  ;;  %v7691_v63 = vpack.c.bf16 %v5809_v19, %v5809_v19  ;;  %6624 = vmatpush1.bf16.msra.mxu0 %v8601_v51 }
 0x3a8   : > { %6581 = vmatpush1.bf16.msra.mxu1 %v8598_v58  ;;  %6625 = vmatprep.subr.bf16.mxu0 %v8609_v47 }
 0x3a9   : > { %v5893_v50 = vunpack.c.l.b16 %v7691_v63  ;;  %v5892_v48 = vunpack.c.l.b16 %v7690_v62  ;;  %6582 = vmatprep.subr.bf16.mxu1 %v8606_v49 }
 0x3ab   : > { %v5918_v43 = vrot.slane %v5893_v50, 7  ;;  %6626 = vmatpush1.bf16.msra.mxu0 %v8607_v54 }
 0x3ac   : > { %6583 = vmatpush1.bf16.msra.mxu1 %v8604_v26  ;;  %6627 = vmatprep.subr.bf16.mxu0 %v8615_v23 }
 0x3ad   : > { %v5919_v33 = vsel %vm5211_vm0, %v5918_v43, %v5892_v48  ;;  %6584 = vmatprep.subr.bf16.mxu1 %v8612_v38 }
 0x3ae   : > { %v5923_v18 = vpack.c.b16 %v5919_v33, %v5919_v33 }
 0x3af   : > { %6628 = vmatpush1.bf16.msra.mxu0 %v8613_v0 }
 0x3b0   : > { %5930 = vrot.lane.b32.xlu1 %v5923_v18, %s8726_s23  ;;  %6585 = vmatpush1.bf16.msra.mxu1 %v8610_v35 }
 0x3b1   : > { %6586 = vmatprep.subr.bf16.mxu1 %v8618_v61  ;;  %6629 = vmatprep.subr.bf16.mxu0 %v8621_v4 }
 0x3b3   : > { %6630 = vmatpush1.bf16.msra.mxu0 %v8619_v7 }
 0x3b4   : > { %6587 = vmatpush1.bf16.msra.mxu1 %v8616_v21  ;;  %6631 = vmatprep.subr.bf16.mxu0 %v8627_v16 }
 0x3b5   : > { %6588 = vmatprep.subr.bf16.mxu1 %v8624_v3 }
 0x3b7   : > { %6632 = vmatpush1.bf16.msra.mxu0 %v8625_v10 }
 0x3b8   : > { %6589 = vmatpush1.bf16.msra.mxu1 %v8622_v45  ;;  %6633 = vmatprep.subr.bf16.mxu0 %v8633_v11 }
 0x3b9   : > { %6590 = vmatprep.subr.bf16.mxu1 %v8630_v8 }
 0x3bb   : > { %6634 = vmatpush1.bf16.msra.mxu0 %v8631_v13 }
 0x3bc   : > { %6591 = vmatpush1.bf16.msra.mxu1 %v8628_v53  ;;  %6646 = vmatprep.subr.bf16.mxu0 %v8637_v44 }
 0x406   : > { %v5925_v39 = vpop.permute.xlu0 %5924 }
 0x407   : > { %5937 = vst.msk [vmem:[#allocation4] sm:$0xe] %vm5936_vm3, %v5925_v39 }
 0x40e   : > { %v5951_v34 = vld [vmem:[#allocation4] sm:$0xf] }
 0x40f   : > { %v5927_v20 = vpop.permute.xlu0 %5926  ;;  %v5956_v32 = vshrl.u32 %v5951_v34, 16  ;;  %v5959_v6 = vshll.u32 %v5951_v34, 16  ;;  %v6009_v5 = vld [vmem:[#allocation4] sm:$0xe] }
 0x410   : > { %5939 = vst.msk [vmem:[#allocation4 + $0x4] sm:$0x1] %vm5938_vm10, %v5927_v20  ;;  %v6014_v41 = vshrl.u32 %v6009_v5, 16  ;;  %v6017_v28 = vshll.u32 %v6009_v5, 16  ;;  %v5988_v4 = vld [vmem:[#allocation4] sm:$0xe] }
 0x411   : > { %v5958_v40 = vrot.slane %v5956_v32, 4  ;;  %v5961_v2 = vrot.slane %v5959_v6, 5  ;;  %v7576_v13 = vrot.slane %v5988_v4, 9  ;;  %v8635_v5 = vld [vmem:[%s11534_s3 + $0x200] ss:$8 sps:$4 sm:$0xff]  }
 0x412   : > { %v6016_v46 = vrot.slane %v6014_v41, 5  ;;  %v6019_v25 = vrot.slane %v6017_v28, 6  ;;  %v8640_v41 = vld [vmem:[%s11534_s3 + $0x214] ss:$8 sps:$4 sm:$0xff]   ;;  %v8638_v28 = vld [vmem:[%s11534_s3 + $0x210] ss:$8 sps:$4 sm:$0xff]  }
 0x413   : > { %v5962_v14 = vor.u32 %v5961_v2, %v5958_v40 }
 0x414   : > { %v6020_v47 = vor.u32 %v6019_v25, %v6016_v46  ;;  %v6054_v25 = vld [vmem:[#allocation4] sm:$0xc] }
 0x415   : > { %v5963_v12 = vrot.slane %v5962_v14, 4  ;;  %v8653_v14 = vld [vmem:[%s11534_s3 + $0x260] ss:$8 sps:$4 sm:$0xff]  }
 0x416   : > { %v6021_v21 = vrot.slane %v6020_v47, 4 }
 0x417   : > { %v5952_v29 = vld [vmem:[#allocation4 + $0x4] sm:$0x1] }
 0x418   : > { %v6010_v36 = vld [vmem:[#allocation4 + $0x4] sm:$0x3]  ;;  %v5965_v42 = vshll.u32 %v5952_v29, 16  ;;  %v11696_v29 = vmov 0  }
 0x419   : > { %v5929_v60 = vpop.permute.xlu1 %5928  ;;  %v6023_v55 = vshrl.u32 %v6010_v36, 16  ;;  %v6026_v9 = vshll.u32 %v6010_v36, 16  ;;  %v5989_v63 = vld [vmem:[#allocation4 + $0x4] sm:$0x1]  ;;  %v8649_v36 = vld [vmem:[%s11534_s3 + $0x244] ss:$8 sps:$4 sm:$0xff]  }
 0x41a   : > { %5940 = vst.msk [vmem:[#allocation4 + $0x8] sm:$0xe] %vm5936_vm3, %v5929_v60  ;;  %v5967_v19 = vrot.slane %v5965_v42, 5  ;;  %v5998_v7 = vrot.slane %v5989_v63, 5  ;;  %v8658_v42 = vld [vmem:[%s11534_s3 + $0x274] ss:$8 sps:$4 sm:$0xff]  }
 0x41b   : > { %v6025_v58 = vrot.slane %v6023_v55, 5  ;;  %v6028_v62 = vrot.slane %v6026_v9, 6  ;;  %v6055_v55 = vld [vmem:[#allocation4 + $0x4] sm:$0x3] }
 0x41c   : > { %v5968_v45 = vsel %vm9521_vm6, %v5963_v12, %v5967_v19  ;;  %v5999_v40 = vsel %vm9779_vm9, %v7576_v13, %v5998_v7  ;;  %v7580_v12 = vrot.slane %v6054_v25, 10  ;;  %v6788_v25 = vld [vmem:[%s11536_s5 + $0x10] sm:$0xff] }
 0x41d   : > { %v6029_v35 = vor.u32 %v6028_v62, %v6025_v58 }
 0x41f   : > { %v6030_v34 = vsel %vm10051_vm12, %v6021_v21, %v6029_v35 }
 0x421   : > { %v5953_v17 = vld [vmem:[#allocation4 + $0x8] sm:$0xf] }
 0x422   : > { %v5931_v52 = vpop.permute.xlu1 %5930  ;;  %v5970_v24 = vshrl.u32 %v5953_v17, 16  ;;  %v5973_v30 = vshll.u32 %v5953_v17, 16  ;;  %v6011_v57 = vld [vmem:[#allocation4 + $0x8] sm:$0xe]  ;;  %v8643_v17 = vld [vmem:[%s11534_s3 + $0x224] ss:$8 sps:$4 sm:$0xff]  }
 0x423   : > { %5941 = vst.msk [vmem:[#allocation4 + $0xc] sm:$0x1] %vm5938_vm10, %v5931_v52  ;;  %v6032_v37 = vshrl.u32 %v6011_v57, 16  ;;  %v6035_v56 = vshll.u32 %v6011_v57, 16  ;;  %v5990_v23 = vld [vmem:[#allocation4 + $0x8] sm:$0xe] }
 0x424   : > { %v5972_v22 = vrot.slane %v5970_v24, 4  ;;  %v5975_v1 = vrot.slane %v5973_v30, 5  ;;  %v7577_v3 = vrot.slane %v5990_v23, 9  ;;  %v8634_v20 = vld [vmem:[#allocation4] ss:$8 sps:$4 sm:$0xff]  }
 0x425   : > { %v6034_v59 = vrot.slane %v6032_v37, 5  ;;  %v6037_v15 = vrot.slane %v6035_v56, 6  ;;  %v8641_v52 = vld [vmem:[%s11534_s3 + $0x220] ss:$8 sps:$4 sm:$0xff]   ;;  %v8646_v24 = vld [vmem:[%s11534_s3 + $0x234] ss:$8 sps:$4 sm:$0xff]  }
 0x426   : > { %v5976_v31 = vor.u32 %v5975_v1, %v5972_v22  ;;  %v8644_v30 = vld [vmem:[%s11534_s3 + $0x230] ss:$8 sps:$4 sm:$0xff]   ;;  %v8647_v57 = vld [vmem:[%s11534_s3 + $0x240] ss:$8 sps:$4 sm:$0xff]   ;;  %v8652_v37 = vld [vmem:[%s11534_s3 + $0x254] ss:$8 sps:$4 sm:$0xff]  }
 0x427   : > { %v6038_v50 = vor.u32 %v6037_v15, %v6034_v59  ;;  %v8650_v56 = vld [vmem:[%s11534_s3 + $0x250] ss:$8 sps:$4 sm:$0xff]   ;;  %v8655_v22 = vld [vmem:[%s11534_s3 + $0x264] ss:$8 sps:$4 sm:$0xff]   ;;  %v6064_v15 = vrot.slane %v6055_v55, 6 }
 0x428   : > { %v5977_v48 = vrot.slane %v5976_v31, 4  ;;  %v6056_v9 = vld [vmem:[#allocation4 + $0x8] sm:$0xc] }
 0x429   : > { %v6039_v8 = vrot.slane %v6038_v50, 4  ;;  %v8656_v59 = vld [vmem:[%s11534_s3 + $0x270] ss:$8 sps:$4 sm:$0xff]   ;;  %v7581_v31 = vrot.slane %v6056_v9, 10  ;;  %v6065_v62 = vsel %vm10307_vm15, %v7580_v12, %v6064_v15  ;;  %v6786_v9 = vld [vmem:[%s11536_s5] sm:$0xff]  ;;  %v8730_v12 = vmov 0.0  }
 0x42a   : > { %v5954_v51 = vld [vmem:[#allocation4 + $0xc] sm:$0x1] }
 0x42b   : > { %v6012_v49 = vld [vmem:[#allocation4 + $0xc] sm:$0x3]  ;;  %v5979_v43 = vshll.u32 %v5954_v51, 16 }
 0x42c   : > { %v5991_v26 = vld [vmem:[#allocation4 + $0xc] sm:$0x1]  ;;  %v6041_v54 = vshrl.u32 %v6012_v49, 16  ;;  %v6044_v38 = vshll.u32 %v6012_v49, 16 }
 0x42d   : > { %v6002_v33 = vrot.slane %v5991_v26, 5  ;;  %v5981_v18 = vrot.slane %v5979_v43, 5  ;;  %v6057_v1 = vld [vmem:[#allocation4 + $0xc] sm:$0x3] }
 0x42e   : > { %v6043_v0 = vrot.slane %v6041_v54, 5  ;;  %v6046_v61 = vrot.slane %v6044_v38, 6  ;;  %v6068_v46 = vrot.slane %v6057_v1, 6 }
 0x42f   : > { %v5982_v10 = vsel %vm9521_vm6, %v5977_v48, %v5981_v18  ;;  %v6003_v39 = vsel %vm9779_vm9, %v7577_v3, %v6002_v33  ;;  %vm6725_vm6 = vcmp.lt.s32.totalorder %v10902_v27, 32  ;;  %vm8729_vm9 = vmmov 0  }
 0x430   : > { %v6047_v11 = vor.u32 %v6046_v61, %v6043_v0  ;;  %v7575_v53 = vcombine.low %v5968_v45, %v5982_v10  ;;  %v7578_v2 = vcombine.low %v5999_v40, %v6003_v39  ;;  %v6069_v58 = vsel %vm10307_vm15, %v7581_v31, %v6068_v46  ;;  %v6787_v46 = vld [vmem:[%s11536_s5 + $0x8] sm:$0xff]  ;;  %v6789_v31 = vld [vmem:[%s11536_s5 + $0x18] sm:$0xff] }
 0x431   : > { %v7582_v63 = vcombine.low %v6065_v62, %v6069_v58  ;;  %v7727_v15 = vpack.c.bf16 %v6787_v46, %v6786_v9  ;;  %v7730_v19 = vpack.c.bf16 %v6789_v31, %v6788_v25 }
 0x432   : > { %v6048_v32 = vsel %vm10051_vm12, %v6039_v8, %v6047_v11  ;;  %6592 = vmatprep.mubr.bf16.mxu1 %v7575_v53  ;;  %vm6884_vm12 = vcmask 130048  }
 0x433   : > { %v7579_v6 = vcombine.low %v6030_v34, %v6048_v32  ;;  %6593 = vmatmul.mubr.bf16.vlgmr.msra.gmra.mrb[32].mxu1 %v8634_v20 }
 0x434   : > { %7711 = vmatprep.mubr.msk.f32.mxu1 %vm8729_vm9, %v8730_v12 }
 0x435   : > { %6635 = vmatprep.mubr.bf16.mxu0 %v7579_v6 }
 0x436   : > { %6636 = vmatmul.mubr.bf16.vlgmr.msra.gmra.mrb[32].mxu0 %v7578_v2 }
 0x437   : > { %6647 = vmatpush1.bf16.msra.mxu0 %v8635_v5  ;;  %6678 = vmatprep.mubr.bf16.mxu0 %v11696_v29 }
 0x438   : > { %6648 = vmatprep.subr.bf16.mxu0 %v8640_v41 }
 0x43b   : > { %6649 = vmatpush1.bf16.msra.mxu0 %v8638_v28 }
 0x43c   : > { %6650 = vmatprep.subr.bf16.mxu0 %v8643_v17 }
 0x43f   : > { %6651 = vmatpush1.bf16.msra.mxu0 %v8641_v52 }
 0x440   : > { %6652 = vmatprep.subr.bf16.mxu0 %v8646_v24 }
 0x443   : > { %6653 = vmatpush1.bf16.msra.mxu0 %v8644_v30 }
 0x444   : > { %6654 = vmatprep.subr.bf16.mxu0 %v8649_v36 }
 0x447   : > { %6655 = vmatpush1.bf16.msra.mxu0 %v8647_v57 }
 0x448   : > { %6656 = vmatprep.subr.bf16.mxu0 %v8652_v37 }
 0x44b   : > { %6657 = vmatpush1.bf16.msra.mxu0 %v8650_v56 }
 0x44c   : > { %6658 = vmatprep.subr.bf16.mxu0 %v8655_v22 }
 0x44f   : > { %6659 = vmatpush1.bf16.msra.mxu0 %v8653_v14 }
 0x450   : > { %6660 = vmatprep.subr.bf16.mxu0 %v8658_v42 }
 0x453   : > { %6661 = vmatpush1.bf16.msra.mxu0 %v8656_v59  ;;  %v8728_v59 = vmov 0.0|0.0  }
 0x454   : > { %7726 = vmatprep.subr.bf16.mxu1 %v8728_v59 }
 0x455   : > { %7728 = vmatpush3.bf16.msra.mxu1 %v7727_v15 }
 0x456   : > { %6679 = vmatmul.mubr.bf16.vlgmr.msra.gmra.mrb[32].mxu0 %v7582_v63  ;;  %7729 = vmatprep.subr.bf16.mxu1 %v8728_v59 }
 0x459   : > { %7731 = vmatpush3.bf16.msra.mxu1 %v7730_v19 }
 0x45a   : > { %7732 = vmatprep.subr.bf16.mxu1 %v8728_v59 }
 0x506   : > { %v6594_v51 = vpop.f32.mrb[32].mxu1 }
 0x507   : > { %v6596_v49 = vpop.f32.mrb[33].mxu1 }
 0x508   : > { %v6598_v47 = vpop.f32.mrb[34].mxu1 }
 0x509   : > { %v6600_v50 = vpop.f32.mrb[35].mxu1 }
 0x529   : > { %v6680_v26 = vpop.f32.mrb[32].mxu0 }
 0x52a   : > { %v7735_v48 = vadd.f32 %v6680_v26, %v6594_v51  ;;  %v6682_v43 = vpop.f32.mrb[33].mxu0 }
 0x52b   : > { %v7736_v54 = vadd.f32 %v6682_v43, %v6596_v49  ;;  %v6684_v38 = vpop.f32.mrb[34].mxu0 }
 0x52c   : > { %v6689_v23 = vrot.slane %v7735_v48, 4  ;;  %v7737_v33 = vadd.f32 %v6684_v38, %v6598_v47  ;;  %v6686_v18 = vpop.f32.mrb[35].mxu0 }
 0x52d   : > { %v6695_v35 = vrot.slane %v7736_v54, 4  ;;  %v7738_v0 = vadd.f32 %v6686_v18, %v6600_v50 }
 0x52e   : > { %v6690_v61 = vmax.f32 %v7735_v48, %v6689_v23  ;;  %v6701_v4 = vrot.slane %v7737_v33, 4 }
 0x52f   : > { %v6696_v21 = vmax.f32 %v7736_v54, %v6695_v35  ;;  %v6707_v7 = vrot.slane %v7738_v0, 4  ;;  %v7663_v35 = vld [vmem:[%s11535_s4] ss:$0 sm:$0xff] }
 0x530   : > { %v6691_v3 = vrot.slane %v6690_v61, 2  ;;  %v6702_v16 = vmax.f32 %v7737_v33, %v6701_v4 }
 0x531   : > { %v6697_v45 = vrot.slane %v6696_v21, 2  ;;  %v6708_v10 = vmax.f32 %v7738_v0, %v6707_v7  ;;  %v6876_v7 = vld [vmem:[%s11538_s7 + $0x8] sm:$0xff] }
 0x532   : > { %v6692_v8 = vmax.f32 %v6690_v61, %v6691_v3  ;;  %v6703_v11 = vrot.slane %v6702_v16, 2 }
 0x533   : > { %v6698_v53 = vmax.f32 %v6696_v21, %v6697_v45  ;;  %v6709_v13 = vrot.slane %v6708_v10, 2  ;;  %v6875_v21 = vld [vmem:[%s11538_s7] sm:$0xff] }
 0x534   : > { %v6693_v44 = vrot.slane %v6692_v8, 1  ;;  %v6704_v39 = vmax.f32 %v6702_v16, %v6703_v11  ;;  %v7733_v3 = vpack.c.bf16 %v6876_v7, %v6875_v21  ;;  %v7664_v16 = vld [vmem:[%s11537_s6] ss:$0 sm:$0xff] }
 0x535   : > { %v6699_v20 = vrot.slane %v6698_v53, 1  ;;  %v6710_v60 = vmax.f32 %v6708_v10, %v6709_v13  ;;  %v7666_v13 = vld [vmem:[%s11539_s8] ss:$0 sm:$0xff] }
 0x536   : > { %v6705_v34 = vrot.slane %v6704_v39, 1  ;;  %v6694_v6 = vmax.f32 %v6692_v8, %v6693_v44 }
 0x537   : > { %v6711_v32 = vrot.slane %v6710_v60, 1  ;;  %v6700_v40 = vmax.f32 %v6698_v53, %v6699_v20  ;;  %v6959_v53 = vld [vmem:[%s11540_s9] sm:$0xff] }
 0x538   : > { %v6706_v5 = vmax.f32 %v6704_v39, %v6705_v34  ;;  %v8731_v34 = vmov 1966171168  }
 0x539   : > { %v6712_v2 = vmax.f32 %v6710_v60, %v6711_v32  ;;  %v7043_v32 = vunpack.c.l.s4 %v8731_v34 }
 0x53a   : > { %v6717_v41 = vsel %vm5211_vm0, %v6706_v5, %v6694_v6 }
 0x53b   : > { %6721 = vrot.lane.b32.xlu0 %v6717_v41, %s8727_s22  ;;  %v6718_v28 = vsel %vm5211_vm0, %v6712_v2, %v6700_v40 }
 0x53c   : > { %6723 = vrot.lane.b32.xlu1 %v6718_v28, %s8727_s22 }
 0x5ad   : > { %v6722_v29 = vpop.permute.xlu0 %6721 }
 0x5ae   : > { %v6724_v17 = vpop.permute.xlu1 %6723 }
 0x5af   : > { %v6726_v52 = vsel %vm6725_vm6, %v6722_v29, %v6724_v17  ;;  %v6727_v24 = vsel %vm6725_vm6, %v6724_v17, %v6722_v29 }
 0x5b0   : > { %v6730_v30 = vrot.slane %v6727_v24, 1  ;;  %v6731_v36 = vrot.slane %v6726_v52, 1  ;;  %v6736_v56 = vmax.f32 %v6694_v6, %v6727_v24  ;;  %v6737_v22 = vmax.f32 %v6700_v40, %v6726_v52 }
 0x5b1   : > { %v7044_v6 = vunpack.c.0.s8 %v7043_v32 }
 0x5b2   : > { %v6738_v57 = vmax.f32 %v6706_v5, %v6730_v30  ;;  %v6739_v37 = vmax.f32 %v6712_v2, %v6731_v36  ;;  %v11698_v5 = vlaneseq  ;;  %v7668_v2 = vld [vmem:[%s11541_s10] ss:$0 sm:$0xff] }
 0x5b4   : > { %v6744_v1 = vrot.slane %v6738_v57, 7  ;;  %v6746_v14 = vrot.slane %v6739_v37, 7  ;;  %v7046_v40 = vshrl.u32 %v11698_v5, 7 }
 0x5b6   : > { %v6745_v42 = vsel %vm5211_vm0, %v6744_v1, %v6736_v56  ;;  %v6747_v55 = vsel %vm5211_vm0, %v6746_v14, %v6737_v22  ;;  %v7047_v41 = vsub.s32 %v7044_v6, %v7046_v40 }
 0x5b7   : > { %6750 = vrot.lane.b32.xlu0 %v6745_v42, %s8725_s12  ;;  %6752 = vrot.lane.b32.xlu1 %v6747_v55, %s8725_s12  ;;  %s380_s12 = sand.u32 1, %s8713_s18  }
 0x5b8   : > { %s7149_s15 = sshll.u32 %s380_s12, 1  ;;  %s11488_s13 = scalar_lea.sflag [#allocation7], %s380_s12 }
 0x5b9   : > { %s382_s25 = scalar_lea.vmem [#allocation6], %s7149_s15  ;;  %s8663_s15 = sshll.u32 %s8732_s14, 4  ;;  %s8664_s15 = int_to_ptr.vmem [resolvable:$false] %s8663_s15 }
 0x5ba   : > { %s7083_s19 = sshll.u32 %s382_s25, 4  ;;  %s8665_s16 = scalar_lea.vmem %s8664_s15, 64  ;;  %s11486_s19 = int_to_ptr.vmem [resolvable:$true] %s7083_s19 }
 0x5bb   : > { %s8659_s21 = scalar_lea.vmem %s11486_s19, 32  ;;  %p8666_p0 = scmp.lt.s32.totalorder %s11486_s19, %s8664_s15 }
 0x5bc   : > { %p8660_p11 = scmp.ne.s32.totalorder %s11486_s19, %s8659_s21  ;;  %p8667_p1 = scmp.lt.s32.totalorder %s8665_s16, %s8659_s21 }
 0x5be   : > { %p8661_p12 = pnand %p8660_p11, %p8832_p5  ;;  %p8668_p2 = por %p8667_p1, %p8666_p0 }
 0x5c0   : > { %p8662_p13 = pneg %p8661_p12 }
 0x5c2   : > { %p8669_p3 = pnand %p8668_p2, %p8662_p13 }
 0x629   : > { %v6751_v58 = vpop.permute.xlu0 %6750  ;;  %v6753_v62 = vpop.permute.xlu1 %6752 }
 0x62a   : > { %v6754_v63 = vsel %vm5300_vm8, %v6751_v58, %v6753_v62  ;;  %v6755_v51 = vsel %vm5300_vm8, %v6753_v62, %v6751_v58 }
 0x62b   : > { %v6759_v49 = vrot.slane %v6754_v63, 1  ;;  %v6758_v50 = vrot.slane %v6755_v51, 1  ;;  %v6765_v26 = vmax.f32 %v6737_v22, %v6754_v63  ;;  %v6764_v54 = vmax.f32 %v6736_v56, %v6755_v51 }
 0x62d   : > { %v6767_v47 = vmax.f32 %v6739_v37, %v6759_v49  ;;  %v6766_v38 = vmax.f32 %v6738_v57, %v6758_v50 }
 0x62f   : > { %v6770_v48 = vrot.slane %v6767_v47, 7 }
 0x631   : > { %v6771_v43 = vsel %vm5211_vm0, %v6770_v48, %v6765_v26 }
 0x632   : > { %v6772_v23 = vrot.slane %v6771_v43, 1  ;;  %v6775_v33 = vmax.f32 %v6764_v54, %v6771_v43 }
 0x634   : > { %v6776_v18 = vmax.f32 %v6766_v38, %v6772_v23  ;;  %v6784_v61 = vadd.f32 %v7663_v35, %v6775_v33 }
 0x636   : > { %v6785_v0 = vadd.f32 %v7663_v35, %v6776_v18 }
 0x638   : > { %v6799_v27 = vrot.slane %v6785_v0, 7 }
 0x63a   : > { %v6800_v4 = vsel %vm5211_vm0, %v6799_v27, %v6784_v61 }
 0x63b   : > { %7712 = vmatmul.mubr.msk.f32.vlgmr.msra.gmra.mrb[36].mxu1 %vm6801_vm11, %v6800_v4 }
 0x63c   : > { %7718 = vmatprep.mubr.msk.f32.mxu1 %vm8729_vm9, %v8730_v12  ;;  %7734 = vmatpush3.bf16.msra.mxu1 %v7733_v3 }
 0x63d   : > { %7721 = vmatprep.subr.mxu1 %v8730_v12 }
 0x70e   : > { %v6870_v45 = vpop.f32.mrb[36].mxu1 }
 0x70f   : > { %v6871_v10 = vadd.f32 %v7664_v16, %v6870_v45  ;;  %v7713_v8 = vpop.f32.mrb[37].mxu1 }
 0x711   : > { %v6874_v11 = vmax.f32 %v6871_v10, 0.0 }
 0x713   : > { %7719 = vmatmul.mubr.msk.f32.vlgmr.msra.gmra.mrb[38].mxu1 %vm6884_vm12, %v6874_v11 }
 0x714   : > { %7723 = vmatprep.mubr.msk.f32.mxu1 %vm8729_vm9, %v8730_v12  ;;  %7722 = vmatpush3.msra.mxu1 %v6959_v53 }
 0x7e6   : > { %v6954_v44 = vpop.f32.mrb[38].mxu1 }
 0x7e7   : > { %v6955_v39 = vadd.f32 %v7666_v13, %v6954_v44  ;;  %v7720_v20 = vpop.f32.mrb[39].mxu1 }
 0x7e9   : > { %v6958_v60 = vmax.f32 %v6955_v39, 0.0 }
 0x7eb   : > { %7724 = vmatmul.mubr.msk.f32.vlgmr.msra.gmra.mrb[40].mxu1 %vm6967_vm13, %v6958_v60 }
 0x8be   : > { %v7037_v28 = vpop.f32.mrb[40].mxu1 }
 0x8bf   : > { %v7038_v29 = vadd.f32 %v7668_v2, %v7037_v28  ;;  %v7725_v17 = vpop.f32.mrb[41].mxu1 }
 0x8c1   : > { %v7048_v52 = vrot.slane %v7038_v29, %v7047_v41 }
 0x8c3   : > { %v7049_v24 = vcombine.high %v7048_v52, %v7048_v52  ;;  %v7056_v30 = vrot.slane %v7048_v52, %v7047_v41 }
 0x8c5   : > { %v7063_v36 = vrot.slane %v7049_v24, %v7047_v41  ;;  %7067 = vst.msk [vmem:[%s382_s25] sm:$0x1] %vm7066_vm14, %v7056_v30 }
 0x8c7   : > { %7068 = vst.msk [vmem:[%s382_s25 + $0x1] sm:$0x1] %vm7066_vm14, %v7063_v36 }
 0x8c8   : > { %8672 = shalt.err (!%p8669_p3)
}
 0x8c9   : > { %s8673_s12 = scalar_lea.hbm %s11484_s26, 32  ;;  %s8677_s25 = scalar_lea.hbm %s11542_s11, 64 }
 0x8ca   : > { %p8674_p4 = scmp.ne.s32.totalorder %s11484_s26, %s8673_s12  ;;  %p8678_p9 = scmp.lt.u32.totalorder %s11484_s26, %s11542_s11 }
 0x8cb   : > { %p8679_p10 = scmp.lt.u32.totalorder %s8677_s25, %s8673_s12  ;;  %p8681_p12 = scmp.lt.u32.totalorder %s8673_s12, %s11484_s26 }
 0x8cc   : > { %p8675_p7 = pnand %p8674_p4, %p8832_p5 }
 0x8cd   : > { %p8680_p11 = por %p8679_p10, %p8678_p9 }
 0x8ce   : > { %p8676_p8 = pneg %p8675_p7 }
 0x8cf   : > { %p8682_p13 = por %p8681_p12, %p8680_p11 }
 0x8d1   : > { %p8683_p0 = pnand %p8682_p13, %p8676_p8 }
 0x8d3   : > { %8686 = shalt.err (!%p8683_p0)
}
 0x8d4   : > { %s8733_s21 = smov 1  }
 0x8d5   : > { %7999 = dma.vmem_to_hbm [thread:$0]  (%p8832_p5), %s11486_s19, 32, %s11484_s26, %s11488_s13, %s8726_s23, %s8726_s23, %s8733_s21  }
 0x8d6 PF: > { %p8005_p1 = scmp.ge.s32.totalorder %s8721_s20, 2  ;;  %s7098_s14 = sand.u32 1, %s8709_s17  }
 0x8d7   : > { %s7099_s15 = scalar_lea.sflag [#allocation7], %s7098_s14 }
 0x8d8   : > { %p8002_p2 = pnand %p8005_p1, %p8836_p6 }
 0x8da   : > { %8704 = dma.done.wait (!%p8002_p2), %s7099_s15, 32  }
 0x8db   : > { %8706 = vsyncadd (!%p8002_p2), %s7099_s15, 4294967264  ;;  %s11699_s20 = sld [smem:[#allocation10_spill]]  ;;  %s11700_s27 = sld [smem:[#allocation9_spill]] }
 0x8dc   : > { %s11701_s19 = sld [smem:[#allocation11_spill]]  ;;  %s11702_s17 = smov %s8713_s18 }
 0x8e1   : > { %p21_p3 = scmp.ge.s32.totalorder %s11699_s20, 4   ;;  %s11703_s18 = smov %s11700_s27 }
 0x8e3   :  { %23 = sbr.rel (!%p21_p3) target bundleno = 3 (0x3), region = 99 }
 0x8ea   :  { %7104 = vsyncpa [#allocation7], 1 }
 0x8eb   :  { %7106 = vsyncpa [#allocation7 + $0x1], 1 }

</bundles_post_ra>
